<compile_context>
chip_gen: v5e
topology: v5e:2x2
jax: 0.10.0
libtpu: 0.0.40
codegen_flags: <defaults>
</compile_context>

<pallas_src>
import math

import jax
import jax.numpy as jnp
from jax import lax
from jax.experimental import pallas as pl
from jax.experimental.pallas import tpu as pltpu

IMG_LENGTH = 64          # CONFIG['img_length']
D_MODEL    = 128         # size
N_HEADS    = 8
HEAD_DIM   = D_MODEL // N_HEADS
FF_DIM     = 2048        # torch TransformerEncoderLayer default dim_feedforward
FF_CHUNK   = 512
N_LAYERS   = 3
LN_EPS     = 1e-5
VOCAB_SIZE = 256         # only needed by the (unimplemented) text branch
NEG_INF    = -1e30


# ---------------------------------------------------------------- helpers ---
def positionalencoding1d(d_model, length_max):
    position = jnp.arange(length_max, dtype=jnp.float32)[:, None]
    div_term = jnp.exp(jnp.arange(0, d_model, 2, dtype=jnp.float32)
                       * -(math.log(10000.0) / d_model))
    pe = jnp.zeros((length_max, d_model), jnp.float32)
    pe = pe.at[:, 0::2].set(jnp.sin(position * div_term))
    pe = pe.at[:, 1::2].set(jnp.cos(position * div_term))
    return pe


def _layernorm(x, g, b):
    mu = jnp.mean(x, axis=-1, keepdims=True)
    xc = x - mu
    var = jnp.mean(xc * xc, axis=-1, keepdims=True)
    return xc * lax.rsqrt(var + LN_EPS) * g + b


# ----------------------------------------------------------- fused kernel ---
def _make_kernel(n_rows):
    """n_rows = B*S flattened token rows; H*n_rows rows in folded attention."""

    def kernel(x_ref, pe_ref, amask_ref, hmask_ref,
               img_w_ref, img_b_ref,
               wqkv_ref, bqkv_ref, wo_ref, bo_ref,
               g1_ref, b1_ref, wf1_ref, bf1_ref, wf2_ref, bf2_ref,
               g2_ref, b2_ref,
               dec_w_ref, dec_b_ref,
               emb_ref, loss_ref,
               net_ref):
        l = pl.program_id(0)
        last = pl.num_programs(0) - 1

        # ---- layer 0 only: image_preprocessing + positional encoding -------
        @pl.when(l == 0)
        def _():
            net_ref[...] = (
                jnp.dot(x_ref[...].astype(jnp.bfloat16), img_w_ref[...],
                        preferred_element_type=jnp.float32)
                + img_b_ref[...] + pe_ref[...])

        net = net_ref[...]                               # [N, D]   f32
        hmask = hmask_ref[...]                           # [HN, D]  f32 (0/1)

        # ---------------- self-attention (heads folded into rows) -----------
        xb = net.astype(jnp.bfloat16)
        qkv = (jnp.dot(xb, wqkv_ref[0], preferred_element_type=jnp.float32)
               + bqkv_ref[0])                            # [N, 3D] f32
        qkv_b = qkv.astype(jnp.bfloat16)

        q = qkv[:, :D_MODEL]                             # f32 (masked below)
        k_b = qkv_b[:, D_MODEL:2 * D_MODEL]
        v_b = qkv_b[:, 2 * D_MODEL:]

        # replicate along sublanes: row h*N + n carries token n for head h
        q_rep = (jnp.concatenate([q] * N_HEADS, axis=0) * hmask
                 ).astype(jnp.bfloat16)                  # [HN, D] head-masked
        k_rep = jnp.concatenate([k_b] * N_HEADS, axis=0) # [HN, D]
        v_rep = jnp.concatenate([v_b] * N_HEADS, axis=0) # [HN, D]

        # one full-width score matmul; cross-head/cross-batch entries masked
        s = lax.dot_general(q_rep, k_rep, (((1,), (1,)), ((), ())),
                            preferred_element_type=jnp.float32)   # [HN, HN]
        s = s + amask_ref[...]
        s = s - jnp.max(s, axis=-1, keepdims=True)
        p = jnp.exp(s)
        p = p * pl.reciprocal(jnp.sum(p, axis=-1, keepdims=True), approx=True)

        av = jnp.dot(p.astype(jnp.bfloat16), v_rep,
                     preferred_element_type=jnp.float32)           # [HN, D]
        # keep only each row-block's own head channels, then one out-proj matmul
        z = jnp.dot((av * hmask).astype(jnp.bfloat16), wo_ref[0],
                    preferred_element_type=jnp.float32)            # [HN, D]

        # recombine the 8 head row-blocks -> [N, D] (sublane-aligned tree add)
        parts = [z[i * n_rows:(i + 1) * n_rows, :] for i in range(N_HEADS)]
        while len(parts) > 1:
            parts = [parts[i] + parts[i + 1] for i in range(0, len(parts), 2)]
        attn = parts[0] + bo_ref[0]

        h1 = _layernorm(net + attn, g1_ref[0], b1_ref[0])          # post-norm

        # ---------------- FFN, chunked over FF_DIM ---------------------------
        h1b = h1.astype(jnp.bfloat16)
        ff = jnp.zeros((n_rows, D_MODEL), jnp.float32)
        for c0 in range(0, FF_DIM, FF_CHUNK):
            fc = (jnp.dot(h1b, wf1_ref[0, :, c0:c0 + FF_CHUNK],
                          preferred_element_type=jnp.float32)
                  + bf1_ref[0, :, c0:c0 + FF_CHUNK])
            fc = jnp.maximum(fc, 0.0)
            ff = ff + jnp.dot(fc.astype(jnp.bfloat16),
                              wf2_ref[0, c0:c0 + FF_CHUNK, :],
                              preferred_element_type=jnp.float32)
        ff = ff + bf2_ref[0]

        net_new = _layernorm(h1 + ff, g2_ref[0], b2_ref[0])
        net_ref[...] = net_new                           # carry to next layer

        # ---- last layer only: decoder + sigmoid + L1 loss sum ---------------
        @pl.when(l == last)
        def _():
            emb_ref[...] = net_new
            zz = (jnp.dot(net_new.astype(jnp.bfloat16), dec_w_ref[...],
                          preferred_element_type=jnp.float32) + dec_b_ref[...])
            out = 1.0 / (1.0 + jnp.exp(-zz))             # exact sigmoid (loss path)
            loss_ref[...] = jnp.broadcast_to(
                jnp.sum(jnp.abs(out - x_ref[...])), (1, 128))

    return kernel


def _const_spec(a):
    nd = a.ndim
    return pl.BlockSpec(a.shape, lambda l, _nd=nd: (0,) * _nd)


def _layer_spec(a):
    tail = a.shape[1:]
    nz = len(tail)
    return pl.BlockSpec((1,) + tail, lambda l, _nz=nz: (l,) + (0,) * _nz)


# --------------------------------------------------------------- wrapper ----
def mute_embeds_forward(params, x, mask=None):
    """Image branch of MuteEmbeds.forward: x is float [B, S, IMG_LENGTH]."""
    # TODO(synk): mask (src_key_padding_mask) not supported; demo uses None.
    B, S, IMG = x.shape
    N = B * S
    HN = N_HEADS * N

    pe = positionalencoding1d(D_MODEL, S)                      # [S, D]
    pe_full = jnp.tile(pe, (B, 1)).astype(jnp.float32)         # [N, D]
    x2 = x.reshape(N, IMG).astype(jnp.float32)                 # flattened rows

    # folded-attention masks:
    head_of_row = jnp.repeat(jnp.arange(N_HEADS), N)           # [HN]
    token_of_row = jnp.tile(jnp.arange(N), N_HEADS)            # [HN]
    batch_of_row = (token_of_row // S)                         # [HN]
    same_head = head_of_row[:, None] == head_of_row[None, :]
    same_batch = batch_of_row[:, None] == batch_of_row[None, :]
    # additive score mask: 0 within (same head, same batch element), -1e30 else
    amask = jnp.where(same_head & same_batch, 0.0, NEG_INF).astype(jnp.float32)
    # channel mask: row-block h keeps only head h's 16 channels
    chan_head = jnp.arange(D_MODEL) // HEAD_DIM                # [D]
    hmask = (head_of_row[:, None] == chan_head[None, :]).astype(jnp.float32)

    args = [x2, pe_full, amask, hmask,
            params["img_w"], params["img_b"],
            params["w_qkv"], params["b_qkv"], params["w_out"], params["b_out"],
            params["ln1_g"], params["ln1_b"],
            params["w_ff1"], params["b_ff1"], params["w_ff2"], params["b_ff2"],
            params["ln2_g"], params["ln2_b"],
            params["dec_w"], params["dec_b"]]

    const_args = {0, 1, 2, 3, 4, 5, 18, 19}   # non-stacked, layer-invariant
    in_specs = [_const_spec(a) if i in const_args else _layer_spec(a)
                for i, a in enumerate(args)]

    emb, loss_vec = pl.pallas_call(
        _make_kernel(N),
        out_shape=(jax.ShapeDtypeStruct((N, D_MODEL), jnp.float32),
                   jax.ShapeDtypeStruct((1, 128), jnp.float32)),
        grid=(N_LAYERS,),
        in_specs=in_specs,
        out_specs=(pl.BlockSpec((N, D_MODEL), lambda l: (0, 0)),
                   pl.BlockSpec((1, 128), lambda l: (0, 0))),
        scratch_shapes=[pltpu.VMEM((N, D_MODEL), jnp.float32)],
        compiler_params=pltpu.CompilerParams(
            dimension_semantics=("arbitrary",),
            vmem_limit_bytes=32 * 1024 * 1024),
    )(*args)

    loss = loss_vec[0, 0] / (N * IMG)          # torch.mean(torch.abs(out - x))
    return {"embedding": emb.reshape(B, S, D_MODEL), "loss": loss}


# ------------------------------------------------------------------ params --
def init_params(key):
    keys = iter(jax.random.split(key, 64))

    def w(shape, scale=0.05):
        return (scale * jax.random.normal(next(keys), shape)).astype(jnp.float32)

    scale_q = 1.0 / math.sqrt(HEAD_DIM)
    wqkv, bqkv, wo, bo = [], [], [], []
    g1, b1, wf1, bf1, wf2, bf2, g2, b2 = ([] for _ in range(8))
    for _ in range(N_LAYERS):
        wq = w((D_MODEL, 3 * D_MODEL))      # in_proj_weight.T  ([in, out])
        bq = w((1, 3 * D_MODEL))
        # fold the 1/sqrt(head_dim) attention scale into the Q block
        wq = wq.at[:, :D_MODEL].multiply(scale_q)
        bq = bq.at[:, :D_MODEL].multiply(scale_q)
        wqkv.append(wq); bqkv.append(bq)
        wo.append(w((D_MODEL, D_MODEL)))    # out_proj.weight.T
        bo.append(w((1, D_MODEL)))
        g1.append(jnp.ones((1, D_MODEL), jnp.float32))
        b1.append(jnp.zeros((1, D_MODEL), jnp.float32))
        wf1.append(w((D_MODEL, FF_DIM))); bf1.append(w((1, FF_DIM)))
        wf2.append(w((FF_DIM, D_MODEL))); bf2.append(w((1, D_MODEL)))
        g2.append(jnp.ones((1, D_MODEL), jnp.float32))
        b2.append(jnp.zeros((1, D_MODEL), jnp.float32))

    st = lambda xs: jnp.stack(xs, axis=0)           # [N_LAYERS, ...]
    bf = lambda a: a.astype(jnp.bfloat16)           # matmul weights -> bf16

    return {
        "img_w": bf(w((IMG_LENGTH, D_MODEL))),      # image_preprocessing.weight.T
        "img_b": w((1, D_MODEL)),
        "dec_w": bf(w((D_MODEL, IMG_LENGTH))),      # image_decoder.weight.T
        "dec_b": w((1, IMG_LENGTH)),
        "w_qkv": bf(st(wqkv)), "b_qkv": st(bqkv),
        "w_out": bf(st(wo)),   "b_out": st(bo),
        "ln1_g": st(g1), "ln1_b": st(b1),
        "w_ff1": bf(st(wf1)), "b_ff1": st(bf1),
        "w_ff2": bf(st(wf2)), "b_ff2": st(bf2),
        "ln2_g": st(g2), "ln2_b": st(b2),
        # text-branch params kept for shape parity (unused in this demo):
        "text_emb": w((VOCAB_SIZE, D_MODEL)),
        "text_dec_w": w((D_MODEL, VOCAB_SIZE)),
        "text_dec_b": w((1, VOCAB_SIZE)),
    }


# ------------------------------------------------------------------- main ---
if __name__ == "__main__":
    key = jax.random.PRNGKey(0)
    pkey, xkey = jax.random.split(key)
    params = init_params(pkey)

    B, S = 2, 8
    x = jax.random.uniform(xkey, (B, S, IMG_LENGTH), dtype=jnp.float32)

    result = mute_embeds_forward(params, x)
    jax.block_until_ready(result)
    print("KERNEL_OK")
</pallas_src>

<mosaic_0001>
module attributes {stable_mosaic.version = 11 : i64} {
  func.func @kernel(%arg0: i32, %arg1: memref<16x64xf32, #tpu.memory_space<vmem>>, %arg2: memref<16x128xf32, #tpu.memory_space<vmem>>, %arg3: memref<128x128xf32, #tpu.memory_space<vmem>>, %arg4: memref<128x128xf32, #tpu.memory_space<vmem>>, %arg5: memref<64x128xbf16, #tpu.memory_space<vmem>>, %arg6: memref<1x128xf32, #tpu.memory_space<vmem>>, %arg7: memref<1x128x384xbf16, #tpu.memory_space<vmem>>, %arg8: memref<1x1x384xf32, #tpu.memory_space<vmem>>, %arg9: memref<1x128x128xbf16, #tpu.memory_space<vmem>>, %arg10: memref<1x1x128xf32, #tpu.memory_space<vmem>>, %arg11: memref<1x1x128xf32, #tpu.memory_space<vmem>>, %arg12: memref<1x1x128xf32, #tpu.memory_space<vmem>>, %arg13: memref<1x128x2048xbf16, #tpu.memory_space<vmem>>, %arg14: memref<1x1x2048xf32, #tpu.memory_space<vmem>>, %arg15: memref<1x2048x128xbf16, #tpu.memory_space<vmem>>, %arg16: memref<1x1x128xf32, #tpu.memory_space<vmem>>, %arg17: memref<1x1x128xf32, #tpu.memory_space<vmem>>, %arg18: memref<1x1x128xf32, #tpu.memory_space<vmem>>, %arg19: memref<128x64xbf16, #tpu.memory_space<vmem>>, %arg20: memref<1x64xf32, #tpu.memory_space<vmem>>, %arg21: memref<16x128xf32, #tpu.memory_space<vmem>>, %arg22: memref<1x128xf32, #tpu.memory_space<vmem>>, %arg23: memref<16x128xf32, #tpu.memory_space<vmem>>) attributes {dimension_semantics = [#tpu.dimension_semantics<arbitrary>], iteration_bounds = array<i64: 3>, scalar_prefetch = 0 : i64, scratch_operands = 1 : i64, tpu.core_type = #tpu.core_type<tc>, window_params = [{pipeline_mode = #tpu.pipeline_mode<synchronous>, transform_indices = @transform_0, window_bounds = array<i64: 16, 64>}, {pipeline_mode = #tpu.pipeline_mode<synchronous>, transform_indices = @transform_1, window_bounds = array<i64: 16, 128>}, {pipeline_mode = #tpu.pipeline_mode<synchronous>, transform_indices = @transform_2, window_bounds = array<i64: 128, 128>}, {pipeline_mode = #tpu.pipeline_mode<synchronous>, transform_indices = @transform_3, window_bounds = array<i64: 128, 128>}, {pipeline_mode = #tpu.pipeline_mode<synchronous>, transform_indices = @transform_4, window_bounds = array<i64: 64, 128>}, {pipeline_mode = #tpu.pipeline_mode<synchronous>, transform_indices = @transform_5, window_bounds = array<i64: 1, 128>}, {transform_indices = @transform_6, window_bounds = array<i64: 1, 128, 384>}, {transform_indices = @transform_7, window_bounds = array<i64: 1, 1, 384>}, {transform_indices = @transform_8, window_bounds = array<i64: 1, 128, 128>}, {transform_indices = @transform_9, window_bounds = array<i64: 1, 1, 128>}, {transform_indices = @transform_10, window_bounds = array<i64: 1, 1, 128>}, {transform_indices = @transform_11, window_bounds = array<i64: 1, 1, 128>}, {transform_indices = @transform_12, window_bounds = array<i64: 1, 128, 2048>}, {transform_indices = @transform_13, window_bounds = array<i64: 1, 1, 2048>}, {transform_indices = @transform_14, window_bounds = array<i64: 1, 2048, 128>}, {transform_indices = @transform_15, window_bounds = array<i64: 1, 1, 128>}, {transform_indices = @transform_16, window_bounds = array<i64: 1, 1, 128>}, {transform_indices = @transform_17, window_bounds = array<i64: 1, 1, 128>}, {pipeline_mode = #tpu.pipeline_mode<synchronous>, transform_indices = @transform_18, window_bounds = array<i64: 128, 64>}, {pipeline_mode = #tpu.pipeline_mode<synchronous>, transform_indices = @transform_19, window_bounds = array<i64: 1, 64>}, {pipeline_mode = #tpu.pipeline_mode<synchronous>, transform_indices = @transform_20, window_bounds = array<i64: 16, 128>}, {pipeline_mode = #tpu.pipeline_mode<synchronous>, transform_indices = @transform_21, window_bounds = array<i64: 1, 128>}]} {
    %c0_i32 = arith.constant 0 : i32
    %0 = arith.cmpi eq, %arg0, %c0_i32 : i32
    %1 = arith.extui %0 : i1 to i32
    %c0_i32_0 = arith.constant 0 : i32
    %2 = arith.cmpi ne, %1, %c0_i32_0 : i32
    scf.if %2 {
      %c0_97 = arith.constant 0 : index
      %c0_98 = arith.constant 0 : index
      %177 = vector.load %arg1[%c0_97, %c0_98] : memref<16x64xf32, #tpu.memory_space<vmem>>, vector<16x64xf32>
      %178 = arith.truncf %177 : vector<16x64xf32> to vector<16x64xbf16>
      %c0_99 = arith.constant 0 : index
      %c0_100 = arith.constant 0 : index
      %179 = vector.load %arg5[%c0_99, %c0_100] : memref<64x128xbf16, #tpu.memory_space<vmem>>, vector<64x128xbf16>
      %cst_101 = arith.constant dense<0.000000e+00> : vector<16x128xf32>
      %180 = tpu.matmul %178, %179, %cst_101 {dimension_numbers = #tpu.dot_dimension_numbers<[1], [0], [0], [1], [0, 0, 1, 1], [], []>} : vector<16x64xbf16>, vector<64x128xbf16>, vector<16x128xf32> -> vector<16x128xf32>
      %c0_102 = arith.constant 0 : index
      %c0_103 = arith.constant 0 : index
      %181 = vector.load %arg6[%c0_102, %c0_103] : memref<1x128xf32, #tpu.memory_space<vmem>>, vector<1x128xf32>
      %182 = vector.broadcast %181 : vector<1x128xf32> to vector<16x128xf32>
      %183 = arith.addf %180, %182 : vector<16x128xf32>
      %c0_104 = arith.constant 0 : index
      %c0_105 = arith.constant 0 : index
      %184 = vector.load %arg2[%c0_104, %c0_105] : memref<16x128xf32, #tpu.memory_space<vmem>>, vector<16x128xf32>
      %185 = arith.addf %183, %184 : vector<16x128xf32>
      %c0_106 = arith.constant 0 : index
      %c0_107 = arith.constant 0 : index
      %186 = vector.load %arg23[%c0_106, %c0_107] : memref<16x128xf32, #tpu.memory_space<vmem>>, vector<16x128xf32>
      tpu.vector_store %arg23[%c0_106, %c0_107], %185 {strides = array<i32>} : memref<16x128xf32, #tpu.memory_space<vmem>>, vector<16x128xf32>,
    } else {
    }
    %c0 = arith.constant 0 : index
    %c0_1 = arith.constant 0 : index
    %3 = vector.load %arg23[%c0, %c0_1] : memref<16x128xf32, #tpu.memory_space<vmem>>, vector<16x128xf32>
    %c0_2 = arith.constant 0 : index
    %c0_3 = arith.constant 0 : index
    %4 = vector.load %arg4[%c0_2, %c0_3] : memref<128x128xf32, #tpu.memory_space<vmem>>, vector<128x128xf32>
    %5 = arith.truncf %3 : vector<16x128xf32> to vector<16x128xbf16>
    %c0_4 = arith.constant 0 : index
    %c0_5 = arith.constant 0 : index
    %c0_6 = arith.constant 0 : index
    %6 = vector.load %arg7[%c0_4, %c0_5, %c0_6] : memref<1x128x384xbf16, #tpu.memory_space<vmem>>, vector<1x128x384xbf16>
    %7 = vector.shape_cast %6 : vector<1x128x384xbf16> to vector<128x384xbf16>
    %cst = arith.constant dense<0.000000e+00> : vector<16x384xf32>
    %8 = tpu.matmul %5, %7, %cst {dimension_numbers = #tpu.dot_dimension_numbers<[1], [0], [0], [1], [0, 0, 1, 1], [], []>} : vector<16x128xbf16>, vector<128x384xbf16>, vector<16x384xf32> -> vector<16x384xf32>
    %c0_7 = arith.constant 0 : index
    %c0_8 = arith.constant 0 : index
    %c0_9 = arith.constant 0 : index
    %9 = vector.load %arg8[%c0_7, %c0_8, %c0_9] : memref<1x1x384xf32, #tpu.memory_space<vmem>>, vector<1x1x384xf32>
    %10 = vector.shape_cast %9 : vector<1x1x384xf32> to vector<1x384xf32>
    %11 = vector.broadcast %10 : vector<1x384xf32> to vector<16x384xf32>
    %12 = arith.addf %8, %11 : vector<16x384xf32>
    %13 = arith.truncf %12 : vector<16x384xf32> to vector<16x384xbf16>
    %14 = vector.extract_strided_slice %12 {offsets = [0, 0], sizes = [16, 128], strides = [1, 1]} : vector<16x384xf32> to vector<16x128xf32>
    %15 = vector.extract_strided_slice %13 {offsets = [0, 128], sizes = [16, 128], strides = [1, 1]} : vector<16x384xbf16> to vector<16x128xbf16>
    %16 = vector.extract_strided_slice %13 {offsets = [0, 256], sizes = [16, 128], strides = [1, 1]} : vector<16x384xbf16> to vector<16x128xbf16>
    %17 = tpu.concatenate %14, %14, %14, %14, %14, %14, %14, %14 in 0 : vector<16x128xf32>, vector<16x128xf32>, vector<16x128xf32>, vector<16x128xf32>, vector<16x128xf32>, vector<16x128xf32>, vector<16x128xf32>, vector<16x128xf32> -> vector<128x128xf32>
    %18 = arith.mulf %17, %4 : vector<128x128xf32>
    %19 = arith.truncf %18 : vector<128x128xf32> to vector<128x128xbf16>
    %20 = tpu.concatenate %15, %15, %15, %15, %15, %15, %15, %15 in 0 : vector<16x128xbf16>, vector<16x128xbf16>, vector<16x128xbf16>, vector<16x128xbf16>, vector<16x128xbf16>, vector<16x128xbf16>, vector<16x128xbf16>, vector<16x128xbf16> -> vector<128x128xbf16>
    %21 = tpu.concatenate %16, %16, %16, %16, %16, %16, %16, %16 in 0 : vector<16x128xbf16>, vector<16x128xbf16>, vector<16x128xbf16>, vector<16x128xbf16>, vector<16x128xbf16>, vector<16x128xbf16>, vector<16x128xbf16>, vector<16x128xbf16> -> vector<128x128xbf16>
    %cst_10 = arith.constant dense<0.000000e+00> : vector<128x128xf32>
    %22 = tpu.matmul %19, %20, %cst_10 {dimension_numbers = #tpu.dot_dimension_numbers<[1], [1], [0], [0], [0, 0, 1, 0], [], []>} : vector<128x128xbf16>, vector<128x128xbf16>, vector<128x128xf32> -> vector<128x128xf32>
    %c0_11 = arith.constant 0 : index
    %c0_12 = arith.constant 0 : index
    %23 = vector.load %arg3[%c0_11, %c0_12] : memref<128x128xf32, #tpu.memory_space<vmem>>, vector<128x128xf32>
    %24 = arith.addf %22, %23 : vector<128x128xf32>
    %cst_13 = arith.constant dense<0xFF800000> : vector<128xf32>
    %25 = vector.multi_reduction <maximumf>, %24, %cst_13 [1] : vector<128x128xf32> to vector<128xf32>
    %26 = vector.shape_cast %25 : vector<128xf32> to vector<128x1xf32>
    %27 = vector.broadcast %26 : vector<128x1xf32> to vector<128x128xf32>
    %28 = arith.subf %24, %27 : vector<128x128xf32>
    %29 = math.exp %28 : vector<128x128xf32>
    %cst_14 = arith.constant dense<0.000000e+00> : vector<128xf32>
    %30 = vector.multi_reduction <add>, %29, %cst_14 [1] : vector<128x128xf32> to vector<128xf32>
    %31 = vector.shape_cast %30 : vector<128xf32> to vector<128x1xf32>
    %32 = tpu.reciprocal %31 {approx = true} : vector<128x1xf32> -> vector<128x1xf32>
    %33 = vector.broadcast %32 : vector<128x1xf32> to vector<128x128xf32>
    %34 = arith.mulf %29, %33 : vector<128x128xf32>
    %35 = arith.truncf %34 : vector<128x128xf32> to vector<128x128xbf16>
    %cst_15 = arith.constant dense<0.000000e+00> : vector<128x128xf32>
    %36 = tpu.matmul %35, %21, %cst_15 {dimension_numbers = #tpu.dot_dimension_numbers<[1], [0], [0], [1], [0, 0, 1, 1], [], []>} : vector<128x128xbf16>, vector<128x128xbf16>, vector<128x128xf32> -> vector<128x128xf32>
    %37 = arith.mulf %36, %4 : vector<128x128xf32>
    %38 = arith.truncf %37 : vector<128x128xf32> to vector<128x128xbf16>
    %c0_16 = arith.constant 0 : index
    %c0_17 = arith.constant 0 : index
    %c0_18 = arith.constant 0 : index
    %39 = vector.load %arg9[%c0_16, %c0_17, %c0_18] : memref<1x128x128xbf16, #tpu.memory_space<vmem>>, vector<1x128x128xbf16>
    %40 = vector.shape_cast %39 : vector<1x128x128xbf16> to vector<128x128xbf16>
    %cst_19 = arith.constant dense<0.000000e+00> : vector<128x128xf32>
    %41 = tpu.matmul %38, %40, %cst_19 {dimension_numbers = #tpu.dot_dimension_numbers<[1], [0], [0], [1], [0, 0, 1, 1], [], []>} : vector<128x128xbf16>, vector<128x128xbf16>, vector<128x128xf32> -> vector<128x128xf32>
    %42 = vector.extract_strided_slice %41 {offsets = [0, 0], sizes = [16, 128], strides = [1, 1]} : vector<128x128xf32> to vector<16x128xf32>
    %43 = vector.extract_strided_slice %41 {offsets = [16, 0], sizes = [16, 128], strides = [1, 1]} : vector<128x128xf32> to vector<16x128xf32>
    %44 = vector.extract_strided_slice %41 {offsets = [32, 0], sizes = [16, 128], strides = [1, 1]} : vector<128x128xf32> to vector<16x128xf32>
    %45 = vector.extract_strided_slice %41 {offsets = [48, 0], sizes = [16, 128], strides = [1, 1]} : vector<128x128xf32> to vector<16x128xf32>
    %46 = vector.extract_strided_slice %41 {offsets = [64, 0], sizes = [16, 128], strides = [1, 1]} : vector<128x128xf32> to vector<16x128xf32>
    %47 = vector.extract_strided_slice %41 {offsets = [80, 0], sizes = [16, 128], strides = [1, 1]} : vector<128x128xf32> to vector<16x128xf32>
    %48 = vector.extract_strided_slice %41 {offsets = [96, 0], sizes = [16, 128], strides = [1, 1]} : vector<128x128xf32> to vector<16x128xf32>
    %49 = vector.extract_strided_slice %41 {offsets = [112, 0], sizes = [16, 128], strides = [1, 1]} : vector<128x128xf32> to vector<16x128xf32>
    %50 = arith.addf %42, %43 : vector<16x128xf32>
    %51 = arith.addf %44, %45 : vector<16x128xf32>
    %52 = arith.addf %46, %47 : vector<16x128xf32>
    %53 = arith.addf %48, %49 : vector<16x128xf32>
    %54 = arith.addf %50, %51 : vector<16x128xf32>
    %55 = arith.addf %52, %53 : vector<16x128xf32>
    %56 = arith.addf %54, %55 : vector<16x128xf32>
    %c0_20 = arith.constant 0 : index
    %c0_21 = arith.constant 0 : index
    %c0_22 = arith.constant 0 : index
    %57 = vector.load %arg10[%c0_20, %c0_21, %c0_22] : memref<1x1x128xf32, #tpu.memory_space<vmem>>, vector<1x1x128xf32>
    %58 = vector.shape_cast %57 : vector<1x1x128xf32> to vector<1x128xf32>
    %59 = vector.broadcast %58 : vector<1x128xf32> to vector<16x128xf32>
    %60 = arith.addf %56, %59 : vector<16x128xf32>
    %61 = arith.addf %3, %60 : vector<16x128xf32>
    %c0_23 = arith.constant 0 : index
    %c0_24 = arith.constant 0 : index
    %c0_25 = arith.constant 0 : index
    %62 = vector.load %arg11[%c0_23, %c0_24, %c0_25] : memref<1x1x128xf32, #tpu.memory_space<vmem>>, vector<1x1x128xf32>
    %63 = vector.shape_cast %62 : vector<1x1x128xf32> to vector<1x128xf32>
    %c0_26 = arith.constant 0 : index
    %c0_27 = arith.constant 0 : index
    %c0_28 = arith.constant 0 : index
    %64 = vector.load %arg12[%c0_26, %c0_27, %c0_28] : memref<1x1x128xf32, #tpu.memory_space<vmem>>, vector<1x1x128xf32>
    %65 = vector.shape_cast %64 : vector<1x1x128xf32> to vector<1x128xf32>
    %cst_29 = arith.constant dense<0.000000e+00> : vector<16xf32>
    %66 = vector.multi_reduction <add>, %61, %cst_29 [1] : vector<16x128xf32> to vector<16xf32>
    %67 = vector.shape_cast %66 : vector<16xf32> to vector<16x1xf32>
    %cst_30 = arith.constant 1.280000e+02 : f32
    %68 = vector.broadcast %cst_30 : f32 to vector<16x1xf32>
    %69 = arith.divf %67, %68 : vector<16x1xf32>
    %70 = vector.broadcast %69 : vector<16x1xf32> to vector<16x128xf32>
    %71 = arith.subf %61, %70 : vector<16x128xf32>
    %72 = arith.mulf %71, %71 : vector<16x128xf32>
    %cst_31 = arith.constant dense<0.000000e+00> : vector<16xf32>
    %73 = vector.multi_reduction <add>, %72, %cst_31 [1] : vector<16x128xf32> to vector<16xf32>
    %74 = vector.shape_cast %73 : vector<16xf32> to vector<16x1xf32>
    %cst_32 = arith.constant 1.280000e+02 : f32
    %75 = vector.broadcast %cst_32 : f32 to vector<16x1xf32>
    %76 = arith.divf %74, %75 : vector<16x1xf32>
    %cst_33 = arith.constant 9.99999974E-6 : f32
    %77 = vector.broadcast %cst_33 : f32 to vector<16x1xf32>
    %78 = arith.addf %76, %77 : vector<16x1xf32>
    %79 = math.rsqrt %78 : vector<16x1xf32>
    %80 = vector.broadcast %79 : vector<16x1xf32> to vector<16x128xf32>
    %81 = arith.mulf %71, %80 : vector<16x128xf32>
    %82 = vector.broadcast %63 : vector<1x128xf32> to vector<16x128xf32>
    %83 = arith.mulf %81, %82 : vector<16x128xf32>
    %84 = vector.broadcast %65 : vector<1x128xf32> to vector<16x128xf32>
    %85 = arith.addf %83, %84 : vector<16x128xf32>
    %86 = arith.truncf %85 : vector<16x128xf32> to vector<16x128xbf16>
    %cst_34 = arith.constant 0.000000e+00 : f32
    %87 = vector.broadcast %cst_34 : f32 to vector<16x128xf32>
    %c0_35 = arith.constant 0 : index
    %c0_36 = arith.constant 0 : index
    %c0_37 = arith.constant 0 : index
    %88 = vector.load %arg13[%c0_35, %c0_36, %c0_37] : memref<1x128x2048xbf16, #tpu.memory_space<vmem>>, vector<1x128x512xbf16>
    %89 = vector.shape_cast %88 : vector<1x128x512xbf16> to vector<128x512xbf16>
    %cst_38 = arith.constant dense<0.000000e+00> : vector<16x512xf32>
    %90 = tpu.matmul %86, %89, %cst_38 {dimension_numbers = #tpu.dot_dimension_numbers<[1], [0], [0], [1], [0, 0, 1, 1], [], []>} : vector<16x128xbf16>, vector<128x512xbf16>, vector<16x512xf32> -> vector<16x512xf32>
    %c0_39 = arith.constant 0 : index
    %c0_40 = arith.constant 0 : index
    %c0_41 = arith.constant 0 : index
    %91 = vector.load %arg14[%c0_39, %c0_40, %c0_41] : memref<1x1x2048xf32, #tpu.memory_space<vmem>>, vector<1x1x512xf32>
    %92 = vector.shape_cast %91 : vector<1x1x512xf32> to vector<1x512xf32>
    %93 = vector.broadcast %92 : vector<1x512xf32> to vector<16x512xf32>
    %94 = arith.addf %90, %93 : vector<16x512xf32>
    %cst_42 = arith.constant 0.000000e+00 : f32
    %95 = vector.broadcast %cst_42 : f32 to vector<16x512xf32>
    %96 = arith.maximumf %94, %95 : vector<16x512xf32>
    %97 = arith.truncf %96 : vector<16x512xf32> to vector<16x512xbf16>
    %c0_43 = arith.constant 0 : index
    %c0_44 = arith.constant 0 : index
    %c0_45 = arith.constant 0 : index
    %98 = vector.load %arg15[%c0_43, %c0_44, %c0_45] : memref<1x2048x128xbf16, #tpu.memory_space<vmem>>, vector<1x512x128xbf16>
    %99 = vector.shape_cast %98 : vector<1x512x128xbf16> to vector<512x128xbf16>
    %cst_46 = arith.constant dense<0.000000e+00> : vector<16x128xf32>
    %100 = tpu.matmul %97, %99, %cst_46 {dimension_numbers = #tpu.dot_dimension_numbers<[1], [0], [0], [1], [0, 0, 1, 1], [], []>} : vector<16x512xbf16>, vector<512x128xbf16>, vector<16x128xf32> -> vector<16x128xf32>
    %101 = arith.addf %87, %100 : vector<16x128xf32>
    %c0_47 = arith.constant 0 : index
    %c0_48 = arith.constant 0 : index
    %c512 = arith.constant 512 : index
    %102 = vector.load %arg13[%c0_47, %c0_48, %c512] : memref<1x128x2048xbf16, #tpu.memory_space<vmem>>, vector<1x128x512xbf16>
    %103 = vector.shape_cast %102 : vector<1x128x512xbf16> to vector<128x512xbf16>
    %cst_49 = arith.constant dense<0.000000e+00> : vector<16x512xf32>
    %104 = tpu.matmul %86, %103, %cst_49 {dimension_numbers = #tpu.dot_dimension_numbers<[1], [0], [0], [1], [0, 0, 1, 1], [], []>} : vector<16x128xbf16>, vector<128x512xbf16>, vector<16x512xf32> -> vector<16x512xf32>
    %c0_50 = arith.constant 0 : index
    %c0_51 = arith.constant 0 : index
    %c512_52 = arith.constant 512 : index
    %105 = vector.load %arg14[%c0_50, %c0_51, %c512_52] : memref<1x1x2048xf32, #tpu.memory_space<vmem>>, vector<1x1x512xf32>
    %106 = vector.shape_cast %105 : vector<1x1x512xf32> to vector<1x512xf32>
    %107 = vector.broadcast %106 : vector<1x512xf32> to vector<16x512xf32>
    %108 = arith.addf %104, %107 : vector<16x512xf32>
    %cst_53 = arith.constant 0.000000e+00 : f32
    %109 = vector.broadcast %cst_53 : f32 to vector<16x512xf32>
    %110 = arith.maximumf %108, %109 : vector<16x512xf32>
    %111 = arith.truncf %110 : vector<16x512xf32> to vector<16x512xbf16>
    %c0_54 = arith.constant 0 : index
    %c512_55 = arith.constant 512 : index
    %c0_56 = arith.constant 0 : index
    %112 = vector.load %arg15[%c0_54, %c512_55, %c0_56] : memref<1x2048x128xbf16, #tpu.memory_space<vmem>>, vector<1x512x128xbf16>
    %113 = vector.shape_cast %112 : vector<1x512x128xbf16> to vector<512x128xbf16>
    %cst_57 = arith.constant dense<0.000000e+00> : vector<16x128xf32>
    %114 = tpu.matmul %111, %113, %cst_57 {dimension_numbers = #tpu.dot_dimension_numbers<[1], [0], [0], [1], [0, 0, 1, 1], [], []>} : vector<16x512xbf16>, vector<512x128xbf16>, vector<16x128xf32> -> vector<16x128xf32>
    %115 = arith.addf %101, %114 : vector<16x128xf32>
    %c0_58 = arith.constant 0 : index
    %c0_59 = arith.constant 0 : index
    %c1024 = arith.constant 1024 : index
    %116 = vector.load %arg13[%c0_58, %c0_59, %c1024] : memref<1x128x2048xbf16, #tpu.memory_space<vmem>>, vector<1x128x512xbf16>
    %117 = vector.shape_cast %116 : vector<1x128x512xbf16> to vector<128x512xbf16>
    %cst_60 = arith.constant dense<0.000000e+00> : vector<16x512xf32>
    %118 = tpu.matmul %86, %117, %cst_60 {dimension_numbers = #tpu.dot_dimension_numbers<[1], [0], [0], [1], [0, 0, 1, 1], [], []>} : vector<16x128xbf16>, vector<128x512xbf16>, vector<16x512xf32> -> vector<16x512xf32>
    %c0_61 = arith.constant 0 : index
    %c0_62 = arith.constant 0 : index
    %c1024_63 = arith.constant 1024 : index
    %119 = vector.load %arg14[%c0_61, %c0_62, %c1024_63] : memref<1x1x2048xf32, #tpu.memory_space<vmem>>, vector<1x1x512xf32>
    %120 = vector.shape_cast %119 : vector<1x1x512xf32> to vector<1x512xf32>
    %121 = vector.broadcast %120 : vector<1x512xf32> to vector<16x512xf32>
    %122 = arith.addf %118, %121 : vector<16x512xf32>
    %cst_64 = arith.constant 0.000000e+00 : f32
    %123 = vector.broadcast %cst_64 : f32 to vector<16x512xf32>
    %124 = arith.maximumf %122, %123 : vector<16x512xf32>
    %125 = arith.truncf %124 : vector<16x512xf32> to vector<16x512xbf16>
    %c0_65 = arith.constant 0 : index
    %c1024_66 = arith.constant 1024 : index
    %c0_67 = arith.constant 0 : index
    %126 = vector.load %arg15[%c0_65, %c1024_66, %c0_67] : memref<1x2048x128xbf16, #tpu.memory_space<vmem>>, vector<1x512x128xbf16>
    %127 = vector.shape_cast %126 : vector<1x512x128xbf16> to vector<512x128xbf16>
    %cst_68 = arith.constant dense<0.000000e+00> : vector<16x128xf32>
    %128 = tpu.matmul %125, %127, %cst_68 {dimension_numbers = #tpu.dot_dimension_numbers<[1], [0], [0], [1], [0, 0, 1, 1], [], []>} : vector<16x512xbf16>, vector<512x128xbf16>, vector<16x128xf32> -> vector<16x128xf32>
    %129 = arith.addf %115, %128 : vector<16x128xf32>
    %c0_69 = arith.constant 0 : index
    %c0_70 = arith.constant 0 : index
    %c1536 = arith.constant 1536 : index
    %130 = vector.load %arg13[%c0_69, %c0_70, %c1536] : memref<1x128x2048xbf16, #tpu.memory_space<vmem>>, vector<1x128x512xbf16>
    %131 = vector.shape_cast %130 : vector<1x128x512xbf16> to vector<128x512xbf16>
    %cst_71 = arith.constant dense<0.000000e+00> : vector<16x512xf32>
    %132 = tpu.matmul %86, %131, %cst_71 {dimension_numbers = #tpu.dot_dimension_numbers<[1], [0], [0], [1], [0, 0, 1, 1], [], []>} : vector<16x128xbf16>, vector<128x512xbf16>, vector<16x512xf32> -> vector<16x512xf32>
    %c0_72 = arith.constant 0 : index
    %c0_73 = arith.constant 0 : index
    %c1536_74 = arith.constant 1536 : index
    %133 = vector.load %arg14[%c0_72, %c0_73, %c1536_74] : memref<1x1x2048xf32, #tpu.memory_space<vmem>>, vector<1x1x512xf32>
    %134 = vector.shape_cast %133 : vector<1x1x512xf32> to vector<1x512xf32>
    %135 = vector.broadcast %134 : vector<1x512xf32> to vector<16x512xf32>
    %136 = arith.addf %132, %135 : vector<16x512xf32>
    %cst_75 = arith.constant 0.000000e+00 : f32
    %137 = vector.broadcast %cst_75 : f32 to vector<16x512xf32>
    %138 = arith.maximumf %136, %137 : vector<16x512xf32>
    %139 = arith.truncf %138 : vector<16x512xf32> to vector<16x512xbf16>
    %c0_76 = arith.constant 0 : index
    %c1536_77 = arith.constant 1536 : index
    %c0_78 = arith.constant 0 : index
    %140 = vector.load %arg15[%c0_76, %c1536_77, %c0_78] : memref<1x2048x128xbf16, #tpu.memory_space<vmem>>, vector<1x512x128xbf16>
    %141 = vector.shape_cast %140 : vector<1x512x128xbf16> to vector<512x128xbf16>
    %cst_79 = arith.constant dense<0.000000e+00> : vector<16x128xf32>
    %142 = tpu.matmul %139, %141, %cst_79 {dimension_numbers = #tpu.dot_dimension_numbers<[1], [0], [0], [1], [0, 0, 1, 1], [], []>} : vector<16x512xbf16>, vector<512x128xbf16>, vector<16x128xf32> -> vector<16x128xf32>
    %143 = arith.addf %129, %142 : vector<16x128xf32>
    %c0_80 = arith.constant 0 : index
    %c0_81 = arith.constant 0 : index
    %c0_82 = arith.constant 0 : index
    %144 = vector.load %arg16[%c0_80, %c0_81, %c0_82] : memref<1x1x128xf32, #tpu.memory_space<vmem>>, vector<1x1x128xf32>
    %145 = vector.shape_cast %144 : vector<1x1x128xf32> to vector<1x128xf32>
    %146 = vector.broadcast %145 : vector<1x128xf32> to vector<16x128xf32>
    %147 = arith.addf %143, %146 : vector<16x128xf32>
    %148 = arith.addf %85, %147 : vector<16x128xf32>
    %c0_83 = arith.constant 0 : index
    %c0_84 = arith.constant 0 : index
    %c0_85 = arith.constant 0 : index
    %149 = vector.load %arg17[%c0_83, %c0_84, %c0_85] : memref<1x1x128xf32, #tpu.memory_space<vmem>>, vector<1x1x128xf32>
    %150 = vector.shape_cast %149 : vector<1x1x128xf32> to vector<1x128xf32>
    %c0_86 = arith.constant 0 : index
    %c0_87 = arith.constant 0 : index
    %c0_88 = arith.constant 0 : index
    %151 = vector.load %arg18[%c0_86, %c0_87, %c0_88] : memref<1x1x128xf32, #tpu.memory_space<vmem>>, vector<1x1x128xf32>
    %152 = vector.shape_cast %151 : vector<1x1x128xf32> to vector<1x128xf32>
    %cst_89 = arith.constant dense<0.000000e+00> : vector<16xf32>
    %153 = vector.multi_reduction <add>, %148, %cst_89 [1] : vector<16x128xf32> to vector<16xf32>
    %154 = vector.shape_cast %153 : vector<16xf32> to vector<16x1xf32>
    %cst_90 = arith.constant 1.280000e+02 : f32
    %155 = vector.broadcast %cst_90 : f32 to vector<16x1xf32>
    %156 = arith.divf %154, %155 : vector<16x1xf32>
    %157 = vector.broadcast %156 : vector<16x1xf32> to vector<16x128xf32>
    %158 = arith.subf %148, %157 : vector<16x128xf32>
    %159 = arith.mulf %158, %158 : vector<16x128xf32>
    %cst_91 = arith.constant dense<0.000000e+00> : vector<16xf32>
    %160 = vector.multi_reduction <add>, %159, %cst_91 [1] : vector<16x128xf32> to vector<16xf32>
    %161 = vector.shape_cast %160 : vector<16xf32> to vector<16x1xf32>
    %cst_92 = arith.constant 1.280000e+02 : f32
    %162 = vector.broadcast %cst_92 : f32 to vector<16x1xf32>
    %163 = arith.divf %161, %162 : vector<16x1xf32>
    %cst_93 = arith.constant 9.99999974E-6 : f32
    %164 = vector.broadcast %cst_93 : f32 to vector<16x1xf32>
    %165 = arith.addf %163, %164 : vector<16x1xf32>
    %166 = math.rsqrt %165 : vector<16x1xf32>
    %167 = vector.broadcast %166 : vector<16x1xf32> to vector<16x128xf32>
    %168 = arith.mulf %158, %167 : vector<16x128xf32>
    %169 = vector.broadcast %150 : vector<1x128xf32> to vector<16x128xf32>
    %170 = arith.mulf %168, %169 : vector<16x128xf32>
    %171 = vector.broadcast %152 : vector<1x128xf32> to vector<16x128xf32>
    %172 = arith.addf %170, %171 : vector<16x128xf32>
    %c0_94 = arith.constant 0 : index
    %c0_95 = arith.constant 0 : index
    %173 = vector.load %arg23[%c0_94, %c0_95] : memref<16x128xf32, #tpu.memory_space<vmem>>, vector<16x128xf32>
    tpu.vector_store %arg23[%c0_94, %c0_95], %172 {strides = array<i32>} : memref<16x128xf32, #tpu.memory_space<vmem>>, vector<16x128xf32>,
    %c2_i32 = arith.constant 2 : i32
    %174 = arith.cmpi eq, %arg0, %c2_i32 : i32
    %175 = arith.extui %174 : i1 to i32
    %c0_i32_96 = arith.constant 0 : i32
    %176 = arith.cmpi ne, %175, %c0_i32_96 : i32
    scf.if %176 {
      %c0_97 = arith.constant 0 : index
      %c0_98 = arith.constant 0 : index
      %177 = vector.load %arg21[%c0_97, %c0_98] : memref<16x128xf32, #tpu.memory_space<vmem>>, vector<16x128xf32>
      tpu.vector_store %arg21[%c0_97, %c0_98], %172 {strides = array<i32>} : memref<16x128xf32, #tpu.memory_space<vmem>>, vector<16x128xf32>,
      %178 = arith.truncf %172 : vector<16x128xf32> to vector<16x128xbf16>
      %c0_99 = arith.constant 0 : index
      %c0_100 = arith.constant 0 : index
      %179 = vector.load %arg19[%c0_99, %c0_100] : memref<128x64xbf16, #tpu.memory_space<vmem>>, vector<128x64xbf16>
      %cst_101 = arith.constant dense<0.000000e+00> : vector<16x64xf32>
      %180 = tpu.matmul %178, %179, %cst_101 {dimension_numbers = #tpu.dot_dimension_numbers<[1], [0], [0], [1], [0, 0, 1, 1], [], []>} : vector<16x128xbf16>, vector<128x64xbf16>, vector<16x64xf32> -> vector<16x64xf32>
      %c0_102 = arith.constant 0 : index
      %c0_103 = arith.constant 0 : index
      %181 = vector.load %arg20[%c0_102, %c0_103] : memref<1x64xf32, #tpu.memory_space<vmem>>, vector<1x64xf32>
      %182 = vector.broadcast %181 : vector<1x64xf32> to vector<16x64xf32>
      %183 = arith.addf %180, %182 : vector<16x64xf32>
      %cst_104 = arith.constant 0.000000e+00 : f32
      %184 = vector.broadcast %cst_104 : f32 to vector<16x64xf32>
      %185 = arith.subf %184, %183 : vector<16x64xf32>
      %186 = math.exp %185 : vector<16x64xf32>
      %cst_105 = arith.constant 1.000000e+00 : f32
      %187 = vector.broadcast %cst_105 : f32 to vector<16x64xf32>
      %188 = arith.addf %187, %186 : vector<16x64xf32>
      %cst_106 = arith.constant 1.000000e+00 : f32
      %189 = vector.broadcast %cst_106 : f32 to vector<16x64xf32>
      %190 = arith.divf %189, %188 : vector<16x64xf32>
      %c0_107 = arith.constant 0 : index
      %c0_108 = arith.constant 0 : index
      %191 = vector.load %arg1[%c0_107, %c0_108] : memref<16x64xf32, #tpu.memory_space<vmem>>, vector<16x64xf32>
      %192 = arith.subf %190, %191 : vector<16x64xf32>
      %193 = math.absf %192 : vector<16x64xf32>
      %194 = vector.shape_cast %193 : vector<16x64xf32> to vector<1x16x64xf32>
      %cst_109 = arith.constant dense<0.000000e+00> : vector<1xf32>
      %195 = vector.multi_reduction <add>, %194, %cst_109 [1, 2] : vector<1x16x64xf32> to vector<1xf32>
      %196 = vector.shape_cast %195 : vector<1xf32> to vector<1x1x1xf32>
      %197 = vector.extract %196[0, 0, 0] : f32 from vector<1x1x1xf32>
      %198 = vector.broadcast %197 : f32 to vector<1x128xf32>
      %c0_110 = arith.constant 0 : index
      %c0_111 = arith.constant 0 : index
      %199 = vector.load %arg22[%c0_110, %c0_111] : memref<1x128xf32, #tpu.memory_space<vmem>>, vector<1x128xf32>
      tpu.vector_store %arg22[%c0_110, %c0_111], %198 {strides = array<i32>} : memref<1x128xf32, #tpu.memory_space<vmem>>, vector<1x128xf32>,
    } else {
    }
    return
  }
  func.func @transform_0(%arg0: i32) -> (i32, i32) {
    %c0_i32 = arith.constant 0 : i32
    %c0_i32_0 = arith.constant 0 : i32
    %c0_i32_1 = arith.constant 0 : i32
    return %c0_i32, %c0_i32_0 : i32, i32
  }
  func.func @transform_1(%arg0: i32) -> (i32, i32) {
    %c0_i32 = arith.constant 0 : i32
    %c0_i32_0 = arith.constant 0 : i32
    %c0_i32_1 = arith.constant 0 : i32
    return %c0_i32, %c0_i32_0 : i32, i32
  }
  func.func @transform_2(%arg0: i32) -> (i32, i32) {
    %c0_i32 = arith.constant 0 : i32
    %c0_i32_0 = arith.constant 0 : i32
    %c0_i32_1 = arith.constant 0 : i32
    return %c0_i32, %c0_i32_0 : i32, i32
  }
  func.func @transform_3(%arg0: i32) -> (i32, i32) {
    %c0_i32 = arith.constant 0 : i32
    %c0_i32_0 = arith.constant 0 : i32
    %c0_i32_1 = arith.constant 0 : i32
    return %c0_i32, %c0_i32_0 : i32, i32
  }
  func.func @transform_4(%arg0: i32) -> (i32, i32) {
    %c0_i32 = arith.constant 0 : i32
    %c0_i32_0 = arith.constant 0 : i32
    %c0_i32_1 = arith.constant 0 : i32
    return %c0_i32, %c0_i32_0 : i32, i32
  }
  func.func @transform_5(%arg0: i32) -> (i32, i32) {
    %c0_i32 = arith.constant 0 : i32
    %c0_i32_0 = arith.constant 0 : i32
    %c0_i32_1 = arith.constant 0 : i32
    return %c0_i32, %c0_i32_0 : i32, i32
  }
  func.func @transform_6(%arg0: i32) -> (i32, i32, i32) {
    %c0_i32 = arith.constant 0 : i32
    %c0_i32_0 = arith.constant 0 : i32
    %c0_i32_1 = arith.constant 0 : i32
    return %arg0, %c0_i32, %c0_i32_0 : i32, i32, i32
  }
  func.func @transform_7(%arg0: i32) -> (i32, i32, i32) {
    %c0_i32 = arith.constant 0 : i32
    %c0_i32_0 = arith.constant 0 : i32
    %c0_i32_1 = arith.constant 0 : i32
    return %arg0, %c0_i32, %c0_i32_0 : i32, i32, i32
  }
  func.func @transform_8(%arg0: i32) -> (i32, i32, i32) {
    %c0_i32 = arith.constant 0 : i32
    %c0_i32_0 = arith.constant 0 : i32
    %c0_i32_1 = arith.constant 0 : i32
    return %arg0, %c0_i32, %c0_i32_0 : i32, i32, i32
  }
  func.func @transform_9(%arg0: i32) -> (i32, i32, i32) {
    %c0_i32 = arith.constant 0 : i32
    %c0_i32_0 = arith.constant 0 : i32
    %c0_i32_1 = arith.constant 0 : i32
    return %arg0, %c0_i32, %c0_i32_0 : i32, i32, i32
  }
  func.func @transform_10(%arg0: i32) -> (i32, i32, i32) {
    %c0_i32 = arith.constant 0 : i32
    %c0_i32_0 = arith.constant 0 : i32
    %c0_i32_1 = arith.constant 0 : i32
    return %arg0, %c0_i32, %c0_i32_0 : i32, i32, i32
  }
  func.func @transform_11(%arg0: i32) -> (i32, i32, i32) {
    %c0_i32 = arith.constant 0 : i32
    %c0_i32_0 = arith.constant 0 : i32
    %c0_i32_1 = arith.constant 0 : i32
    return %arg0, %c0_i32, %c0_i32_0 : i32, i32, i32
  }
  func.func @transform_12(%arg0: i32) -> (i32, i32, i32) {
    %c0_i32 = arith.constant 0 : i32
    %c0_i32_0 = arith.constant 0 : i32
    %c0_i32_1 = arith.constant 0 : i32
    return %arg0, %c0_i32, %c0_i32_0 : i32, i32, i32
  }
  func.func @transform_13(%arg0: i32) -> (i32, i32, i32) {
    %c0_i32 = arith.constant 0 : i32
    %c0_i32_0 = arith.constant 0 : i32
    %c0_i32_1 = arith.constant 0 : i32
    return %arg0, %c0_i32, %c0_i32_0 : i32, i32, i32
  }
  func.func @transform_14(%arg0: i32) -> (i32, i32, i32) {
    %c0_i32 = arith.constant 0 : i32
    %c0_i32_0 = arith.constant 0 : i32
    %c0_i32_1 = arith.constant 0 : i32
    return %arg0, %c0_i32, %c0_i32_0 : i32, i32, i32
  }
  func.func @transform_15(%arg0: i32) -> (i32, i32, i32) {
    %c0_i32 = arith.constant 0 : i32
    %c0_i32_0 = arith.constant 0 : i32
    %c0_i32_1 = arith.constant 0 : i32
    return %arg0, %c0_i32, %c0_i32_0 : i32, i32, i32
  }
  func.func @transform_16(%arg0: i32) -> (i32, i32, i32) {
    %c0_i32 = arith.constant 0 : i32
    %c0_i32_0 = arith.constant 0 : i32
    %c0_i32_1 = arith.constant 0 : i32
    return %arg0, %c0_i32, %c0_i32_0 : i32, i32, i32
  }
  func.func @transform_17(%arg0: i32) -> (i32, i32, i32) {
    %c0_i32 = arith.constant 0 : i32
    %c0_i32_0 = arith.constant 0 : i32
    %c0_i32_1 = arith.constant 0 : i32
    return %arg0, %c0_i32, %c0_i32_0 : i32, i32, i32
  }
  func.func @transform_18(%arg0: i32) -> (i32, i32) {
    %c0_i32 = arith.constant 0 : i32
    %c0_i32_0 = arith.constant 0 : i32
    %c0_i32_1 = arith.constant 0 : i32
    return %c0_i32, %c0_i32_0 : i32, i32
  }
  func.func @transform_19(%arg0: i32) -> (i32, i32) {
    %c0_i32 = arith.constant 0 : i32
    %c0_i32_0 = arith.constant 0 : i32
    %c0_i32_1 = arith.constant 0 : i32
    return %c0_i32, %c0_i32_0 : i32, i32
  }
  func.func @transform_20(%arg0: i32) -> (i32, i32) {
    %c0_i32 = arith.constant 0 : i32
    %c0_i32_0 = arith.constant 0 : i32
    %c0_i32_1 = arith.constant 0 : i32
    return %c0_i32, %c0_i32_0 : i32, i32
  }
  func.func @transform_21(%arg0: i32) -> (i32, i32) {
    %c0_i32 = arith.constant 0 : i32
    %c0_i32_0 = arith.constant 0 : i32
    %c0_i32_1 = arith.constant 0 : i32
    return %c0_i32, %c0_i32_0 : i32, i32
  }
}

</mosaic_0001>

<bundles_post_ra>
// kernel: tpu_custom_call.1
= control target key start
LH: loop header
LB: loop body
LE: loop exit
PB: predicated region body
PF: predicated region fallthrough
CT: control target
= control target key end

     0   :  { %s8663_s0 = inlined_call_operand.hbm [shape: f32[16,64], index: 0, kind: input, shape index: {}]   ;;  %s8664_s1 = inlined_call_operand.hbm [shape: f32[16,128], index: 1, kind: input, shape index: {}]   ;;  %s8665_s2 = inlined_call_operand.hbm [shape: f32[128,128], index: 2, kind: input, shape index: {}]   ;;  %s8666_s3 = inlined_call_operand.hbm [shape: f32[128,128], index: 3, kind: input, shape index: {}]   ;;  %s8667_s4 = inlined_call_operand.hbm [shape: bf16[64,128], index: 4, kind: input, shape index: {}]   ;;  %s8668_s5 = inlined_call_operand.hbm [shape: f32[1,128], index: 5, kind: input, shape index: {}]   ;;  %s8669_s6 = inlined_call_operand.hbm [shape: bf16[3,128,384], index: 6, kind: input, shape index: {}]   ;;  %s8670_s7 = inlined_call_operand.hbm [shape: f32[3,1,384], index: 7, kind: input, shape index: {}]   ;;  %s8671_s8 = inlined_call_operand.hbm [shape: bf16[3,128,128], index: 8, kind: input, shape index: {}]   ;;  %s8672_s9 = inlined_call_operand.hbm [shape: f32[3,1,128], index: 9, kind: input, shape index: {}]   ;;  %s8673_s10 = inlined_call_operand.hbm [shape: f32[3,1,128], index: 10, kind: input, shape index: {}]   ;;  %s8674_s11 = inlined_call_operand.hbm [shape: f32[3,1,128], index: 11, kind: input, shape index: {}]   ;;  %s8675_s12 = inlined_call_operand.hbm [shape: bf16[3,128,2048], index: 12, kind: input, shape index: {}]   ;;  %s8676_s13 = inlined_call_operand.hbm [shape: f32[3,1,2048], index: 13, kind: input, shape index: {}]   ;;  %s8677_s14 = inlined_call_operand.hbm [shape: bf16[3,2048,128], index: 14, kind: input, shape index: {}]   ;;  %s8678_s15 = inlined_call_operand.hbm [shape: f32[3,1,128], index: 15, kind: input, shape index: {}]   ;;  %s8679_s16 = inlined_call_operand.hbm [shape: f32[3,1,128], index: 16, kind: input, shape index: {}]   ;;  %s8680_s17 = inlined_call_operand.hbm [shape: f32[3,1,128], index: 17, kind: input, shape index: {}]   ;;  %s8681_s18 = inlined_call_operand.vmem [shape: bf16[128,64], index: 18, kind: input, shape index: {}]   ;;  %s8682_s19 = inlined_call_operand.hbm [shape: f32[1,64], index: 19, kind: input, shape index: {}]   ;;  %s8683_s20 = inlined_call_operand.hbm [shape: f32[16,128], index: 20, kind: output, shape index: {0}]   ;;  %s8684_s21 = inlined_call_operand.hbm [shape: f32[1,128], index: 21, kind: output, shape index: {1}]  }
   0x1   :  { %8701 = sst [smem:[#allocation44_spill]] %s8663_s0 }
   0x2   :  { %8702 = sst [smem:[#allocation45_spill]] %s8664_s1 }
   0x3   :  { %8703 = sst [smem:[#allocation46_spill]] %s8665_s2 }
   0x4   :  { %8704 = sst [smem:[#allocation47_spill]] %s8666_s3 }
   0x5   :  { %8705 = sst [smem:[#allocation48_spill]] %s8667_s4 }
   0x6   :  { %8706 = sst [smem:[#allocation49_spill]] %s8668_s5 }
   0x7   :  { %8707 = sst [smem:[#allocation50_spill]] %s8669_s6 }
   0x8   :  { %8708 = sst [smem:[#allocation51_spill]] %s8677_s14 }
   0x9   :  { %8709 = sst [smem:[#allocation52_spill]] %s8678_s15 }
   0xa   :  { %8710 = sst [smem:[#allocation53_spill]] %s8679_s16 }
   0xb   :  { %8711 = sst [smem:[#allocation54_spill]] %s8680_s17 }
   0xc   :  { %8712 = sst [smem:[#allocation55_spill]] %s8681_s18 }
   0xd   :  { %8713 = sst [smem:[#allocation56_spill]] %s8683_s20 }
   0xe   :  { %8714 = sst [smem:[#allocation57_spill]] %s8684_s21 }
   0xf   :  { %27 = vsyncpa [#allocation4], 0 }
  0x10   :  { %28 = vsyncpa [#allocation7], 0 }
  0x11   :  { %29 = vsyncpa [#allocation10], 0 }
  0x12   :  { %30 = vsyncpa [#allocation13], 0 }
  0x13   :  { %31 = vsyncpa [#allocation5], 0 }
  0x14   :  { %32 = vsyncpa [#allocation29], 0  ;;  %s7459_s2 = smov 0   ;;  %s7461_s25 = smov 0  }
  0x15   :  { %s7463_s26 = smov 0   ;;  %s7465_s27 = smov 0  }
  0x16 LB: > { %8715 = sst [smem:[#allocation38_spill]] %s7318_s25  ;;  %s7478_s3 = sadd.s32 4294967295, %s7326_s27   ;;  %s7326_s27 = sphi %s7465_s27, %s8748_s27   ;;  %s7322_s26 = sphi %s7463_s26, %s8752_s26   ;;  %s7318_s25 = sphi %s7461_s25, %s8751_s25   ;;  %s7314_s2 = sphi %s7459_s2, %s8749_s2  }
  0x17   : > { %8716 = sst [smem:[#allocation39_spill]] %s7478_s3  ;;  %s7481_s28 = sadd.s32 1, %s7326_s27  }
  0x18   : > { %8717 = sst [smem:[#allocation40_spill]] %s7481_s28  ;;  %s168_s29 = ssub.s32 %s7326_s27, %s7481_s28 }
  0x19   : > { %s171_s0 = sadd.s32 1, %s7322_s26  ;;  %p169_p0 = scmp.eq.s32.totalorder %s168_s29, 0 }
  0x1a   : > { %p178_p1 = scmp.ne.s32.totalorder %s7322_s26, %s7318_s25  ;;  %p179_p2 = scmp.eq.s32.totalorder %s7326_s27, 0 }
  0x1b   : > { %p184_p3 = scmp.ne.s32.totalorder %s7318_s25, %s7314_s2  ;;  %p185_p5 = scmp.eq.s32.totalorder %s7478_s3, 0 }
  0x1c   : > { %s7491_s4 = scalar_select %p169_p0, %s7322_s26, %s171_s0  }
  0x1d   : > { %p7493_p4 = por %p179_p2, %p178_p1  ;;  %p4866_p6 = scmp.ge.s32.totalorder %s7326_s27, 1 }
  0x1e   : > { %8718 = sst [smem:[#allocation41_spill]] %s7491_s4  ;;  %p565_p7 = scmp.lt.s32.totalorder %s7326_s27, 4 }
  0x1f   : > { %p7502_p8 = por %p185_p5, %p184_p3  ;;  %p4867_p9 = scmp.ne.s32.totalorder %s7478_s3, 0 }
  0x20   : > { %p7507_p10 = pnand %p4866_p6, %p565_p7  ;;  %s8724_s24 = sld [smem:[#allocation45_spill]] }
  0x21   : > { %s8720_s5 = scalar_select %p7502_p8, 1, 0 }
  0x22   : > { %s8722_s22 = scalar_select %p7507_p10, 1, 0 }
  0x23   : > { %8721 = sst [smem:[#allocation42_spill]] %s8720_s5  ;;  %p6479_p11 = pneg %p7507_p10 }
  0x24   : > { %8723 = sst [smem:[#allocation43_spill]] %s8722_s22  ;;  %s7328_s20 = smov [#allocation6]  }
  0x25   : > { %s8725_s4 = sld [smem:[#allocation46_spill]]  ;;  %p7521_p12 = pnand %p6479_p11, %p185_p5 }
  0x26   : > { %s590_s2 = sshll.u32 %s8724_s24, 4  ;;  %s592_s18 = sshll.u32 %s7328_s20, 4  ;;  %s591_s2 = int_to_ptr.hbm [resolvable:$true] %s590_s2  ;;  %s593_s18 = int_to_ptr.vmem [resolvable:$true] %s592_s18 }
  0x27   : > { %s7329_s23 = smov 128   ;;  %s7330_s1 = smov 8  }
  0x28   : > { %6485 = dma.hbm_to_vmem [thread:$0]  (!%p7521_p12), %s591_s2, 256, %s593_s18, [#allocation7], %s7329_s23, %s7329_s23, %s7330_s1  }
  0x29   : > { %s7331_s24 = smov [#allocation8]   ;;  %s8727_s0 = sld [smem:[#allocation47_spill]] }
  0x2a   : > { %s606_s5 = sshll.u32 %s7331_s24, 4  ;;  %s8728_s22 = sld [smem:[#allocation44_spill]]  ;;  %s607_s5 = int_to_ptr.vmem [resolvable:$true] %s606_s5 }
  0x2b   : > { %s604_s28 = sshll.u32 %s8725_s4, 4  ;;  %s7332_s16 = smov [#allocation9]   ;;  %s605_s28 = int_to_ptr.hbm [resolvable:$true] %s604_s28 }
  0x2c   : > { %6488 = dma.hbm_to_vmem [thread:$0]  (!%p7521_p12), %s605_s28, 2048, %s607_s5, [#allocation7], %s7329_s23, %s7329_s23, %s7330_s1  }
  0x2d   : > { %s620_s15 = sshll.u32 %s7332_s16, 4  ;;  %s7333_s18 = smov [#allocation3]   ;;  %s621_s15 = int_to_ptr.vmem [resolvable:$true] %s620_s15 }
  0x2e   : > { %s578_s2 = sshll.u32 %s7333_s18, 4  ;;  %s8729_s4 = sld [smem:[#allocation48_spill]]  ;;  %s579_s2 = int_to_ptr.vmem [resolvable:$true] %s578_s2 }
  0x2f   : > { %s618_s25 = sshll.u32 %s8727_s0, 4  ;;  %s7334_s3 = smov [#allocation11]   ;;  %s619_s25 = int_to_ptr.hbm [resolvable:$true] %s618_s25 }
  0x30   : > { %s576_s17 = sshll.u32 %s8728_s22, 4  ;;  %s634_s28 = sshll.u32 %s7334_s3, 4  ;;  %s577_s17 = int_to_ptr.hbm [resolvable:$true] %s576_s17  ;;  %s635_s28 = int_to_ptr.vmem [resolvable:$true] %s634_s28 }
  0x31   : > { %6491 = dma.hbm_to_vmem [thread:$0]  (!%p7521_p12), %s619_s25, 2048, %s621_s15, [#allocation10], %s7329_s23, %s7329_s23, %s7330_s1  }
  0x32   : > { %6482 = dma.hbm_to_vmem [thread:$0]  (!%p7521_p12), %s577_s17, 256, %s579_s2, [#allocation4], %s7329_s23, %s7329_s23, %s7330_s1  }
  0x33   : > { %s8730_s22 = sld [smem:[#allocation49_spill]]  ;;  %s7335_s15 = smov 64  }
  0x34   : > { %s632_s0 = sshll.u32 %s8729_s4, 4  ;;  %s7336_s25 = smov 4   ;;  %s633_s0 = int_to_ptr.hbm [resolvable:$true] %s632_s0 }
  0x35   : > { %6494 = dma.hbm_to_vmem [thread:$0]  (!%p7521_p12), %s633_s0, 512, %s635_s28, [#allocation10], %s7335_s15, %s7335_s15, %s7336_s25  }
  0x36   : > { %s7337_s18 = smov [#allocation12]   ;;  %s662_s14 = sshll.u32 %s8682_s19, 4  ;;  %s663_s14 = int_to_ptr.hbm [resolvable:$true] %s662_s14 }
  0x37   : > { %s649_s24 = sshll.u32 %s7337_s18, 4  ;;  %s7338_s17 = smov [#allocation26]   ;;  %s650_s24 = int_to_ptr.vmem [resolvable:$true] %s649_s24 }
  0x38   : > { %s664_s23 = sshll.u32 %s7338_s17, 4  ;;  %p4874_p13 = scmp.ge.s32.totalorder %s7326_s27, 3  ;;  %s665_s23 = int_to_ptr.vmem [resolvable:$true] %s664_s23 }
  0x39   : > { %s647_s20 = sshll.u32 %s8730_s22, 4  ;;  %s675_s1 = sand.u32 (!%p4874_p13), 1, %s7326_s27   ;;  %s648_s20 = int_to_ptr.hbm [resolvable:$true] %s647_s20 }
  0x3a   : > { %6497 = dma.hbm_to_vmem [thread:$0]  (!%p7521_p12), %s648_s20, 16, %s650_s24, [#allocation13]  }
  0x3b   : > { %6500 = dma.hbm_to_vmem [thread:$0]  (!%p7521_p12), %s663_s14, 16, %s665_s23, [#allocation7]  }
  0x3c   : > { %671 = sbr.rel (%p4874_p13) target bundleno = 267 (0x10b), region = 48  ;;  %s7557_s2 = sand.u32 (!%p4874_p13), 1, %s7322_s26  }
  0x3d   : > { %s6411_s0 = smul.u32 (!%p4874_p13), 192, %s7557_s2  ;;  %s8731_s6 = sld [smem:[#allocation50_spill]] (!%p4874_p13) }
  0x3e   : > { %s6412_s3 = smul.u32 (!%p4874_p13), 192, %s7326_s27  ;;  %s7565_s15 = scalar_lea.sflag (!%p4874_p13), [#allocation4], %s675_s1 }
  0x3f   : > { %s679_s21 = scalar_lea.vmem (!%p4874_p13), [#allocation14], %s6411_s0  ;;  %s6413_s20 = smul.u32 (!%p4874_p13), 3, %s7557_s2 }
  0x40   : > { %s687_s14 = sshll.u32 (!%p4874_p13), %s679_s21, 4  ;;  %s688_s14 = int_to_ptr.vmem [resolvable:$true] %s687_s14 }
  0x43   : > { %s684_s5 = scalar_lea.hbm %s8731_s6, %s6412_s3  ;;  %s6878_s4 = scalar_lea.hbm %s8731_s6, 576 }
  0x44   : > { %s685_s22 = sshll.u32 %s684_s5, 4  ;;  %s686_s22 = int_to_ptr.hbm [resolvable:$true] %s685_s22 }
  0x45   : > { %s6872_s25 = sshra.s32 %s686_s22, 4  ;;  %s6873_s25 = int_to_ptr.hbm [resolvable:$true] %s6872_s25 }
  0x46   : > { %s6874_s18 = scalar_lea.hbm %s6873_s25, 192  ;;  %p6879_p3 = scmp.lt.s32.totalorder %s6873_s25, %s8731_s6 }
  0x47   : > { %p6875_p0 = scmp.ne.s32.totalorder %s6873_s25, %s6874_s18  ;;  %p6880_p6 = scmp.lt.s32.totalorder %s6878_s4, %s6874_s18 }
  0x49   : > { %p6876_p1 = pnand %p6875_p0, %p7493_p4  ;;  %p6881_p7 = por %p6880_p6, %p6879_p3 }
  0x4b   : > { %p6877_p2 = pneg %p6876_p1 }
  0x4d   : > { %p6882_p11 = pnand %p6881_p7, %p6877_p2 }
  0x4f   : > { %6885 = shalt.err (!%p6882_p11)
}
  0x50   : > { %s7339_s1 = smov 192   ;;  %s7340_s0 = smov 12  }
  0x51   : > { %6433 = dma.hbm_to_vmem [thread:$0]  (%p7493_p4), %s686_s22, 3072, %s688_s14, %s7565_s15, %s7339_s1, %s7339_s1, %s7340_s0  }
  0x52   : > { %s6414_s3 = smul.u32 3, %s7326_s27  ;;  %s701_s28 = scalar_lea.vmem [#allocation15], %s6413_s20 }
  0x53   : > { %s709_s16 = sshll.u32 %s701_s28, 4  ;;  %s4876_s5 = sshll.u32 %s7557_s2, 6  ;;  %s710_s16 = int_to_ptr.vmem [resolvable:$true] %s709_s16 }
  0x54   : > { %s705_s18 = scalar_lea.hbm %s8670_s7, %s6414_s3  ;;  %s6108_s29 = sshll.u32 %s7326_s27, 6 }
  0x55   : > { %s707_s24 = sshll.u32 %s705_s18, 4  ;;  %s6906_s20 = scalar_lea.hbm %s8670_s7, 9  ;;  %s708_s24 = int_to_ptr.hbm [resolvable:$true] %s707_s24 }
  0x56   : > { %s6900_s4 = sshra.s32 %s708_s24, 4  ;;  %s6901_s4 = int_to_ptr.hbm [resolvable:$true] %s6900_s4 }
  0x57   : > { %s6902_s17 = scalar_lea.hbm %s6901_s4, 3  ;;  %p6907_p1 = scmp.lt.s32.totalorder %s6901_s4, %s8670_s7 }
  0x58   : > { %p6903_p12 = scmp.ne.s32.totalorder %s6901_s4, %s6902_s17  ;;  %p6908_p2 = scmp.lt.s32.totalorder %s6906_s20, %s6902_s17 }
  0x5a   : > { %p6904_p13 = pnand %p6903_p12, %p7493_p4  ;;  %p6909_p3 = por %p6908_p2, %p6907_p1 }
  0x5c   : > { %p6905_p0 = pneg %p6904_p13 }
  0x5e   : > { %p6910_p6 = pnand %p6909_p3, %p6905_p0 }
  0x60   : > { %6913 = shalt.err (!%p6910_p6)
}
  0x61   : > { %6434 = dma.hbm_to_vmem [thread:$0]  (%p7493_p4), %s708_s24, 48, %s710_s16, %s7565_s15  }
  0x62   : > { %s725_s28 = scalar_lea.hbm %s8671_s8, %s6108_s29  ;;  %s720_s21 = scalar_lea.vmem [#allocation16], %s4876_s5 }
  0x63   : > { %s728_s25 = sshll.u32 %s720_s21, 4  ;;  %s726_s18 = sshll.u32 %s725_s28, 4  ;;  %s729_s25 = int_to_ptr.vmem [resolvable:$true] %s728_s25  ;;  %s727_s18 = int_to_ptr.hbm [resolvable:$true] %s726_s18 }
  0x64   : > { %s6928_s14 = sshra.s32 %s727_s18, 4  ;;  %s6934_s16 = scalar_lea.hbm %s8671_s8, 192  ;;  %s6929_s14 = int_to_ptr.hbm [resolvable:$true] %s6928_s14 }
  0x65   : > { %s6930_s4 = scalar_lea.hbm %s6929_s14, 64  ;;  %p6935_p13 = scmp.lt.s32.totalorder %s6929_s14, %s8671_s8 }
  0x66   : > { %p6931_p7 = scmp.ne.s32.totalorder %s6929_s14, %s6930_s4  ;;  %p6936_p0 = scmp.lt.s32.totalorder %s6934_s16, %s6930_s4 }
  0x68   : > { %p6932_p11 = pnand %p6931_p7, %p7493_p4  ;;  %p6937_p1 = por %p6936_p0, %p6935_p13 }
  0x6a   : > { %p6933_p12 = pneg %p6932_p11 }
  0x6c   : > { %p6938_p2 = pnand %p6937_p1, %p6933_p12 }
  0x6e   : > { %6941 = shalt.err (!%p6938_p2)
}
  0x6f   : > { %s8700_s5 = smov 64   ;;  %s8699_s29 = smov 4  }
  0x70   : > { %6435 = dma.hbm_to_vmem [thread:$0]  (%p7493_p4), %s727_s18, 1024, %s729_s25, %s7565_s15, %s8700_s5, %s8700_s5, %s8699_s29  }
  0x71   : > { %s744_s0 = scalar_lea.hbm %s8672_s9, %s7326_s27  ;;  %s741_s3 = scalar_lea.vmem [#allocation17], %s7557_s2 }
  0x72   : > { %s748_s28 = sshll.u32 %s741_s3, 4  ;;  %s746_s21 = sshll.u32 %s744_s0, 4  ;;  %s749_s28 = int_to_ptr.vmem [resolvable:$true] %s748_s28  ;;  %s747_s21 = int_to_ptr.hbm [resolvable:$true] %s746_s21 }
  0x73   : > { %s6956_s14 = sshra.s32 %s747_s21, 4  ;;  %s6962_s25 = scalar_lea.hbm %s8672_s9, 3  ;;  %s6957_s14 = int_to_ptr.hbm [resolvable:$true] %s6956_s14 }
  0x74   : > { %s6958_s4 = scalar_lea.hbm %s6957_s14, 1  ;;  %p6963_p11 = scmp.lt.s32.totalorder %s6957_s14, %s8672_s9 }
  0x75   : > { %p6959_p3 = scmp.ne.s32.totalorder %s6957_s14, %s6958_s4  ;;  %p6964_p12 = scmp.lt.s32.totalorder %s6962_s25, %s6958_s4 }
  0x77   : > { %p6960_p6 = pnand %p6959_p3, %p7493_p4  ;;  %p6965_p13 = por %p6964_p12, %p6963_p11 }
  0x79   : > { %p6961_p7 = pneg %p6960_p6 }
  0x7b   : > { %p6966_p0 = pnand %p6965_p13, %p6961_p7 }
  0x7d   : > { %6969 = shalt.err (!%p6966_p0)
}
  0x7e   : > { %6436 = dma.hbm_to_vmem [thread:$0]  (%p7493_p4), %s747_s21, 16, %s749_s28, %s7565_s15  }
  0x7f   : > { %s761_s23 = scalar_lea.hbm %s8673_s10, %s7326_s27  ;;  %s758_s1 = scalar_lea.vmem [#allocation18], %s7557_s2 }
  0x80   : > { %s765_s0 = sshll.u32 %s758_s1, 4  ;;  %s763_s3 = sshll.u32 %s761_s23, 4  ;;  %s766_s0 = int_to_ptr.vmem [resolvable:$true] %s765_s0  ;;  %s764_s3 = int_to_ptr.hbm [resolvable:$true] %s763_s3 }
  0x81   : > { %s6984_s14 = sshra.s32 %s764_s3, 4  ;;  %s6990_s28 = scalar_lea.hbm %s8673_s10, 3  ;;  %s6985_s14 = int_to_ptr.hbm [resolvable:$true] %s6984_s14 }
  0x82   : > { %s6986_s4 = scalar_lea.hbm %s6985_s14, 1  ;;  %p6991_p6 = scmp.lt.s32.totalorder %s6985_s14, %s8673_s10 }
  0x83   : > { %p6987_p1 = scmp.ne.s32.totalorder %s6985_s14, %s6986_s4  ;;  %p6992_p7 = scmp.lt.s32.totalorder %s6990_s28, %s6986_s4 }
  0x85   : > { %p6988_p2 = pnand %p6987_p1, %p7493_p4  ;;  %p6993_p11 = por %p6992_p7, %p6991_p6 }
  0x87   : > { %p6989_p3 = pneg %p6988_p2 }
  0x89   : > { %p6994_p12 = pnand %p6993_p11, %p6989_p3 }
  0x8b   : > { %6997 = shalt.err (!%p6994_p12)
}
  0x8c   : > { %6437 = dma.hbm_to_vmem [thread:$0]  (%p7493_p4), %s764_s3, 16, %s766_s0, %s7565_s15  }
  0x8d   : > { %s778_s24 = scalar_lea.hbm %s8674_s11, %s7326_s27  ;;  %s775_s20 = scalar_lea.vmem [#allocation19], %s7557_s2 }
  0x8e   : > { %s782_s23 = sshll.u32 %s775_s20, 4  ;;  %s780_s1 = sshll.u32 %s778_s24, 4  ;;  %s783_s23 = int_to_ptr.vmem [resolvable:$true] %s782_s23  ;;  %s781_s1 = int_to_ptr.hbm [resolvable:$true] %s780_s1 }
  0x8f   : > { %s4879_s14 = sshll.u32 %s7557_s2, 10  ;;  %s7012_s4 = sshra.s32 %s781_s1, 4  ;;  %s7013_s4 = int_to_ptr.hbm [resolvable:$true] %s7012_s4 }
  0x90   : > { %s7014_s17 = scalar_lea.hbm %s7013_s4, 1  ;;  %s7018_s0 = scalar_lea.hbm %s8674_s11, 3 }
  0x91   : > { %p7015_p13 = scmp.ne.s32.totalorder %s7013_s4, %s7014_s17  ;;  %p7019_p2 = scmp.lt.s32.totalorder %s7013_s4, %s8674_s11 }
  0x92   : > { %p7020_p3 = scmp.lt.s32.totalorder %s7018_s0, %s7014_s17 }
  0x93   : > { %p7016_p0 = pnand %p7015_p13, %p7493_p4 }
  0x94   : > { %p7021_p6 = por %p7020_p3, %p7019_p2 }
  0x95   : > { %p7017_p1 = pneg %p7016_p0 }
  0x97   : > { %p7022_p7 = pnand %p7021_p6, %p7017_p1 }
  0x99   : > { %7025 = shalt.err (!%p7022_p7)
}
  0x9a   : > { %6438 = dma.hbm_to_vmem [thread:$0]  (%p7493_p4), %s781_s1, 16, %s783_s23, %s7565_s15  }
  0x9b   : > { %s6109_s25 = sshll.u32 %s7326_s27, 10  ;;  %s793_s20 = scalar_lea.vmem [#allocation20], %s4879_s14 }
  0x9c   : > { %s798_s24 = scalar_lea.hbm %s8675_s12, %s6109_s25  ;;  %s801_s4 = sshll.u32 %s793_s20, 4  ;;  %s802_s4 = int_to_ptr.vmem [resolvable:$true] %s801_s4 }
  0x9d   : > { %s799_s17 = sshll.u32 %s798_s24, 4  ;;  %s7046_s0 = scalar_lea.hbm %s8675_s12, 3072  ;;  %s800_s17 = int_to_ptr.hbm [resolvable:$true] %s799_s17 }
  0x9e   : > { %s7040_s22 = sshra.s32 %s800_s17, 4  ;;  %s7041_s22 = int_to_ptr.hbm [resolvable:$true] %s7040_s22 }
  0x9f   : > { %s7042_s28 = scalar_lea.hbm %s7041_s22, 1024  ;;  %p7047_p0 = scmp.lt.s32.totalorder %s7041_s22, %s8675_s12 }
  0xa0   : > { %p7043_p11 = scmp.ne.s32.totalorder %s7041_s22, %s7042_s28  ;;  %p7048_p1 = scmp.lt.s32.totalorder %s7046_s0, %s7042_s28 }
  0xa2   : > { %p7044_p12 = pnand %p7043_p11, %p7493_p4  ;;  %p7049_p2 = por %p7048_p1, %p7047_p0 }
  0xa4   : > { %p7045_p13 = pneg %p7044_p12 }
  0xa6   : > { %p7050_p3 = pnand %p7049_p2, %p7045_p13 }
  0xa8   : > { %7053 = shalt.err (!%p7050_p3)
}
  0xa9   : > { %s7343_s18 = smov 1024   ;;  %s4882_s16 = sshll.u32 %s7557_s2, 4 }
  0xaa   : > { %6439 = dma.hbm_to_vmem [thread:$0]  (%p7493_p4), %s800_s17, 16384, %s802_s4, %s7565_s15, %s7343_s18, %s7343_s18, %s8700_s5  }
  0xab   : > { %s4883_s24 = sshll.u32 %s7326_s27, 4  ;;  %s815_s28 = scalar_lea.vmem [#allocation21], %s4882_s16 }
  0xac   : > { %s819_s1 = scalar_lea.hbm %s8676_s13, %s4883_s24  ;;  %s823_s0 = sshll.u32 %s815_s28, 4  ;;  %s824_s0 = int_to_ptr.vmem [resolvable:$true] %s823_s0 }
  0xad   : > { %s821_s22 = sshll.u32 %s819_s1, 4  ;;  %s7074_s17 = scalar_lea.hbm %s8676_s13, 48  ;;  %s822_s22 = int_to_ptr.hbm [resolvable:$true] %s821_s22 }
  0xae   : > { %s7068_s3 = sshra.s32 %s822_s22, 4  ;;  %s7069_s3 = int_to_ptr.hbm [resolvable:$true] %s7068_s3 }
  0xaf   : > { %s7070_s21 = scalar_lea.hbm %s7069_s3, 16  ;;  %p7075_p12 = scmp.lt.s32.totalorder %s7069_s3, %s8676_s13 }
  0xb0   : > { %p7071_p6 = scmp.ne.s32.totalorder %s7069_s3, %s7070_s21  ;;  %p7076_p13 = scmp.lt.s32.totalorder %s7074_s17, %s7070_s21 }
  0xb2   : > { %p7072_p7 = pnand %p7071_p6, %p7493_p4  ;;  %p7077_p0 = por %p7076_p13, %p7075_p12 }
  0xb4   : > { %p7073_p11 = pneg %p7072_p7 }
  0xb6   : > { %p7078_p1 = pnand %p7077_p0, %p7073_p11 }
  0xb8   : > { %7081 = shalt.err (!%p7078_p1)
}
  0xb9   : > { %6440 = dma.hbm_to_vmem [thread:$0]  (%p7493_p4), %s822_s22, 256, %s824_s0, %s7565_s15  }
  0xba   : > { %s8732_s29 = sld [smem:[#allocation51_spill]]  ;;  %s834_s5 = scalar_lea.vmem [#allocation22], %s4879_s14 }
  0xbb   : > { %s842_s1 = sshll.u32 %s834_s5, 4  ;;  %s843_s1 = int_to_ptr.vmem [resolvable:$true] %s842_s1 }
  0xc0   : > { %s839_s20 = scalar_lea.hbm %s8732_s29, %s6109_s25  ;;  %s7102_s0 = scalar_lea.hbm %s8732_s29, 3072 }
  0xc1   : > { %s840_s23 = sshll.u32 %s839_s20, 4  ;;  %s841_s23 = int_to_ptr.hbm [resolvable:$true] %s840_s23 }
  0xc2   : > { %s7096_s28 = sshra.s32 %s841_s23, 4  ;;  %s7097_s28 = int_to_ptr.hbm [resolvable:$true] %s7096_s28 }
  0xc3   : > { %s7098_s3 = scalar_lea.hbm %s7097_s28, 1024  ;;  %p7103_p7 = scmp.lt.s32.totalorder %s7097_s28, %s8732_s29 }
  0xc4   : > { %p7099_p2 = scmp.ne.s32.totalorder %s7097_s28, %s7098_s3  ;;  %p7104_p11 = scmp.lt.s32.totalorder %s7102_s0, %s7098_s3 }
  0xc6   : > { %p7100_p3 = pnand %p7099_p2, %p7493_p4  ;;  %p7105_p12 = por %p7104_p11, %p7103_p7 }
  0xc8   : > { %p7101_p6 = pneg %p7100_p3 }
  0xca   : > { %p7106_p13 = pnand %p7105_p12, %p7101_p6 }
  0xcc   : > { %7109 = shalt.err (!%p7106_p13)
}
  0xcd   : > { %s8733_s14 = smov 4   ;;  %s8734_s25 = smov 64  }
  0xce   : > { %6441 = dma.hbm_to_vmem [thread:$0]  (%p7493_p4), %s841_s23, 16384, %s843_s1, %s7565_s15, %s8734_s25, %s8734_s25, %s8733_s14  }
  0xcf   : > { %s8735_s24 = sld [smem:[#allocation52_spill]]  ;;  %s855_s28 = scalar_lea.vmem [#allocation23], %s7557_s2 }
  0xd0   : > { %s862_s3 = sshll.u32 %s855_s28, 4  ;;  %s863_s3 = int_to_ptr.vmem [resolvable:$true] %s862_s3 }
  0xd5   : > { %s858_s20 = scalar_lea.hbm %s8735_s24, %s7326_s27  ;;  %s7130_s23 = scalar_lea.hbm %s8735_s24, 3 }
  0xd6   : > { %s860_s5 = sshll.u32 %s858_s20, 4  ;;  %s861_s5 = int_to_ptr.hbm [resolvable:$true] %s860_s5 }
  0xd7   : > { %s7124_s21 = sshra.s32 %s861_s5, 4  ;;  %s7125_s21 = int_to_ptr.hbm [resolvable:$true] %s7124_s21 }
  0xd8   : > { %s7126_s22 = scalar_lea.hbm %s7125_s21, 1  ;;  %p7131_p3 = scmp.lt.s32.totalorder %s7125_s21, %s8735_s24 }
  0xd9   : > { %p7127_p0 = scmp.ne.s32.totalorder %s7125_s21, %s7126_s22  ;;  %p7132_p6 = scmp.lt.s32.totalorder %s7130_s23, %s7126_s22 }
  0xdb   : > { %p7128_p1 = pnand %p7127_p0, %p7493_p4  ;;  %p7133_p7 = por %p7132_p6, %p7131_p3 }
  0xdd   : > { %p7129_p2 = pneg %p7128_p1 }
  0xdf   : > { %p7134_p11 = pnand %p7133_p7, %p7129_p2 }
  0xe1   : > { %7137 = shalt.err (!%p7134_p11)
}
  0xe2   : > { %6442 = dma.hbm_to_vmem [thread:$0]  (%p7493_p4), %s861_s5, 16, %s863_s3, %s7565_s15  }
  0xe3   : > { %s8736_s18 = sld [smem:[#allocation53_spill]]  ;;  %s872_s28 = scalar_lea.vmem [#allocation24], %s7557_s2 }
  0xe4   : > { %s879_s0 = sshll.u32 %s872_s28, 4  ;;  %s880_s0 = int_to_ptr.vmem [resolvable:$true] %s879_s0 }
  0xe9   : > { %s875_s16 = scalar_lea.hbm %s8736_s18, %s7326_s27  ;;  %s7158_s5 = scalar_lea.hbm %s8736_s18, 3 }
  0xea   : > { %s877_s20 = sshll.u32 %s875_s16, 4  ;;  %s878_s20 = int_to_ptr.hbm [resolvable:$true] %s877_s20 }
  0xeb   : > { %s7152_s21 = sshra.s32 %s878_s20, 4  ;;  %s7153_s21 = int_to_ptr.hbm [resolvable:$true] %s7152_s21 }
  0xec   : > { %s7154_s22 = scalar_lea.hbm %s7153_s21, 1  ;;  %p7159_p1 = scmp.lt.s32.totalorder %s7153_s21, %s8736_s18 }
  0xed   : > { %p7155_p12 = scmp.ne.s32.totalorder %s7153_s21, %s7154_s22  ;;  %p7160_p2 = scmp.lt.s32.totalorder %s7158_s5, %s7154_s22 }
  0xef   : > { %p7156_p13 = pnand %p7155_p12, %p7493_p4  ;;  %p7161_p3 = por %p7160_p2, %p7159_p1 }
  0xf1   : > { %p7157_p0 = pneg %p7156_p13 }
  0xf3   : > { %p7162_p6 = pnand %p7161_p3, %p7157_p0 }
  0xf5   : > { %7165 = shalt.err (!%p7162_p6)
}
  0xf6   : > { %6443 = dma.hbm_to_vmem [thread:$0]  (%p7493_p4), %s878_s20, 16, %s880_s0, %s7565_s15  }
  0xf7   : > { %s8737_s25 = sld [smem:[#allocation54_spill]]  ;;  %s889_s23 = scalar_lea.vmem [#allocation25], %s7557_s2 }
  0xf8   : > { %s896_s6 = sshll.u32 %s889_s23, 4  ;;  %s897_s6 = int_to_ptr.vmem [resolvable:$true] %s896_s6 }
  0xfd   : > { %s8738_s16 = smov %s8737_s25  ;;  %s892_s28 = scalar_lea.hbm %s8737_s25, %s7326_s27 }
  0xfe   : > { %s894_s4 = sshll.u32 %s892_s28, 4  ;;  %s7186_s20 = scalar_lea.hbm %s8738_s16, 3  ;;  %s895_s4 = int_to_ptr.hbm [resolvable:$true] %s894_s4 }
  0xff   : > { %s7180_s21 = sshra.s32 %s895_s4, 4  ;;  %s7181_s21 = int_to_ptr.hbm [resolvable:$true] %s7180_s21 }
 0x100   : > { %s7182_s22 = scalar_lea.hbm %s7181_s21, 1  ;;  %p7187_p13 = scmp.lt.s32.totalorder %s7181_s21, %s8738_s16 }
 0x101   : > { %p7183_p7 = scmp.ne.s32.totalorder %s7181_s21, %s7182_s22  ;;  %p7188_p0 = scmp.lt.s32.totalorder %s7186_s20, %s7182_s22 }
 0x103   : > { %p7184_p11 = pnand %p7183_p7, %p7493_p4  ;;  %p7189_p1 = por %p7188_p0, %p7187_p13 }
 0x105   : > { %p7185_p12 = pneg %p7184_p11 }
 0x107   : > { %p7190_p2 = pnand %p7189_p1, %p7185_p12 }
 0x109   : > { %7193 = shalt.err (!%p7190_p2)
}
 0x10a   : > { %6444 = dma.hbm_to_vmem [thread:$0]  (%p7493_p4), %s895_s4, 16, %s897_s6, %s7565_s15  }
 0x10b PF: > { %905 = sbr.rel (%p7507_p10) target bundleno = 3219 (0xc93), region = 100  ;;  %s8740_s2 = sld [smem:[#allocation39_spill]] (!%p7507_p10) }
 0x110   : > { %7281 = dma.done.wait (%p185_p5), [#allocation4], 256  }
 0x111   : > { %7283 = vsyncadd (%p185_p5), [#allocation4], 4294967040 }
 0x112   : > { %7285 = dma.done.wait (%p185_p5), [#allocation7], 2304  }
 0x113   : > { %7287 = vsyncadd (%p185_p5), [#allocation7], 4294964992 }
 0x114   : > { %7289 = dma.done.wait (%p185_p5), [#allocation10], 2560  }
 0x115   : > { %7291 = vsyncadd (%p185_p5), [#allocation10], 4294964736 }
 0x116   : > { %7293 = dma.done.wait (%p185_p5), [#allocation13], 16  }
 0x117   : > { %7295 = vsyncadd (%p185_p5), [#allocation13], 4294967280  ;;  %s8741_s6 = sld [smem:[#allocation38_spill]]  ;;  %s937_s15 = sand.u32 1, %s8740_s2  }
 0x118   : > { %s938_s25 = scalar_lea.sflag [#allocation4], %s937_s15 }
 0x11d   : > { %s7786_s17 = sand.u32 1, %s8741_s6  }
 0x11e   : > { %s6415_s14 = smul.u32 192, %s7786_s17 }
 0x120   : > { %s7789_s28 = scalar_lea.vmem [#allocation14], %s6415_s14 }
 0x121   : > { %7297 = dma.done.wait (%p7502_p8), %s938_s25, 37264  }
 0x122   : > { %7299 = vsyncadd (%p7502_p8), %s938_s25, 4294930032  ;;  %s6416_s4 = smul.u32 3, %s7786_s17  ;;  %s4894_s23 = sshll.u32 %s7786_s17, 6 }
 0x123   : > { %s4895_s21 = sshll.u32 %s7786_s17, 10  ;;  %s4896_s22 = sshll.u32 %s7786_s17, 4 }
 0x124   : > { %s7799_s5 = scalar_lea.vmem [#allocation15], %s6416_s4  ;;  %s7801_s3 = scalar_lea.vmem [#allocation16], %s4894_s23 }
 0x125   : > { %s970_s20 = scalar_lea.vmem [#allocation17], %s7786_s17  ;;  %s979_s0 = scalar_lea.vmem [#allocation18], %s7786_s17 }
 0x126   : > { %s988_s1 = scalar_lea.vmem [#allocation19], %s7786_s17  ;;  %s7806_s27 = scalar_lea.vmem [#allocation20], %s4895_s21 }
 0x127   : > { %s7808_s6 = scalar_lea.vmem [#allocation21], %s4896_s22  ;;  %s7810_s30 = scalar_lea.vmem [#allocation22], %s4895_s21 }
 0x128   : > { %s1027_s15 = scalar_lea.vmem [#allocation23], %s7786_s17  ;;  %s1036_s14 = scalar_lea.vmem [#allocation24], %s7786_s17 }
 0x129   : > { %s1045_s25 = scalar_lea.vmem [#allocation25], %s7786_s17 }
 0x12a   : > { %7301 = dma.done.wait (%p185_p5), [#allocation7], 16  }
 0x12b   : > { %7303 = vsyncadd (%p185_p5), [#allocation7], 4294967280  ;;  %1158 = sbr.rel (%p4867_p9) target bundleno = 459 (0x1cb), region = 180 }
 0x130   : > { %v6114_v0 = vld [vmem:[#allocation11 + $0x18] sm:$0xff]  ;;  %v6113_v1 = vld [vmem:[#allocation11 + $0x10] sm:$0xff]  ;;  %v6112_v2 = vld [vmem:[#allocation11 + $0x8] sm:$0xff]  ;;  %vm1198_vm0 = vcmask 523264  }
 0x131   : > { %1206 = vmatpush.bf16.msra.mxu0 %v6114_v0  ;;  %v6111_v3 = vld [vmem:[#allocation11] sm:$0xff]  ;;  %v1160_v5 = vld [vmem:[#allocation3 + $0x8] sm:$0xff]  ;;  %v1216_v9 = vld [vmem:[#allocation6] sm:$0xff] }
 0x132   : > { %v1159_v4 = vld [vmem:[#allocation3] sm:$0xff]  ;;  %v1217_v13 = vld [vmem:[#allocation6 + $0x8] sm:$0xff] }
 0x133   : > { %v1161_v6 = vpack.c.bf16 %v1160_v5, %v1159_v4  ;;  %v6572_v7 = vld [vmem:[#allocation12] ss:$0 sm:$0xff] }
 0x135   : > { %1207 = vmatpush.bf16.msra.mxu0 %v6113_v1 }
 0x139   : > { %1208 = vmatpush.bf16.msra.mxu0 %v6112_v2 }
 0x13d   : > { %1209 = vmatpush.bf16.msra.mxu0 %v6111_v3 }
 0x140   : > { %4916 = vmatmul.msk.bf16.vlgmr.msra.gmra.mxu0 %vm1198_vm0, %v1161_v6 }
 0x1bd   : > { %v1211_v8 = vpop.f32.mrf.mxu0 }
 0x1be   : > { %v1212_v10 = vadd.f32 %v6572_v7, %v1211_v8 }
 0x1c0   : > { %v1218_v11 = vadd.f32 %v1216_v9, %v1212_v10 }
 0x1c2   : > { %1220 = vst [vmem:[#allocation2] sm:$0xff] %v1218_v11 }
 0x1c5   : > { %v1213_v12 = vpop.f32.mrf.mxu0 }
 0x1c6   : > { %v1214_v14 = vadd.f32 %v6572_v7, %v1213_v12 }
 0x1c8   : > { %v1219_v15 = vadd.f32 %v1217_v13, %v1214_v14 }
 0x1ca   : > { %1221 = vst [vmem:[#allocation2 + $0x8] sm:$0xff] %v1219_v15 }
 0x1cb PF: > { %v5003_v16 = vld [vmem:[%s7789_s28 + $0xa8] sm:$0xf]  ;;  %v6137_v17 = vld [vmem:[%s7789_s28 + $0xb0] sm:$0xf0]  ;;  %v6136_v18 = vld [vmem:[%s7789_s28 + $0xac] sm:$0xf] }
 0x1cc   : > { %v5004_v19 = vor.u32 %v6137_v17, %v5003_v16  ;;  %v5005_v20 = vld [vmem:[%s7789_s28 + $0xb4] sm:$0xf0]  ;;  %v4991_v21 = vld [vmem:[%s7789_s28 + $0x90] sm:$0xf]  ;;  %v6134_v22 = vld [vmem:[%s7789_s28 + $0x98] sm:$0xf0] }
 0x1cd   : > { %v5008_v23 = vor.u32 %v6136_v18, %v5005_v20  ;;  %v6133_v24 = vld [vmem:[%s7789_s28 + $0x94] sm:$0xf]  ;;  %v4993_v25 = vld [vmem:[%s7789_s28 + $0x9c] sm:$0xf0]  ;;  %v4992_v26 = vor.u32 %v6134_v22, %v4991_v21  ;;  %v4979_v28 = vld [vmem:[%s7789_s28 + $0x78] sm:$0xf] }
 0x1ce   : > { %1409 = vmatpush.bf16.msra.mxu0 %v5004_v19  ;;  %v4996_v27 = vor.u32 %v6133_v24, %v4993_v25  ;;  %v6131_v29 = vld [vmem:[%s7789_s28 + $0x80] sm:$0xf0]  ;;  %v6130_v30 = vld [vmem:[%s7789_s28 + $0x7c] sm:$0xf]  ;;  %v4981_v31 = vld [vmem:[%s7789_s28 + $0x84] sm:$0xf0] }
 0x1cf   : > { %1423 = vmatpush.bf16.msra.mxu1 %v5008_v23  ;;  %v4980_v32 = vor.u32 %v6131_v29, %v4979_v28  ;;  %v4984_v33 = vor.u32 %v6130_v30, %v4981_v31  ;;  %v4967_v34 = vld [vmem:[%s7789_s28 + $0x60] sm:$0xf]  ;;  %v6128_v35 = vld [vmem:[%s7789_s28 + $0x68] sm:$0xf0]  ;;  %v6127_v36 = vld [vmem:[%s7789_s28 + $0x64] sm:$0xf] }
 0x1d0   : > { %v4969_v37 = vld [vmem:[%s7789_s28 + $0x6c] sm:$0xf0]  ;;  %v4955_v38 = vld [vmem:[%s7789_s28 + $0x48] sm:$0xf]  ;;  %v4968_v39 = vor.u32 %v6128_v35, %v4967_v34  ;;  %v6125_v40 = vld [vmem:[%s7789_s28 + $0x50] sm:$0xf0] }
 0x1d1   : > { %v6124_v41 = vld [vmem:[%s7789_s28 + $0x4c] sm:$0xf]  ;;  %v4972_v42 = vor.u32 %v6127_v36, %v4969_v37  ;;  %v4957_v43 = vld [vmem:[%s7789_s28 + $0x54] sm:$0xf0]  ;;  %v4956_v44 = vor.u32 %v6125_v40, %v4955_v38  ;;  %v4943_v46 = vld [vmem:[%s7789_s28 + $0x30] sm:$0xf] }
 0x1d2   : > { %1410 = vmatpush.bf16.msra.mxu0 %v4992_v26  ;;  %v4960_v45 = vor.u32 %v6124_v41, %v4957_v43  ;;  %v6122_v47 = vld [vmem:[%s7789_s28 + $0x38] sm:$0xf0]  ;;  %v6121_v48 = vld [vmem:[%s7789_s28 + $0x34] sm:$0xf]  ;;  %v4945_v49 = vld [vmem:[%s7789_s28 + $0x3c] sm:$0xf0] }
 0x1d3   : > { %1424 = vmatpush.bf16.msra.mxu1 %v4996_v27  ;;  %v4944_v50 = vor.u32 %v6122_v47, %v4943_v46  ;;  %v4948_v51 = vor.u32 %v6121_v48, %v4945_v49  ;;  %v4931_v52 = vld [vmem:[%s7789_s28 + $0x18] sm:$0xf]  ;;  %v6119_v53 = vld [vmem:[%s7789_s28 + $0x20] sm:$0xf0]  ;;  %v6118_v54 = vld [vmem:[%s7789_s28 + $0x1c] sm:$0xf] }
 0x1d4   : > { %v4933_v55 = vld [vmem:[%s7789_s28 + $0x24] sm:$0xf0]  ;;  %v4932_v56 = vor.u32 %v6119_v53, %v4931_v52  ;;  %v4919_v58 = vld [vmem:[%s7789_s28] sm:$0xf]  ;;  %v6116_v59 = vld [vmem:[%s7789_s28 + $0x8] sm:$0xf0] }
 0x1d5   : > { %v4936_v57 = vor.u32 %v6118_v54, %v4933_v55  ;;  %v6115_v60 = vld [vmem:[%s7789_s28 + $0x4] sm:$0xf]  ;;  %v4921_v61 = vld [vmem:[%s7789_s28 + $0xc] sm:$0xf0]  ;;  %v4920_v62 = vor.u32 %v6116_v59, %v4919_v58  ;;  %v7855_v0 = vld [vmem:[#allocation2 + $0x8] sm:$0xff]  ;;  %s8743_s2 = sld [smem:[#allocation39_spill]] }
 0x1d6   : > { %1411 = vmatpush.bf16.msra.mxu0 %v4980_v32  ;;  %v7853_v63 = vld [vmem:[#allocation2] sm:$0xff]  ;;  %v4924_v1 = vor.u32 %v6115_v60, %v4921_v61  ;;  %v7864_v3 = vld [vmem:[%s7799_s5] sm:$0x7]  ;;  %v7878_v16 = vld [vmem:[#allocation9 + $0x8] sm:$0xff] }
 0x1d7   : > { %1425 = vmatpush.bf16.msra.mxu1 %v4984_v33  ;;  %v7859_v2 = vpack.c.bf16 %v7855_v0, %v7853_v63  ;;  %v1275_v4 = vperm.slane %v7864_v3, 0  ;;  %v1276_v5 = vperm.slane %v7864_v3, 1  ;;  %v7868_v10 = vld [vmem:[#allocation9] sm:$0xff]  ;;  %v7870_v11 = vld [vmem:[#allocation9 + $0x10] sm:$0xff]  ;;  %v7885_v21 = vld [vmem:[#allocation9 + $0x18] sm:$0xff] }
 0x1d8   : > { %v7872_v13 = vld [vmem:[#allocation9 + $0x20] sm:$0xff]  ;;  %v7874_v14 = vld [vmem:[#allocation9 + $0x30] sm:$0xff]  ;;  %v7888_v23 = vld [vmem:[#allocation9 + $0x28] sm:$0xff] }
 0x1d9   : > { %v7876_v15 = vld [vmem:[#allocation9 + $0x40] sm:$0xff]  ;;  %v7880_v17 = vld [vmem:[#allocation9 + $0x50] sm:$0xff]  ;;  %v7890_v24 = vld [vmem:[#allocation9 + $0x38] sm:$0xff] }
 0x1da   : > { %1412 = vmatpush.bf16.msra.mxu0 %v4968_v39  ;;  %v7882_v18 = vld [vmem:[#allocation9 + $0x60] sm:$0xff]  ;;  %v7894_v29 = vld [vmem:[#allocation9 + $0x48] sm:$0xff]  ;;  %v7897_v31 = vld [vmem:[#allocation9 + $0x58] sm:$0xff] }
 0x1db   : > { %1426 = vmatpush.bf16.msra.mxu1 %v4972_v42  ;;  %v7899_v32 = vld [vmem:[#allocation9 + $0x68] sm:$0xff]  ;;  %v7912_v46 = vld [vmem:[#allocation9 + $0x78] sm:$0xff]  ;;  %v1491_v59 = vld [vmem:[#allocation8] sm:$0xff]  ;;  %p6069_p4 = scmp.ne.s32.totalorder %s8743_s2, 2 }
 0x1dc   : > { %s8744_s4 = sld [smem:[#allocation55_spill]] (!%p6069_p4) }
 0x1de   : > { %1413 = vmatpush.bf16.msra.mxu0 %v4956_v44 }
 0x1df   : > { %1427 = vmatpush.bf16.msra.mxu1 %v4960_v45  ;;  %v7910_v45 = vld [vmem:[#allocation9 + $0x70] sm:$0xff] }
 0x1e2   : > { %1414 = vmatpush.bf16.msra.mxu0 %v4944_v50 }
 0x1e3   : > { %1428 = vmatpush.bf16.msra.mxu1 %v4948_v51 }
 0x1e6   : > { %1415 = vmatpush.bf16.msra.mxu0 %v4932_v56 }
 0x1e7   : > { %1429 = vmatpush.bf16.msra.mxu1 %v4936_v57 }
 0x1ea   : > { %1416 = vmatpush.bf16.msra.mxu0 %v4920_v62  ;;  %v1492_v62 = vld [vmem:[#allocation8 + $0x8] sm:$0xff] }
 0x1eb   : > { %1430 = vmatpush.bf16.msra.mxu1 %v4924_v1 }
 0x1ed   : > { %1417 = vmatmul.bf16.vlgmr.msra.gmra.mxu0 %v7859_v2 }
 0x1ee   : > { %1431 = vmatmul.bf16.vlgmr.msra.gmra.mxu1 %v7859_v2 }
 0x26a   : > { %v1418_v6 = vpop.f32.mrf.mxu0 }
 0x26b   : > { %v1432_v7 = vpop.f32.mrf.mxu1  ;;  %v1419_v8 = vadd.f32 %v1418_v6, %v1275_v4 }
 0x26c   : > { %v1433_v9 = vadd.f32 %v1432_v7, %v1276_v5 }
 0x26d   : > { %v1455_v20 = vmul.f32 %v1419_v8, %v7868_v10  ;;  %v1457_v22 = vmul.f32 %v1419_v8, %v7870_v11  ;;  %v1459_v27 = vmul.f32 %v1419_v8, %v7872_v13  ;;  %v1461_v28 = vmul.f32 %v1419_v8, %v7874_v14 }
 0x26e   : > { %v1451_v12 = vpack.c.bf16 %v1433_v9, %v1419_v8  ;;  %v1463_v30 = vmul.f32 %v1419_v8, %v7876_v15  ;;  %v1465_v35 = vmul.f32 %v1419_v8, %v7880_v17  ;;  %v1467_v36 = vmul.f32 %v1419_v8, %v7882_v18  ;;  %v6138_v9 = vld [vmem:[%s7789_s28 + $0xb8] sm:$0xf0] }
 0x26f   : > { %v1469_v55 = vmul.f32 %v1419_v8, %v7910_v45  ;;  %v5011_v8 = vld [vmem:[%s7789_s28 + $0xb0] sm:$0xf] }
 0x270   : > { %v1481_v33 = vunpack.c.h.b16 %v1451_v12  ;;  %v5012_v12 = vor.u32 %v6138_v9, %v5011_v8 }
 0x272   : > { %v1420_v19 = vpop.f32.mrf.mxu0  ;;  %1437 = vmatpush.bf16.msra.mxu2 %v5012_v12 }
 0x273   : > { %v1421_v25 = vadd.f32 %v1420_v19, %v1275_v4  ;;  %v1434_v26 = vpop.f32.mrf.mxu1  ;;  %v1494_v19 = vld [vmem:[#allocation8 + $0x18] sm:$0xff] }
 0x274   : > { %v1435_v34 = vadd.f32 %v1434_v26, %v1276_v5  ;;  %v1493_v5 = vld [vmem:[#allocation8 + $0x10] sm:$0xff]  ;;  %v6135_v26 = vld [vmem:[%s7789_s28 + $0xa0] sm:$0xf0] }
 0x275   : > { %v1456_v37 = vmul.f32 %v1421_v25, %v7878_v16  ;;  %v1458_v38 = vmul.f32 %v1421_v25, %v7885_v21  ;;  %v1460_v39 = vmul.f32 %v1421_v25, %v7888_v23  ;;  %v1462_v40 = vmul.f32 %v1421_v25, %v7890_v24 }
 0x276   : > { %v1453_v41 = vpack.c.bf16 %v1435_v34, %v1421_v25  ;;  %v1464_v42 = vmul.f32 %v1421_v25, %v7894_v29  ;;  %v1466_v43 = vmul.f32 %v1421_v25, %v7897_v31  ;;  %v1468_v44 = vmul.f32 %v1421_v25, %v7899_v32  ;;  %v1495_v34 = vld [vmem:[#allocation8 + $0x20] sm:$0xff] }
 0x277   : > { %v1471_v47 = vpack.c.bf16 %v1456_v37, %v1455_v20  ;;  %v1472_v48 = vpack.c.bf16 %v1458_v38, %v1457_v22  ;;  %v1473_v49 = vpack.c.bf16 %v1460_v39, %v1459_v27  ;;  %v1474_v50 = vpack.c.bf16 %v1462_v40, %v1461_v28  ;;  %v4987_v28 = vld [vmem:[%s7789_s28 + $0x80] sm:$0xf]  ;;  %v4975_v37 = vld [vmem:[%s7789_s28 + $0x68] sm:$0xf]  ;;  %v6129_v38 = vld [vmem:[%s7789_s28 + $0x70] sm:$0xf0] }
 0x278   : > { %v1482_v51 = vunpack.c.h.b16 %v1453_v41  ;;  %v1475_v52 = vpack.c.bf16 %v1464_v42, %v1463_v30  ;;  %v1476_v53 = vpack.c.bf16 %v1466_v43, %v1465_v35  ;;  %v1477_v54 = vpack.c.bf16 %v1468_v44, %v1467_v36  ;;  %v6132_v30 = vld [vmem:[%s7789_s28 + $0x88] sm:$0xf0]  ;;  %v4963_v40 = vld [vmem:[%s7789_s28 + $0x50] sm:$0xf]  ;;  %v6126_v41 = vld [vmem:[%s7789_s28 + $0x58] sm:$0xf0] }
 0x279   : > { %v1470_v56 = vmul.f32 %v1421_v25, %v7912_v46  ;;  %v4999_v25 = vld [vmem:[%s7789_s28 + $0x98] sm:$0xf]  ;;  %v4976_v39 = vor.u32 %v6129_v38, %v4975_v37  ;;  %v4964_v42 = vor.u32 %v6126_v41, %v4963_v40  ;;  %v1496_v43 = vld [vmem:[#allocation8 + $0x28] sm:$0xff] }
 0x27a   : > { %v1483_v57 = vpack.c.b16 %v1482_v51, %v1481_v33  ;;  %v5000_v27 = vor.u32 %v6135_v26, %v4999_v25  ;;  %v4988_v33 = vor.u32 %v6132_v30, %v4987_v28  ;;  %v1500_v30 = vld [vmem:[#allocation8 + $0x48] sm:$0xff] }
 0x27b   : > { %v1478_v58 = vpack.c.bf16 %v1470_v56, %v1469_v55 }
 0x27c   : > { %1507 = vmatpush.bf16.xpose.msra.mxu3 %v1483_v57  ;;  %1438 = vmatpush.bf16.msra.mxu2 %v5000_v27 }
 0x280   : > { %1439 = vmatpush.bf16.msra.mxu2 %v4988_v33 }
 0x284   : > { %1508 = vmatpush.bf16.xpose.msra.mxu3 %v1483_v57  ;;  %1440 = vmatpush.bf16.msra.mxu2 %v4976_v39 }
 0x288   : > { %1441 = vmatpush.bf16.msra.mxu2 %v4964_v42 }
 0x28c   : > { %1509 = vmatpush.bf16.xpose.msra.mxu3 %v1483_v57 }
 0x294   : > { %1510 = vmatpush.bf16.xpose.msra.mxu3 %v1483_v57 }
 0x29c   : > { %1511 = vmatpush.bf16.xpose.msra.mxu3 %v1483_v57 }
 0x2a4   : > { %1512 = vmatpush.bf16.xpose.msra.mxu3 %v1483_v57 }
 0x2ac   : > { %1513 = vmatpush.bf16.xpose.msra.mxu3 %v1483_v57 }
 0x2b4   : > { %1514 = vmatpush.bf16.xpose.msra.mxu3 %v1483_v57  ;;  %v4927_v57 = vld [vmem:[%s7789_s28 + $0x8] sm:$0xf] }
 0x2bb   : > { %1515 = vmatmul.bf16.vlgmr.msra.gmra.mxu3 %v1471_v47 }
 0x2cb   : > { %1520 = vmatmul.bf16.gmra.mxu3 %v1472_v48  ;;  %v4951_v48 = vld [vmem:[%s7789_s28 + $0x38] sm:$0xf] }
 0x2db   : > { %1525 = vmatmul.bf16.gmra.mxu3 %v1473_v49  ;;  %v6123_v49 = vld [vmem:[%s7789_s28 + $0x40] sm:$0xf0] }
 0x2dc   : > { %v4952_v51 = vor.u32 %v6123_v49, %v4951_v48 }
 0x2de   : > { %1442 = vmatpush.bf16.msra.mxu2 %v4952_v51 }
 0x2eb   : > { %1530 = vmatmul.bf16.gmra.mxu3 %v1474_v50  ;;  %v4939_v50 = vld [vmem:[%s7789_s28 + $0x20] sm:$0xf] }
 0x2fb   : > { %1535 = vmatmul.bf16.gmra.mxu3 %v1475_v52  ;;  %v6120_v52 = vld [vmem:[%s7789_s28 + $0x28] sm:$0xf0] }
 0x30b   : > { %1540 = vmatmul.bf16.gmra.mxu3 %v1476_v53  ;;  %v4940_v53 = vor.u32 %v6120_v52, %v4939_v50  ;;  %v1503_v52 = vld [vmem:[#allocation8 + $0x60] sm:$0xff] }
 0x30d   : > { %1443 = vmatpush.bf16.msra.mxu2 %v4940_v53 }
 0x31b   : > { %1545 = vmatmul.bf16.gmra.mxu3 %v1477_v54  ;;  %v1497_v54 = vld [vmem:[#allocation8 + $0x30] sm:$0xff] }
 0x32b   : > { %1550 = vmatmul.bf16.gmra.mxu3 %v1478_v58  ;;  %v6117_v58 = vld [vmem:[%s7789_s28 + $0x10] sm:$0xf0] }
 0x33e   : > { %v1516_v60 = vpop.f32.mrf.mxu3 }
 0x33f   : > { %v7916_v61 = vadd.f32 %v1516_v60, %v1491_v59  ;;  %v4928_v59 = vor.u32 %v6117_v58, %v4927_v57  ;;  %v1498_v60 = vld [vmem:[#allocation8 + $0x38] sm:$0xff] }
 0x341   : > { %1556 = vmax.xlane.f32.xlu0 %v7916_v61  ;;  %1444 = vmatpush.bf16.msra.mxu2 %v4928_v59  ;;  %v1504_v59 = vld [vmem:[#allocation8 + $0x68] sm:$0xff] }
 0x344   : > { %1445 = vmatmul.bf16.vlgmr.msra.gmra.mxu2 %v7859_v2 }
 0x346   : > { %v1518_v1 = vpop.f32.mrf.mxu3 }
 0x347   : > { %v7919_v4 = vadd.f32 %v1518_v1, %v1492_v62 }
 0x349   : > { %1558 = vmax.xlane.f32.xlu0 %v7919_v4 }
 0x34e   : > { %v1521_v6 = vpop.f32.mrf.mxu3 }
 0x34f   : > { %v7922_v7 = vadd.f32 %v1521_v6, %v1493_v5  ;;  %v1499_v5 = vld [vmem:[#allocation8 + $0x40] sm:$0xff] }
 0x351   : > { %1560 = vmax.xlane.f32.xlu1 %v7922_v7 }
 0x356   : > { %v1523_v20 = vpop.f32.mrf.mxu3 }
 0x357   : > { %v7927_v22 = vadd.f32 %v1523_v20, %v1494_v19 }
 0x359   : > { %1562 = vmax.xlane.f32.xlu1 %v7927_v22 }
 0x35e   : > { %v1526_v35 = vpop.f32.mrf.mxu3 }
 0x35f   : > { %v7934_v36 = vadd.f32 %v1526_v35, %v1495_v34 }
 0x361   : > { %1564 = vmax.xlane.f32.xlu2 %v7934_v36 }
 0x366   : > { %v1528_v44 = vpop.f32.mrf.mxu3 }
 0x367   : > { %v7941_v47 = vadd.f32 %v1528_v44, %v1496_v43  ;;  %v1502_v43 = vld [vmem:[#allocation8 + $0x58] sm:$0xff] }
 0x369   : > { %1566 = vmax.xlane.f32.xlu2 %v7941_v47 }
 0x36e   : > { %v1531_v55 = vpop.f32.mrf.mxu3 }
 0x36f   : > { %v7948_v56 = vadd.f32 %v1531_v55, %v1497_v54 }
 0x371   : > { %1568 = vmax.xlane.f32.xlu0 %v7948_v56 }
 0x376   : > { %v1533_v62 = vpop.f32.mrf.mxu3 }
 0x377   : > { %v7954_v1 = vadd.f32 %v1533_v62, %v1498_v60 }
 0x379   : > { %1570 = vmax.xlane.f32.xlu1 %v7954_v1 }
 0x37e   : > { %v1536_v6 = vpop.f32.mrf.mxu3 }
 0x37f   : > { %v7957_v8 = vadd.f32 %v1536_v6, %v1499_v5 }
 0x381   : > { %1572 = vmax.xlane.f32.xlu1 %v7957_v8 }
 0x386   : > { %v1538_v19 = vpop.f32.mrf.mxu3 }
 0x387   : > { %v7966_v35 = vadd.f32 %v1538_v19, %v1500_v30 }
 0x38e   : > { %v1541_v28 = vpop.f32.mrf.mxu3 }
 0x396   : > { %v1543_v38 = vpop.f32.mrf.mxu3 }
 0x397   : > { %v7980_v50 = vadd.f32 %v1543_v38, %v1502_v43 }
 0x39e   : > { %v1546_v48 = vpop.f32.mrf.mxu3 }
 0x39f   : > { %v7987_v55 = vadd.f32 %v1546_v48, %v1503_v52 }
 0x3a6   : > { %v1548_v58 = vpop.f32.mrf.mxu3 }
 0x3a7   : > { %v7994_v5 = vadd.f32 %v1548_v58, %v1504_v59 }
 0x3b4   : > { %v1557_v9 = vpop.xlane.xlu0 %1556 }
 0x3b5   : > { %v1588_v12 = vsub.f32 %v7916_v61, %v1557_v9  ;;  %v1551_v9 = vpop.f32.mrf.mxu3 }
 0x3b7   : > { %v1604_v20 = vmul.f32 1.442695, %v1588_v12  ;;  %v1505_v12 = vld [vmem:[#allocation8 + $0x70] sm:$0xff] }
 0x3b9   : > { %6579 = vpow2.f32 %v1604_v20 }
 0x3bc   : > { %v1559_v25 = vpop.xlane.xlu0 %1558 }
 0x3bd   : > { %v1589_v2 = vsub.f32 %v7919_v4, %v1559_v25  ;;  %v1501_v4 = vld [vmem:[#allocation8 + $0x50] sm:$0xff]  ;;  %v8001_v25 = vadd.f32 %v1551_v9, %v1505_v12 }
 0x3be   : > { %v7973_v41 = vadd.f32 %v1541_v28, %v1501_v4  ;;  %v1553_v28 = vpop.f32.mrf.mxu3  ;;  %v1277_v4 = vperm.slane %v7864_v3, 2 }
 0x3bf   : > { %v7962_v26 = vpop.eup %6579  ;;  %v1606_v27 = vmul.f32 1.442695, %v1589_v2 }
 0x3c0   : > { %1636 = vadd.xlane.f32.xlu2 %v7962_v26 }
 0x3c1   : > { %6581 = vpow2.f32 %v1606_v27  ;;  %v1506_v27 = vld [vmem:[#allocation8 + $0x78] sm:$0xff] }
 0x3c4   : > { %v1561_v33 = vpop.xlane.xlu1 %1560 }
 0x3c5   : > { %v1590_v34 = vsub.f32 %v7922_v7, %v1561_v33 }
 0x3c7   : > { %v7968_v61 = vpop.eup %6581  ;;  %v1608_v37 = vmul.f32 1.442695, %v1590_v34  ;;  %v8008_v34 = vadd.f32 %v1553_v28, %v1506_v27  ;;  %v1446_v38 = vpop.f32.mrf.mxu2 }
 0x3c8   : > { %1574 = vmax.xlane.f32.xlu2 %v7966_v35  ;;  %1638 = vadd.xlane.f32.xlu0 %v7968_v61 }
 0x3c9   : > { %6583 = vpow2.f32 %v1608_v37 }
 0x3cc   : > { %v1563_v39 = vpop.xlane.xlu1 %1562 }
 0x3cd   : > { %v1591_v40 = vsub.f32 %v7927_v22, %v1563_v39  ;;  %v1447_v39 = vadd.f32 %v1446_v38, %v1277_v4 }
 0x3cf   : > { %v7975_v42 = vpop.eup %6583  ;;  %v1610_v7 = vmul.f32 1.442695, %v1591_v40 }
 0x3d0   : > { %1576 = vmax.xlane.f32.xlu2 %v7973_v41  ;;  %1640 = vadd.xlane.f32.xlu0 %v7975_v42 }
 0x3d1   : > { %6585 = vpow2.f32 %v1610_v7  ;;  %v1452_v7 = vpack.c.bf16 %v1447_v39, %v1447_v39 }
 0x3d4   : > { %v1565_v44 = vpop.xlane.xlu2 %1564 }
 0x3d5   : > { %v1592_v49 = vsub.f32 %v7934_v36, %v1565_v44  ;;  %v1487_v44 = vunpack.c.l.b16 %v1452_v7 }
 0x3d7   : > { %v7982_v51 = vpop.eup %6585  ;;  %v1612_v22 = vmul.f32 1.442695, %v1592_v49 }
 0x3d8   : > { %1642 = vadd.xlane.f32.xlu1 %v7982_v51  ;;  %1578 = vmax.xlane.f32.xlu0 %v7980_v50 }
 0x3d9   : > { %6587 = vpow2.f32 %v1612_v22 }
 0x3dc   : > { %v1567_v53 = vpop.xlane.xlu2 %1566 }
 0x3dd   : > { %v1593_v54 = vsub.f32 %v7941_v47, %v1567_v53 }
 0x3df   : > { %v7989_v57 = vpop.eup %6587  ;;  %v1614_v36 = vmul.f32 1.442695, %v1593_v54 }
 0x3e0   : > { %1644 = vadd.xlane.f32.xlu1 %v7989_v57  ;;  %1580 = vmax.xlane.f32.xlu0 %v7987_v55 }
 0x3e1   : > { %6589 = vpow2.f32 %v1614_v36 }
 0x3e4   : > { %v1569_v60 = vpop.xlane.xlu0 %1568 }
 0x3e5   : > { %v1594_v62 = vsub.f32 %v7948_v56, %v1569_v60 }
 0x3e7   : > { %v7996_v6 = vpop.eup %6589  ;;  %v1616_v47 = vmul.f32 1.442695, %v1594_v62 }
 0x3e8   : > { %1582 = vmax.xlane.f32.xlu1 %v7994_v5  ;;  %1646 = vadd.xlane.f32.xlu2 %v7996_v6 }
 0x3e9   : > { %6591 = vpow2.f32 %v1616_v47 }
 0x3ec   : > { %v1571_v19 = vpop.xlane.xlu1 %1570 }
 0x3ed   : > { %v1595_v20 = vsub.f32 %v7954_v1, %v1571_v19 }
 0x3ef   : > { %v8003_v2 = vpop.eup %6591  ;;  %v1618_v56 = vmul.f32 1.442695, %v1595_v20 }
 0x3f0   : > { %1584 = vmax.xlane.f32.xlu1 %v8001_v25  ;;  %1648 = vadd.xlane.f32.xlu2 %v8003_v2 }
 0x3f1   : > { %6593 = vpow2.f32 %v1618_v56 }
 0x3f4   : > { %v1573_v30 = vpop.xlane.xlu1 %1572 }
 0x3f5   : > { %v1596_v33 = vsub.f32 %v7957_v8, %v1573_v30  ;;  %v1448_v8 = vpop.f32.mrf.mxu2 }
 0x3f6   : > { %v1449_v43 = vadd.f32 %v1448_v8, %v1277_v4 }
 0x3f7   : > { %v8010_v37 = vpop.eup %6593  ;;  %v1620_v1 = vmul.f32 1.442695, %v1596_v33 }
 0x3f8   : > { %1650 = vadd.xlane.f32.xlu0 %v8010_v37  ;;  %1586 = vmax.xlane.f32.xlu2 %v8008_v34  ;;  %v1454_v48 = vpack.c.bf16 %v1449_v43, %v1449_v43  ;;  %v6146_v43 = vld [vmem:[%s7801_s3 + $0x38] sm:$0xff] }
 0x3f9   : > { %6595 = vpow2.f32 %v1620_v1  ;;  %1845 = vmatpush.bf16.msrb.mxu1 %v6146_v43 }
 0x3fa   : > { %v1488_v49 = vunpack.c.l.b16 %v1454_v48 }
 0x3fc   : > { %v1489_v22 = vpack.c.b16 %v1488_v49, %v1487_v44  ;;  %v6145_v44 = vld [vmem:[%s7801_s3 + $0x30] sm:$0xff] }
 0x3fd   : > { %1846 = vmatpush.bf16.msrb.mxu1 %v6145_v44 }
 0x3fe   : > { %1708 = vmatpush.bf16.msrb.mxu0 %v1489_v22 }
 0x3ff   : > { %v8015_v40 = vpop.eup %6595 }
 0x400   : > { %1652 = vadd.xlane.f32.xlu0 %v8015_v40 }
 0x402   : > { %1709 = vmatpush.bf16.msrb.mxu0 %v1489_v22 }
 0x406   : > { %1710 = vmatpush.bf16.msrb.mxu0 %v1489_v22 }
 0x40a   : > { %1711 = vmatpush.bf16.msrb.mxu0 %v1489_v22 }
 0x40e   : > { %1712 = vmatpush.bf16.msrb.mxu0 %v1489_v22 }
 0x412   : > { %1713 = vmatpush.bf16.msrb.mxu0 %v1489_v22 }
 0x416   : > { %1714 = vmatpush.bf16.msrb.mxu0 %v1489_v22 }
 0x41a   : > { %1715 = vmatpush.bf16.msrb.mxu0 %v1489_v22 }
 0x433   : > { %v1637_v3 = vpop.xlane.xlu2 %1636 }
 0x434   : > { %6597 = vrcp.f32 %v1637_v3 }
 0x43a   : > { %v6598_v36 = vpop.eup %6597 }
 0x43b   : > { %v1575_v52 = vpop.xlane.xlu2 %1574  ;;  %v1639_v53 = vpop.xlane.xlu0 %1638  ;;  %v1684_v47 = vmul.f32 %v6598_v36, %v7962_v26 }
 0x43c   : > { %v1597_v54 = vsub.f32 %v7966_v35, %v1575_v52  ;;  %6599 = vrcp.f32 %v1639_v53 }
 0x43e   : > { %v1622_v58 = vmul.f32 1.442695, %v1597_v54 }
 0x440   : > { %6601 = vpow2.f32 %v1622_v58 }
 0x442   : > { %v6600_v59 = vpop.eup %6599 }
 0x443   : > { %v1577_v60 = vpop.xlane.xlu2 %1576  ;;  %v1641_v62 = vpop.xlane.xlu0 %1640  ;;  %v1685_v9 = vmul.f32 %v6600_v59, %v7968_v61 }
 0x444   : > { %v1598_v12 = vsub.f32 %v7973_v41, %v1577_v60 }
 0x445   : > { %v1700_v19 = vpack.c.bf16 %v1685_v9, %v1684_v47 }
 0x446   : > { %v8022_v20 = vpop.eup %6601  ;;  %v1624_v56 = vmul.f32 1.442695, %v1598_v12 }
 0x447   : > { %1654 = vadd.xlane.f32.xlu1 %v8022_v20  ;;  %1716 = vmatmul.bf16.vlgmr.msrb.gmra.mxu0 %v1700_v19 }
 0x448   : > { %6603 = vpow2.f32 %v1624_v56 }
 0x449   : > { %6605 = vrcp.f32 %v1641_v62 }
 0x44b   : > { %v1643_v35 = vpop.xlane.xlu1 %1642  ;;  %v1579_v27 = vpop.xlane.xlu0 %1578 }
 0x44c   : > { %6607 = vrcp.f32 %v1643_v35  ;;  %v1599_v28 = vsub.f32 %v7980_v50, %v1579_v27 }
 0x44e   : > { %v8026_v30 = vpop.eup %6603  ;;  %v1626_v26 = vmul.f32 1.442695, %v1599_v28 }
 0x44f   : > { %1656 = vadd.xlane.f32.xlu2 %v8026_v30  ;;  %v6606_v61 = vpop.eup %6605 }
 0x450   : > { %6609 = vpow2.f32 %v1626_v26  ;;  %v1686_v4 = vmul.f32 %v6606_v61, %v7975_v42  ;;  %v6142_v26 = vld [vmem:[%s7801_s3 + $0x18] sm:$0xff]  ;;  %v6141_v61 = vld [vmem:[%s7801_s3 + $0x10] sm:$0xff] }
 0x452   : > { %v6608_v41 = vpop.eup %6607 }
 0x453   : > { %v1645_v33 = vpop.xlane.xlu1 %1644  ;;  %v1581_v1 = vpop.xlane.xlu0 %1580  ;;  %v1687_v38 = vmul.f32 %v6608_v41, %v7982_v51  ;;  %v6144_v51 = vld [vmem:[%s7801_s3 + $0x28] sm:$0xff] }
 0x454   : > { %v1600_v39 = vsub.f32 %v7987_v55, %v1581_v1  ;;  %1847 = vmatpush.bf16.msrb.mxu1 %v6144_v51  ;;  %v6140_v41 = vld [vmem:[%s7801_s3 + $0x8] sm:$0xff] }
 0x455   : > { %v1701_v50 = vpack.c.bf16 %v1687_v38, %v1686_v4 }
 0x456   : > { %v8032_v7 = vpop.eup %6609  ;;  %v1628_v8 = vmul.f32 1.442695, %v1600_v39 }
 0x457   : > { %1721 = vmatmul.bf16.gmra.mxu0 %v1701_v50  ;;  %1658 = vadd.xlane.f32.xlu0 %v8032_v7 }
 0x458   : > { %6611 = vpow2.f32 %v1628_v8 }
 0x459   : > { %6613 = vrcp.f32 %v1645_v33  ;;  %v6139_v33 = vld [vmem:[%s7801_s3] sm:$0xff] }
 0x45b   : > { %v1583_v48 = vpop.xlane.xlu1 %1582  ;;  %v1647_v49 = vpop.xlane.xlu2 %1646 }
 0x45c   : > { %v1601_v42 = vsub.f32 %v7994_v5, %v1583_v48  ;;  %6615 = vrcp.f32 %v1647_v49 }
 0x45e   : > { %v8039_v55 = vpop.eup %6611  ;;  %v1630_v22 = vmul.f32 1.442695, %v1601_v42 }
 0x45f   : > { %1660 = vadd.xlane.f32.xlu1 %v8039_v55  ;;  %v6614_v3 = vpop.eup %6613 }
 0x460   : > { %6617 = vpow2.f32 %v1630_v22  ;;  %v1688_v58 = vmul.f32 %v6614_v3, %v7989_v57 }
 0x462   : > { %v6616_v52 = vpop.eup %6615 }
 0x463   : > { %v1585_v53 = vpop.xlane.xlu1 %1584  ;;  %v1649_v54 = vpop.xlane.xlu2 %1648  ;;  %v1689_v36 = vmul.f32 %v6616_v52, %v7996_v6 }
 0x464   : > { %v1602_v5 = vsub.f32 %v8001_v25, %v1585_v53 }
 0x465   : > { %v1702_v59 = vpack.c.bf16 %v1689_v36, %v1688_v58 }
 0x466   : > { %v8045_v60 = vpop.eup %6617  ;;  %v1632_v62 = vmul.f32 1.442695, %v1602_v5 }
 0x467   : > { %1662 = vadd.xlane.f32.xlu2 %v8045_v60  ;;  %1726 = vmatmul.bf16.gmra.mxu0 %v1702_v59 }
 0x468   : > { %6619 = vpow2.f32 %v1632_v62 }
 0x469   : > { %6621 = vrcp.f32 %v1649_v54 }
 0x46b   : > { %v1587_v47 = vpop.xlane.xlu2 %1586  ;;  %v1651_v9 = vpop.xlane.xlu0 %1650 }
 0x46c   : > { %v1603_v12 = vsub.f32 %v8008_v34, %v1587_v47  ;;  %6623 = vrcp.f32 %v1651_v9  ;;  %v6143_v34 = vld [vmem:[%s7801_s3 + $0x20] sm:$0xff] }
 0x46d   : > { %1848 = vmatpush.bf16.msrb.mxu1 %v6143_v34 }
 0x46e   : > { %v8049_v57 = vpop.eup %6619  ;;  %v1634_v6 = vmul.f32 1.442695, %v1603_v12 }
 0x46f   : > { %1664 = vadd.xlane.f32.xlu0 %v8049_v57  ;;  %v6622_v25 = vpop.eup %6621 }
 0x470   : > { %6625 = vpow2.f32 %v1634_v6  ;;  %v1690_v56 = vmul.f32 %v6622_v25, %v8003_v2 }
 0x471   : > { %1849 = vmatpush.bf16.msrb.mxu1 %v6142_v26 }
 0x472   : > { %v6624_v19 = vpop.eup %6623 }
 0x473   : > { %v1691_v35 = vmul.f32 %v6624_v19, %v8010_v37  ;;  %v1653_v1 = vpop.xlane.xlu0 %1652 }
 0x474   : > { %6627 = vrcp.f32 %v1653_v1 }
 0x475   : > { %v1703_v27 = vpack.c.bf16 %v1691_v35, %v1690_v56  ;;  %1850 = vmatpush.bf16.msrb.mxu1 %v6141_v61 }
 0x476   : > { %v8054_v28 = vpop.eup %6625 }
 0x477   : > { %1666 = vadd.xlane.f32.xlu1 %v8054_v28  ;;  %1731 = vmatmul.bf16.gmra.mxu0 %v1703_v27 }
 0x479   : > { %1851 = vmatpush.bf16.msrb.mxu1 %v6140_v41 }
 0x47a   : > { %v6628_v37 = vpop.eup %6627 }
 0x47b   : > { %v1692_v38 = vmul.f32 %v6628_v37, %v8015_v40 }
 0x47d   : > { %1852 = vmatpush.bf16.msrb.mxu1 %v6139_v33 }
 0x4ba   : > { %v1655_v2 = vpop.xlane.xlu1 %1654 }
 0x4bb   : > { %6629 = vrcp.f32 %v1655_v2 }
 0x4c1   : > { %v6630_v4 = vpop.eup %6629 }
 0x4c2   : > { %v1693_v39 = vmul.f32 %v6630_v4, %v8022_v20  ;;  %v1657_v43 = vpop.xlane.xlu2 %1656 }
 0x4c3   : > { %6631 = vrcp.f32 %v1657_v43 }
 0x4c4   : > { %v1717_v50 = vpop.f32.mrf.mxu0  ;;  %v1704_v8 = vpack.c.bf16 %v1693_v39, %v1692_v38 }
 0x4c5   : > { %v1757_v49 = vmul.f32 %v1717_v50, %v7868_v10 }
 0x4c6   : > { %1736 = vmatmul.bf16.gmra.mxu0 %v1704_v8 }
 0x4c9   : > { %v6632_v51 = vpop.eup %6631 }
 0x4ca   : > { %v1659_v44 = vpop.xlane.xlu0 %1658  ;;  %v1694_v40 = vmul.f32 %v6632_v51, %v8026_v30 }
 0x4cb   : > { %6633 = vrcp.f32 %v1659_v44 }
 0x4cc   : > { %v1719_v48 = vpop.f32.mrf.mxu0 }
 0x4cd   : > { %v1758_v42 = vmul.f32 %v1719_v48, %v7878_v16 }
 0x4cf   : > { %v1773_v22 = vpack.c.bf16 %v1758_v42, %v1757_v49 }
 0x4d1   : > { %v6634_v3 = vpop.eup %6633  ;;  %1853 = vmatmul.bf16.vlgmr.msrb.gmra.mxu1 %v1773_v22 }
 0x4d2   : > { %v1695_v20 = vmul.f32 %v6634_v3, %v8032_v7  ;;  %v1661_v54 = vpop.xlane.xlu1 %1660 }
 0x4d3   : > { %6635 = vrcp.f32 %v1661_v54 }
 0x4d4   : > { %v1722_v52 = vpop.f32.mrf.mxu0  ;;  %v1705_v53 = vpack.c.bf16 %v1695_v20, %v1694_v40 }
 0x4d5   : > { %v1759_v10 = vmul.f32 %v1722_v52, %v7870_v11 }
 0x4d6   : > { %1741 = vmatmul.bf16.gmra.mxu0 %v1705_v53 }
 0x4d9   : > { %v6636_v5 = vpop.eup %6635 }
 0x4da   : > { %v1663_v58 = vpop.xlane.xlu2 %1662  ;;  %v1696_v30 = vmul.f32 %v6636_v5, %v8039_v55 }
 0x4db   : > { %6637 = vrcp.f32 %v1663_v58 }
 0x4dc   : > { %v1724_v36 = vpop.f32.mrf.mxu0 }
 0x4dd   : > { %v1760_v16 = vmul.f32 %v1724_v36, %v7885_v21 }
 0x4df   : > { %v1774_v59 = vpack.c.bf16 %v1760_v16, %v1759_v10 }
 0x4e1   : > { %v6638_v62 = vpop.eup %6637  ;;  %1858 = vmatmul.bf16.gmra.mxu1 %v1774_v59 }
 0x4e2   : > { %v1697_v7 = vmul.f32 %v6638_v62, %v8045_v60  ;;  %v1665_v12 = vpop.xlane.xlu0 %1664 }
 0x4e3   : > { %6639 = vrcp.f32 %v1665_v12 }
 0x4e4   : > { %v1727_v47 = vpop.f32.mrf.mxu0  ;;  %v1706_v9 = vpack.c.bf16 %v1697_v7, %v1696_v30 }
 0x4e5   : > { %v1761_v11 = vmul.f32 %v1727_v47, %v7872_v13 }
 0x4e6   : > { %1746 = vmatmul.bf16.gmra.mxu0 %v1706_v9 }
 0x4e9   : > { %v6640_v19 = vpop.eup %6639 }
 0x4ea   : > { %v1667_v6 = vpop.xlane.xlu1 %1666  ;;  %v1698_v55 = vmul.f32 %v6640_v19, %v8049_v57 }
 0x4eb   : > { %6641 = vrcp.f32 %v1667_v6 }
 0x4ec   : > { %v1729_v25 = vpop.f32.mrf.mxu0 }
 0x4ed   : > { %v1762_v21 = vmul.f32 %v1729_v25, %v7888_v23 }
 0x4ef   : > { %v1775_v56 = vpack.c.bf16 %v1762_v21, %v1761_v11 }
 0x4f1   : > { %v6642_v35 = vpop.eup %6641  ;;  %1863 = vmatmul.bf16.gmra.mxu1 %v1775_v56 }
 0x4f2   : > { %v1699_v60 = vmul.f32 %v6642_v35, %v8054_v28 }
 0x4f4   : > { %v1732_v27 = vpop.f32.mrf.mxu0  ;;  %v1707_v34 = vpack.c.bf16 %v1699_v60, %v1698_v55  ;;  %v7344_v60 = vmov 128.0  }
 0x4f5   : > { %v1763_v61 = vmul.f32 %v1732_v27, %v7874_v14  ;;  %6643 = vrcp.f32 %v7344_v60  ;;  %v6233_v60 = vld [vmem:[%s7806_s27 + $0x2cc] sm:$0xf0] }
 0x4f6   : > { %1751 = vmatmul.bf16.gmra.mxu0 %v1707_v34 }
 0x4fb   : > { %v6644_v27 = vpop.eup %6643 }
 0x4fc   : > { %v1734_v26 = vpop.f32.mrf.mxu0  ;;  %v1923_v34 = vmul.f32 128.0, %v6644_v27  ;;  %vm1927_vm1 = vweird.f32 %v6644_v27 }
 0x4fd   : > { %v1764_v41 = vmul.f32 %v1734_v26, %v7890_v24  ;;  %v5159_v26 = vld [vmem:[%s7806_s27 + $0x380] sm:$0xf] }
 0x4ff   : > { %v1776_v33 = vpack.c.bf16 %v1764_v41, %v1763_v61  ;;  %v6177_v61 = vld [vmem:[%s7806_s27 + $0x3bc] sm:$0xf0] }
 0x500   : > { %v5160_v41 = vor.u32 %v6177_v61, %v5159_v26  ;;  %v5257_v26 = vld [vmem:[%s7806_s27 + $0x2d0] sm:$0xf0]  ;;  %v6232_v61 = vld [vmem:[%s7806_s27 + $0x29c] sm:$0xf] }
 0x501   : > { %1868 = vmatmul.bf16.gmra.mxu1 %v1776_v33  ;;  %v6173_v33 = vld [vmem:[%s7806_s27 + $0x33c] sm:$0xf0] }
 0x502   : > { %2178 = vmatpush.bf16.msrb.mxu2 %v5160_v41 }
 0x543   : > { %v1737_v13 = vpop.f32.mrf.mxu0 }
 0x544   : > { %v1765_v1 = vmul.f32 %v1737_v13, %v7876_v15  ;;  %v1924_v13 = vsub.f32 1.0, %v1923_v34 }
 0x54b   : > { %v1739_v23 = vpop.f32.mrf.mxu0 }
 0x54c   : > { %v1766_v2 = vmul.f32 %v1739_v23, %v7894_v29 }
 0x54e   : > { %v1854_v37 = vpop.f32.mrf.mxu1  ;;  %v1777_v57 = vpack.c.bf16 %v1766_v2, %v1765_v1  ;;  %v5127_v1 = vld [vmem:[%s7806_s27 + $0x280] sm:$0xf] }
 0x54f   : > { %v6169_v2 = vld [vmem:[%s7806_s27 + $0x2bc] sm:$0xf0] }
 0x550   : > { %1873 = vmatmul.bf16.gmra.mxu1 %v1777_v57  ;;  %v5111_v57 = vld [vmem:[%s7806_s27 + $0x200] sm:$0xf] }
 0x553   : > { %v1742_v28 = vpop.f32.mrf.mxu0 }
 0x554   : > { %v1767_v39 = vmul.f32 %v1742_v28, %v7880_v17  ;;  %v6165_v28 = vld [vmem:[%s7806_s27 + $0x23c] sm:$0xf0] }
 0x556   : > { %v1856_v4 = vpop.f32.mrf.mxu1 }
 0x55b   : > { %v1744_v38 = vpop.f32.mrf.mxu0 }
 0x55c   : > { %v1768_v14 = vmul.f32 %v1744_v38, %v7897_v31  ;;  %v5112_v38 = vor.u32 %v6165_v28, %v5111_v57  ;;  %v5241_v28 = vld [vmem:[%s7806_s27 + $0x250] sm:$0xf0] }
 0x55e   : > { %v1859_v50 = vpop.f32.mrf.mxu1  ;;  %v1778_v24 = vpack.c.bf16 %v1768_v14, %v1767_v39  ;;  %v5095_v39 = vld [vmem:[%s7806_s27 + $0x180] sm:$0xf] }
 0x55f   : > { %v1894_v8 = vadd.f32 %v1859_v50, %v1854_v37  ;;  %v5128_v37 = vor.u32 %v6169_v2, %v5127_v1  ;;  %v6161_v14 = vld [vmem:[%s7806_s27 + $0x1bc] sm:$0xf0]  ;;  %v5239_v2 = vld [vmem:[%s7806_s27 + $0x210] sm:$0xf] }
 0x560   : > { %1878 = vmatmul.bf16.gmra.mxu1 %v1778_v24  ;;  %v5096_v24 = vor.u32 %v6161_v14, %v5095_v39 }
 0x563   : > { %v1747_v43 = vpop.f32.mrf.mxu0 }
 0x564   : > { %v1769_v15 = vmul.f32 %v1747_v43, %v7882_v18 }
 0x566   : > { %v1861_v44 = vpop.f32.mrf.mxu1 }
 0x567   : > { %v1895_v12 = vadd.f32 %v1861_v44, %v1856_v4 }
 0x56b   : > { %v1749_v48 = vpop.f32.mrf.mxu0 }
 0x56c   : > { %v1770_v29 = vmul.f32 %v1749_v48, %v7899_v32 }
 0x56e   : > { %v1864_v49 = vpop.f32.mrf.mxu1  ;;  %v1779_v42 = vpack.c.bf16 %v1770_v29, %v1769_v15 }
 0x570   : > { %1883 = vmatmul.bf16.gmra.mxu1 %v1779_v42 }
 0x573   : > { %v1752_v51 = vpop.f32.mrf.mxu0 }
 0x574   : > { %v1771_v17 = vmul.f32 %v1752_v51, %v7910_v45  ;;  %v6573_v45 = vld [vmem:[%s970_s20] ss:$0 sm:$0xff] }
 0x575   : > { %v5079_v51 = vld [vmem:[%s7806_s27 + $0x100] sm:$0xf] }
 0x576   : > { %v1866_v22 = vpop.f32.mrf.mxu1 }
 0x57b   : > { %v1754_v3 = vpop.f32.mrf.mxu0 }
 0x57c   : > { %v1772_v31 = vmul.f32 %v1754_v3, %v7912_v46 }
 0x57e   : > { %v1869_v40 = vpop.f32.mrf.mxu1  ;;  %v1780_v20 = vpack.c.bf16 %v1772_v31, %v1771_v17  ;;  %v5063_v17 = vld [vmem:[%s7806_s27 + $0x80] sm:$0xf] }
 0x57f   : > { %v1896_v52 = vadd.f32 %v1869_v40, %v1864_v49  ;;  %v6153_v31 = vld [vmem:[%s7806_s27 + $0xbc] sm:$0xf0] }
 0x580   : > { %1888 = vmatmul.bf16.gmra.mxu1 %v1780_v20  ;;  %v5064_v40 = vor.u32 %v6153_v31, %v5063_v17  ;;  %v6240_v20 = vld [vmem:[%s7806_s27 + $0x39c] sm:$0xf] }
 0x581   : > { %v1902_v53 = vadd.f32 %v1896_v52, %v1894_v8  ;;  %v5297_v52 = vld [vmem:[%s7806_s27 + $0x3d8] sm:$0xf0] }
 0x586   : > { %v1871_v54 = vpop.f32.mrf.mxu1 }
 0x587   : > { %v1897_v7 = vadd.f32 %v1871_v54, %v1866_v22  ;;  %v6157_v22 = vld [vmem:[%s7806_s27 + $0x13c] sm:$0xf0]  ;;  %v5300_v54 = vor.u32 %v6240_v20, %v5297_v52  ;;  %v5097_v20 = vld [vmem:[%s7806_s27 + $0x1c0] sm:$0xf0] }
 0x588   : > { %v5080_v3 = vor.u32 %v6157_v22, %v5079_v51  ;;  %v5225_v51 = vld [vmem:[%s7806_s27 + $0x1d0] sm:$0xf0]  ;;  %v6224_v22 = vld [vmem:[%s7806_s27 + $0x19c] sm:$0xf] }
 0x589   : > { %v1903_v21 = vadd.f32 %v1897_v7, %v1895_v12  ;;  %2554 = vmatpush.bf16.msrb.mxu3 %v5300_v54  ;;  %v6237_v7 = vld [vmem:[%s7806_s27 + $0x34c] sm:$0xf0]  ;;  %v5273_v12 = vld [vmem:[%s7806_s27 + $0x350] sm:$0xf0] }
 0x58a   : > { %v6221_v54 = vld [vmem:[%s7806_s27 + $0x14c] sm:$0xf0] }
 0x5cd   : > { %v1874_v18 = vpop.f32.mrf.mxu1 }
 0x5d5   : > { %v1876_v58 = vpop.f32.mrf.mxu1 }
 0x5dd   : > { %v1879_v32 = vpop.f32.mrf.mxu1 }
 0x5de   : > { %v1898_v59 = vadd.f32 %v1879_v32, %v1874_v18  ;;  %v6241_v18 = vld [vmem:[%s7806_s27 + $0x3cc] sm:$0xf0]  ;;  %v5289_v32 = vld [vmem:[%s7806_s27 + $0x3d0] sm:$0xf0] }
 0x5e5   : > { %v1881_v36 = vpop.f32.mrf.mxu1 }
 0x5e6   : > { %v1899_v6 = vadd.f32 %v1881_v36, %v1876_v58  ;;  %v6239_v58 = vld [vmem:[%s7806_s27 + $0x394] sm:$0xf] }
 0x5ed   : > { %v1884_v10 = vpop.f32.mrf.mxu1 }
 0x5f5   : > { %v1886_v16 = vpop.f32.mrf.mxu1 }
 0x5fd   : > { %v1889_v5 = vpop.f32.mrf.mxu1 }
 0x5fe   : > { %v1900_v62 = vadd.f32 %v1889_v5, %v1884_v10  ;;  %v5292_v10 = vor.u32 %v6239_v58, %v5289_v32  ;;  %v6149_v5 = vld [vmem:[%s7806_s27 + $0x3c] sm:$0xf0]  ;;  %v5209_v32 = vld [vmem:[%s7806_s27 + $0x150] sm:$0xf0] }
 0x600   : > { %v1904_v30 = vadd.f32 %v1900_v62, %v1898_v59  ;;  %v6175_v59 = vld [vmem:[%s7806_s27 + $0x384] sm:$0xf]  ;;  %2526 = vmatpush.bf16.msra.mxu1 %v5292_v10  ;;  %v5217_v10 = vld [vmem:[%s7806_s27 + $0x158] sm:$0xf0] }
 0x602   : > { %v1906_v46 = vadd.f32 %v1904_v30, %v1902_v53  ;;  %v5287_v53 = vld [vmem:[%s7806_s27 + $0x390] sm:$0xf]  ;;  %v5161_v30 = vld [vmem:[%s7806_s27 + $0x3c0] sm:$0xf0] }
 0x603   : > { %v5288_v36 = vor.u32 %v6241_v18, %v5287_v53  ;;  %v5207_v53 = vld [vmem:[%s7806_s27 + $0x110] sm:$0xf]  ;;  %v6219_v18 = vld [vmem:[%s7806_s27 + $0x114] sm:$0xf] }
 0x604   : > { %v1912_v47 = vadd.f32 %v6573_v45, %v1906_v46  ;;  %v5271_v46 = vld [vmem:[%s7806_s27 + $0x310] sm:$0xf]  ;;  %v5208_v58 = vor.u32 %v6221_v54, %v5207_v53  ;;  %v5167_v54 = vld [vmem:[%s7806_s27 + $0x388] sm:$0xf] }
 0x605   : > { %v1891_v9 = vpop.f32.mrf.mxu1  ;;  %2512 = vmatpush.bf16.msra.mxu0 %v5288_v36  ;;  %v6220_v36 = vld [vmem:[%s7806_s27 + $0x11c] sm:$0xf] }
 0x606   : > { %v1901_v25 = vadd.f32 %v1891_v9, %v1886_v16  ;;  %v1914_v11 = vadd.f32 %v1912_v47, %v7853_v63  ;;  %v5143_v63 = vld [vmem:[%s7806_s27 + $0x300] sm:$0xf]  ;;  %v6235_v47 = vld [vmem:[%s7806_s27 + $0x314] sm:$0xf]  ;;  %v5272_v9 = vor.u32 %v6237_v7, %v5271_v46  ;;  %v5191_v46 = vld [vmem:[%s7806_s27 + $0x90] sm:$0xf] }
 0x607   : > { %v5144_v23 = vor.u32 %v6173_v33, %v5143_v63  ;;  %v5047_v16 = vld [vmem:[%s7806_s27] sm:$0xf]  ;;  %v5265_v63 = vld [vmem:[%s7806_s27 + $0x2d8] sm:$0xf0]  ;;  %v6217_v7 = vld [vmem:[%s7806_s27 + $0xcc] sm:$0xf0] }
 0x608   : > { %v1905_v19 = vadd.f32 %v1901_v25, %v1899_v6  ;;  %1918 = vadd.xlane.f32.xlu2 %v1914_v11  ;;  %v5048_v62 = vor.u32 %v6149_v5, %v5047_v16  ;;  %v6236_v6 = vld [vmem:[%s7806_s27 + $0x31c] sm:$0xf]  ;;  %v5268_v33 = vor.u32 %v6232_v61, %v5265_v63  ;;  %v5212_v16 = vor.u32 %v6219_v18, %v5209_v32  ;;  %v5177_v63 = vld [vmem:[%s7806_s27 + $0x50] sm:$0xf0]  ;;  %v6178_v18 = vld [vmem:[%s7806_s27 + $0x3c4] sm:$0xf0] }
 0x609   : > { %2179 = vmatpush.bf16.msrb.mxu2 %v5144_v23  ;;  %v5281_v25 = vld [vmem:[%s7806_s27 + $0x358] sm:$0xf0]  ;;  %2513 = vmatpush.bf16.msra.mxu0 %v5272_v9  ;;  %v5129_v23 = vld [vmem:[%s7806_s27 + $0x2c0] sm:$0xf0]  ;;  %v5220_v5 = vor.u32 %v6220_v36, %v5217_v10  ;;  %v5151_v10 = vld [vmem:[%s7806_s27 + $0x308] sm:$0xf] }
 0x60a   : > { %v1907_v56 = vadd.f32 %v1905_v19, %v1903_v21  ;;  %v5284_v21 = vor.u32 %v6236_v6, %v5281_v25  ;;  %v6171_v19 = vld [vmem:[%s7806_s27 + $0x304] sm:$0xf]  ;;  %v5193_v6 = vld [vmem:[%s7806_s27 + $0xd0] sm:$0xf0]  ;;  %v6216_v25 = vld [vmem:[%s7806_s27 + $0x9c] sm:$0xf] }
 0x60c   : > { %v1913_v35 = vadd.f32 %v6573_v45, %v1907_v56  ;;  %v5164_v45 = vor.u32 %v6175_v59, %v5161_v30  ;;  %v5145_v56 = vld [vmem:[%s7806_s27 + $0x340] sm:$0xf0]  ;;  %2555 = vmatpush.bf16.msrb.mxu3 %v5284_v21 }
 0x60d   : > { %2180 = vmatpush.bf16.msrb.mxu2 %v5128_v37  ;;  %v6227_v37 = vld [vmem:[%s7806_s27 + $0x214] sm:$0xf]  ;;  %v6155_v59 = vld [vmem:[%s7806_s27 + $0x104] sm:$0xf] }
 0x60e   : > { %v1915_v55 = vadd.f32 %v1913_v35, %v7855_v0  ;;  %v1925_v0 = vmul.f32 %v6644_v27, %v1924_v13  ;;  %v5148_v35 = vor.u32 %v6171_v19, %v5145_v56  ;;  %v6167_v13 = vld [vmem:[%s7806_s27 + $0x284] sm:$0xf]  ;;  %v5244_v39 = vor.u32 %v6227_v37, %v5241_v28 }
 0x60f   : > { %v5132_v1 = vor.u32 %v6167_v13, %v5129_v23  ;;  %v6151_v56 = vld [vmem:[%s7806_s27 + $0x84] sm:$0xf] }
 0x610   : > { %1920 = vadd.xlane.f32.xlu0 %v1915_v55  ;;  %v1926_v4 = vadd.f32 %v6644_v27, %v1925_v0  ;;  %v6229_v0 = vld [vmem:[%s7806_s27 + $0x24c] sm:$0xf0]  ;;  %2556 = vmatpush.bf16.msrb.mxu3 %v5268_v33  ;;  %v5185_v33 = vld [vmem:[%s7806_s27 + $0x58] sm:$0xf0] }
 0x611   : > { %2181 = vmatpush.bf16.msrb.mxu2 %v5112_v38  ;;  %v5240_v57 = vor.u32 %v6229_v0, %v5239_v2  ;;  %v5249_v38 = vld [vmem:[%s7806_s27 + $0x258] sm:$0xf0]  ;;  %v5049_v2 = vld [vmem:[%s7806_s27 + $0x40] sm:$0xf0] }
 0x612   : > { %v8100_v50 = vsel %vm1927_vm1, %v6644_v27, %v1926_v4  ;;  %v6231_v27 = vld [vmem:[%s7806_s27 + $0x294] sm:$0xf]  ;;  %v6228_v4 = vld [vmem:[%s7806_s27 + $0x21c] sm:$0xf] }
 0x613   : > { %v5260_v41 = vor.u32 %v6231_v27, %v5257_v26  ;;  %v5252_v14 = vor.u32 %v6228_v4, %v5249_v38  ;;  %v5175_v27 = vld [vmem:[%s7806_s27 + $0x10] sm:$0xf]  ;;  %v6211_v26 = vld [vmem:[%s7806_s27 + $0x14] sm:$0xf] }
 0x614   : > { %v5180_v13 = vor.u32 %v6211_v26, %v5177_v63  ;;  %v6172_v26 = vld [vmem:[%s7806_s27 + $0x30c] sm:$0xf] }
 0x615   : > { %2182 = vmatpush.bf16.msrb.mxu2 %v5096_v24  ;;  %v6163_v24 = vld [vmem:[%s7806_s27 + $0x204] sm:$0xf]  ;;  %2557 = vmatpush.bf16.msrb.mxu3 %v5252_v14 }
 0x619   : > { %2183 = vmatpush.bf16.msrb.mxu2 %v5080_v3  ;;  %v5233_v3 = vld [vmem:[%s7806_s27 + $0x1d8] sm:$0xf0] }
 0x61a   : > { %v5236_v31 = vor.u32 %v6224_v22, %v5233_v3  ;;  %v6574_v22 = vld [vmem:[%s979_s0] ss:$0 sm:$0xff] }
 0x61c   : > { %2558 = vmatpush.bf16.msrb.mxu3 %v5236_v31 }
 0x61d   : > { %2184 = vmatpush.bf16.msrb.mxu2 %v5064_v40  ;;  %v6159_v40 = vld [vmem:[%s7806_s27 + $0x184] sm:$0xf] }
 0x61e   : > { %v5100_v52 = vor.u32 %v6159_v40, %v5097_v20  ;;  %v6575_v40 = vld [vmem:[%s988_s1] ss:$0 sm:$0xff] }
 0x620   : > { %2559 = vmatpush.bf16.msrb.mxu3 %v5220_v5  ;;  %v5135_v5 = vld [vmem:[%s7806_s27 + $0x288] sm:$0xf] }
 0x621   : > { %2185 = vmatpush.bf16.msrb.mxu2 %v5048_v62  ;;  %v5081_v62 = vld [vmem:[%s7806_s27 + $0x140] sm:$0xf0] }
 0x622   : > { %v5084_v30 = vor.u32 %v6155_v59, %v5081_v62  ;;  %v6170_v59 = vld [vmem:[%s7806_s27 + $0x2c4] sm:$0xf0] }
 0x623   : > { %v5136_v62 = vor.u32 %v6170_v59, %v5135_v5  ;;  %v6256_v5 = vld [vmem:[%s7810_s30 + $0x168] sm:$0xff]  ;;  %v6273_v59 = vld [vmem:[%s7810_s30 + $0x1f0] sm:$0xff] }
 0x625   : > { %2192 = vmatpush.bf16.msra.mxu2 %v5164_v45 }
 0x629   : > { %2193 = vmatpush.bf16.msra.mxu2 %v5148_v35  ;;  %v5065_v35 = vld [vmem:[%s7806_s27 + $0xc0] sm:$0xf0] }
 0x62d   : > { %2194 = vmatpush.bf16.msra.mxu2 %v5132_v1  ;;  %v6147_v1 = vld [vmem:[%s7806_s27 + $0x4] sm:$0xf] }
 0x62e   : > { %v5052_v0 = vor.u32 %v6147_v1, %v5049_v2  ;;  %v5121_v1 = vld [vmem:[%s7806_s27 + $0x248] sm:$0xf0] }
 0x67b   : > { %v1919_v8 = vpop.xlane.xlu2 %1918 }
 0x67c   : > { %v1929_v43 = vmul.f32 %v8100_v50, %v1919_v8  ;;  %v5113_v8 = vld [vmem:[%s7806_s27 + $0x240] sm:$0xf0] }
 0x67e   : > { %v8103_v44 = vsub.f32 %v1914_v11, %v1929_v43  ;;  %v5276_v11 = vor.u32 %v6235_v47, %v5273_v12  ;;  %v5116_v43 = vor.u32 %v6163_v24, %v5113_v8  ;;  %v6215_v47 = vld [vmem:[%s7806_s27 + $0x94] sm:$0xf]  ;;  %v5192_v12 = vor.u32 %v6217_v7, %v5191_v46  ;;  %v5103_v7 = vld [vmem:[%s7806_s27 + $0x188] sm:$0xf] }
 0x67f   : > { %v5196_v21 = vor.u32 %v6215_v47, %v5193_v6  ;;  %v6162_v47 = vld [vmem:[%s7806_s27 + $0x1c4] sm:$0xf0] }
 0x680   : > { %v1933_v48 = vmul.f32 %v8103_v44, %v8103_v44  ;;  %2527 = vmatpush.bf16.msra.mxu1 %v5276_v11  ;;  %2195 = vmatpush.bf16.msra.mxu2 %v5116_v43  ;;  %v5201_v11 = vld [vmem:[%s7806_s27 + $0xd8] sm:$0xf0]  ;;  %v6158_v6 = vld [vmem:[%s7806_s27 + $0x144] sm:$0xf0] }
 0x681   : > { %v5204_v19 = vor.u32 %v6216_v25, %v5201_v11  ;;  %v5071_v11 = vld [vmem:[%s7806_s27 + $0x88] sm:$0xf] }
 0x682   : > { %1935 = vadd.xlane.f32.xlu1 %v1933_v48  ;;  %v5223_v48 = vld [vmem:[%s7806_s27 + $0x190] sm:$0xf] }
 0x683   : > { %v1921_v15 = vpop.xlane.xlu0 %1920  ;;  %2560 = vmatpush.bf16.msrb.mxu3 %v5204_v19 }
 0x684   : > { %v1930_v29 = vmul.f32 %v8100_v50, %v1921_v15  ;;  %2528 = vmatpush.bf16.msra.mxu1 %v5260_v41  ;;  %v6225_v15 = vld [vmem:[%s7806_s27 + $0x1cc] sm:$0xf0]  ;;  %2196 = vmatpush.bf16.msra.mxu2 %v5100_v52  ;;  %v6212_v41 = vld [vmem:[%s7806_s27 + $0x1c] sm:$0xf] }
 0x685   : > { %v5188_v23 = vor.u32 %v6212_v41, %v5185_v33  ;;  %v6168_v41 = vld [vmem:[%s7806_s27 + $0x28c] sm:$0xf] }
 0x686   : > { %v8108_v49 = vsub.f32 %v1915_v55, %v1930_v29  ;;  %v5255_v55 = vld [vmem:[%s7806_s27 + $0x290] sm:$0xf]  ;;  %v6223_v29 = vld [vmem:[%s7806_s27 + $0x194] sm:$0xf]  ;;  %v5137_v33 = vld [vmem:[%s7806_s27 + $0x2c8] sm:$0xf0] }
 0x687   : > { %v5256_v34 = vor.u32 %v6233_v60, %v5255_v55  ;;  %v5228_v17 = vor.u32 %v6223_v29, %v5225_v51  ;;  %v5068_v60 = vor.u32 %v6151_v56, %v5065_v35  ;;  %2561 = vmatpush.bf16.msrb.mxu3 %v5188_v23  ;;  %v5055_v56 = vld [vmem:[%s7806_s27 + $0x8] sm:$0xf]  ;;  %v6164_v23 = vld [vmem:[%s7806_s27 + $0x20c] sm:$0xf] }
 0x688   : > { %v1934_v42 = vmul.f32 %v8108_v49, %v8108_v49  ;;  %2529 = vmatpush.bf16.msra.mxu1 %v5244_v39  ;;  %2197 = vmatpush.bf16.msra.mxu2 %v5084_v30  ;;  %v5119_v30 = vld [vmem:[%s7806_s27 + $0x208] sm:$0xf]  ;;  %v5124_v2 = vor.u32 %v6164_v23, %v5121_v1  ;;  %v6194_v23 = vld [vmem:[%s7810_s30 + $0x78] sm:$0xff] }
 0x689   : > { %2514 = vmatpush.bf16.msra.mxu0 %v5256_v34  ;;  %v6213_v34 = vld [vmem:[%s7806_s27 + $0x4c] sm:$0xf0]  ;;  %v6150_v35 = vld [vmem:[%s7806_s27 + $0x44] sm:$0xf0] }
 0x68a   : > { %1937 = vadd.xlane.f32.xlu2 %v1934_v42  ;;  %v5224_v42 = vor.u32 %v6225_v15, %v5223_v48  ;;  %v5176_v61 = vor.u32 %v6213_v34, %v5175_v27  ;;  %v5056_v27 = vor.u32 %v6150_v35, %v5055_v56  ;;  %v5199_v56 = vld [vmem:[%s7806_s27 + $0x98] sm:$0xf]  ;;  %v6184_v1 = vld [vmem:[%s7810_s30 + $0x28] sm:$0xff] }
 0x68b   : > { %v6218_v35 = vld [vmem:[%s7806_s27 + $0xd4] sm:$0xf0] }
 0x68c   : > { %2530 = vmatpush.bf16.msra.mxu1 %v5228_v17  ;;  %2198 = vmatpush.bf16.msra.mxu2 %v5068_v60  ;;  %v5169_v60 = vld [vmem:[%s7806_s27 + $0x3c8] sm:$0xf0] }
 0x68d   : > { %2515 = vmatpush.bf16.msra.mxu0 %v5240_v57 }
 0x690   : > { %2531 = vmatpush.bf16.msra.mxu1 %v5212_v16  ;;  %2199 = vmatpush.bf16.msra.mxu2 %v5052_v0  ;;  %v6174_v16 = vld [vmem:[%s7806_s27 + $0x344] sm:$0xf0]  ;;  %v6160_v0 = vld [vmem:[%s7806_s27 + $0x18c] sm:$0xf] }
 0x691   : > { %2516 = vmatpush.bf16.msra.mxu0 %v5224_v42 }
 0x694   : > { %2532 = vmatpush.bf16.msra.mxu1 %v5196_v21  ;;  %v6154_v21 = vld [vmem:[%s7806_s27 + $0xc4] sm:$0xf0] }
 0x695   : > { %2517 = vmatpush.bf16.msra.mxu0 %v5208_v58  ;;  %v5072_v19 = vor.u32 %v6154_v21, %v5071_v11  ;;  %v6254_v11 = vld [vmem:[%s7810_s30 + $0x158] sm:$0xff]  ;;  %v6244_v21 = vld [vmem:[%s7810_s30 + $0x108] sm:$0xff] }
 0x698   : > { %2533 = vmatpush.bf16.msra.mxu1 %v5180_v13  ;;  %v5140_v13 = vor.u32 %v6168_v41, %v5137_v33  ;;  %v6185_v41 = vld [vmem:[%s7810_s30 + $0x30] sm:$0xff] }
 0x699   : > { %2518 = vmatpush.bf16.msra.mxu0 %v5192_v12  ;;  %v5087_v12 = vld [vmem:[%s7806_s27 + $0x108] sm:$0xf] }
 0x69a   : > { %v5088_v25 = vor.u32 %v6158_v6, %v5087_v12  ;;  %v5215_v6 = vld [vmem:[%s7806_s27 + $0x118] sm:$0xf] }
 0x69d   : > { %2519 = vmatpush.bf16.msra.mxu0 %v5176_v61  ;;  %v5153_v61 = vld [vmem:[%s7806_s27 + $0x348] sm:$0xf0] }
 0x69e   : > { %v5156_v63 = vor.u32 %v6172_v26, %v5153_v61  ;;  %v5183_v26 = vld [vmem:[%s7806_s27 + $0x18] sm:$0xf] }
 0x69f   : > { %v6214_v61 = vld [vmem:[%s7806_s27 + $0x54] sm:$0xf0] }
 0x6a0   : > { %v5184_v33 = vor.u32 %v6214_v61, %v5183_v26  ;;  %v8314_v26 = vld [vmem:[%s7808_s6] sm:$0xf] }
 0x6f5   : > { %v1936_v45 = vpop.xlane.xlu1 %1935 }
 0x6f6   : > { %v1939_v9 = vmul.f32 %v1936_v45, %v8100_v50  ;;  %v6166_v45 = vld [vmem:[%s7806_s27 + $0x244] sm:$0xf0] }
 0x6f7   : > { %v5120_v46 = vor.u32 %v6166_v45, %v5119_v30  ;;  %v5231_v45 = vld [vmem:[%s7806_s27 + $0x198] sm:$0xf] }
 0x6f8   : > { %v1941_v55 = vadd.f32 1e-05, %v1939_v9  ;;  %v5104_v9 = vor.u32 %v6162_v47, %v5103_v7  ;;  %v6255_v7 = vld [vmem:[%s7810_s30 + $0x160] sm:$0xff]  ;;  %v6272_v47 = vld [vmem:[%s7810_s30 + $0x1e8] sm:$0xff] }
 0x6fa   : > { %6645 = vrsqrt.f32 %v1941_v55  ;;  %vm1949_vm3 = vweird.f32 %v1941_v55 }
 0x6fd   : > { %v1938_v37 = vpop.xlane.xlu2 %1937 }
 0x6fe   : > { %v1940_v57 = vmul.f32 %v1938_v37, %v8100_v50  ;;  %v5105_v37 = vld [vmem:[%s7806_s27 + $0x1c8] sm:$0xf0] }
 0x700   : > { %v6646_v28 = vpop.eup %6645  ;;  %v1942_v4 = vadd.f32 1e-05, %v1940_v57  ;;  %v5108_v57 = vor.u32 %v6160_v0, %v5105_v37  ;;  %v6183_v0 = vld [vmem:[%s7810_s30 + $0x20] sm:$0xff]  ;;  %v6192_v37 = vld [vmem:[%s7810_s30 + $0x68] sm:$0xff] }
 0x701   : > { %v1944_v38 = vmul.f32 %v6646_v28, %v1941_v55  ;;  %vm1950_vm2 = vweird.f32 %v6646_v28  ;;  %v6176_v55 = vld [vmem:[%s7806_s27 + $0x38c] sm:$0xf] }
 0x702   : > { %6647 = vrsqrt.f32 %v1942_v4  ;;  %vm1951_vm4 = vmor %vm1949_vm3, %vm1950_vm2  ;;  %vm1959_vm6 = vweird.f32 %v1942_v4  ;;  %v5172_v34 = vor.u32 %v6176_v55, %v5169_v60  ;;  %v6253_v55 = vld [vmem:[%s7810_s30 + $0x150] sm:$0xff]  ;;  %v6243_v60 = vld [vmem:[%s7810_s30 + $0x100] sm:$0xff] }
 0x703   : > { %v1945_v39 = vmul.f32 %v6646_v28, %v1944_v38 }
 0x705   : > { %v1946_v14 = vmul.f32 0.5, %v1945_v39  ;;  %v6152_v39 = vld [vmem:[%s7806_s27 + $0x8c] sm:$0xf] }
 0x707   : > { %v1947_v24 = vsub.f32 1.5, %v1946_v14  ;;  %v5073_v14 = vld [vmem:[%s7806_s27 + $0xc8] sm:$0xf0] }
 0x708   : > { %v6648_v8 = vpop.eup %6647 }
 0x709   : > { %v1948_v43 = vmul.f32 %v6646_v28, %v1947_v24  ;;  %v1954_v48 = vmul.f32 %v6648_v8, %v1942_v4  ;;  %vm1960_vm5 = vweird.f32 %v6648_v8  ;;  %v5089_v4 = vld [vmem:[%s7806_s27 + $0x148] sm:$0xf0]  ;;  %v5076_v24 = vor.u32 %v6152_v39, %v5073_v14  ;;  %v6181_v39 = vld [vmem:[%s7810_s30 + $0x10] sm:$0xff]  ;;  %v6190_v14 = vld [vmem:[%s7810_s30 + $0x58] sm:$0xff] }
 0x70a   : > { %vm1961_vm7 = vmor %vm1959_vm6, %vm1960_vm5 }
 0x70b   : > { %v1955_v15 = vmul.f32 %v6648_v8, %v1954_v48  ;;  %v1952_v29 = vsel %vm1951_vm4, %v6646_v28, %v1948_v43  ;;  %v6156_v28 = vld [vmem:[%s7806_s27 + $0x10c] sm:$0xf]  ;;  %v6250_v48 = vld [vmem:[%s7810_s30 + $0x138] sm:$0xff] }
 0x70c   : > { %v1963_v3 = vmul.f32 %v1952_v29, %v8103_v44  ;;  %v5168_v44 = vor.u32 %v6178_v18, %v5167_v54  ;;  %v5092_v38 = vor.u32 %v6156_v28, %v5089_v4  ;;  %v5057_v43 = vld [vmem:[%s7806_s27 + $0x48] sm:$0xf0]  ;;  %v6242_v29 = vld [vmem:[%s7806_s27 + $0x3d4] sm:$0xf0]  ;;  %2836 = vmatpush.bf16.msrb.mxu0 %v6250_v48  ;;  %v6257_v54 = vld [vmem:[%s7810_s30 + $0x170] sm:$0xff] }
 0x70d   : > { %v1956_v42 = vmul.f32 0.5, %v1955_v15  ;;  %v5295_v15 = vld [vmem:[%s7806_s27 + $0x398] sm:$0xf]  ;;  %v6247_v18 = vld [vmem:[%s7810_s30 + $0x120] sm:$0xff]  ;;  %v6268_v48 = vld [vmem:[%s7810_s30 + $0x1c8] sm:$0xff] }
 0x70e   : > { %v1968_v20 = vmul.f32 %v6574_v22, %v1963_v3  ;;  %v5279_v3 = vld [vmem:[%s7806_s27 + $0x318] sm:$0xf]  ;;  %v6191_v4 = vld [vmem:[%s7810_s30 + $0x60] sm:$0xff] }
 0x70f   : > { %v1957_v51 = vsub.f32 1.5, %v1956_v42  ;;  %v6182_v28 = vld [vmem:[%s7810_s30 + $0x18] sm:$0xff] }
 0x710   : > { %v8192_v58 = vadd.f32 %v6575_v40, %v1968_v20 }
 0x711   : > { %v1958_v17 = vmul.f32 %v6648_v8, %v1957_v51  ;;  %v5296_v51 = vor.u32 %v6242_v29, %v5295_v15  ;;  %v6179_v15 = vld [vmem:[%s7810_s30] sm:$0xff]  ;;  %v6188_v29 = vld [vmem:[%s7810_s30 + $0x48] sm:$0xff] }
 0x713   : > { %v1962_v31 = vsel %vm1961_vm7, %v6648_v8, %v1958_v17  ;;  %v6148_v8 = vld [vmem:[%s7806_s27 + $0xc] sm:$0xf]  ;;  %v6238_v17 = vld [vmem:[%s7806_s27 + $0x354] sm:$0xf0] }
 0x714   : > { %v1964_v52 = vmul.f32 %v1962_v31, %v8108_v49  ;;  %v5152_v49 = vor.u32 %v6174_v16, %v5151_v10  ;;  %v5060_v42 = vor.u32 %v6148_v8, %v5057_v43  ;;  %v6258_v31 = vld [vmem:[%s7810_s30 + $0x178] sm:$0xff]  ;;  %v5280_v20 = vor.u32 %v6238_v17, %v5279_v3  ;;  %v6180_v8 = vld [vmem:[%s7810_s30 + $0x8] sm:$0xff]  ;;  %v6189_v43 = vld [vmem:[%s7810_s30 + $0x50] sm:$0xff] }
 0x715   : > { %2850 = vmatpush.bf16.msrb.mxu1 %v6258_v31  ;;  %v5247_v16 = vld [vmem:[%s7806_s27 + $0x218] sm:$0xf] }
 0x716   : > { %v1969_v53 = vmul.f32 %v6574_v22, %v1964_v52  ;;  %v6249_v22 = vld [vmem:[%s7810_s30 + $0x130] sm:$0xff]  ;;  %v5263_v52 = vld [vmem:[%s7806_s27 + $0x298] sm:$0xf] }
 0x717   : > { %2837 = vmatpush.bf16.msrb.mxu0 %v6249_v22  ;;  %v8295_v22 = vld [vmem:[%s7808_s6 + $0x4] sm:$0xf] }
 0x718   : > { %v8194_v32 = vadd.f32 %v6575_v40, %v1969_v53  ;;  %v6248_v40 = vld [vmem:[%s7810_s30 + $0x128] sm:$0xff]  ;;  %v6234_v53 = vld [vmem:[%s7806_s27 + $0x2d4] sm:$0xf0]  ;;  %v2344_v31 = vperm.slane %v8295_v22, 0 }
 0x719   : > { %v5264_v10 = vor.u32 %v6234_v53, %v5263_v52  ;;  %2851 = vmatpush.bf16.msrb.mxu1 %v6257_v54 }
 0x71a   : > { %v8198_v36 = vpack.c.bf16 %v8194_v32, %v8192_v58 }
 0x71b   : > { %2838 = vmatpush.bf16.msrb.mxu0 %v6248_v40  ;;  %v2345_v40 = vperm.slane %v8295_v22, 1 }
 0x71c   : > { %2186 = vmatmul.bf16.vlgmr.msrb.gmra.mxu2 %v8198_v36  ;;  %2520 = vmatmul.bf16.vlgmr.msra.gmra.mxu0 %v8198_v36 }
 0x71d   : > { %2206 = vmatpush.bf16.msrb.mxu2 %v5168_v44  ;;  %2534 = vmatmul.bf16.vlgmr.msra.gmra.mxu1 %v8198_v36  ;;  %v6274_v44 = vld [vmem:[%s7810_s30 + $0x1f8] sm:$0xff] }
 0x71e   : > { %2562 = vmatmul.bf16.vlgmr.msrb.gmra.mxu3 %v8198_v36  ;;  %2852 = vmatpush.bf16.msrb.mxu1 %v6256_v5  ;;  %v6305_v5 = vld [vmem:[%s7806_s27 + $0x3dc] sm:$0xf0] }
 0x71f   : > { %2878 = vmatpush.bf16.msra.mxu3 %v6274_v44  ;;  %2839 = vmatpush.bf16.msrb.mxu0 %v6247_v18 }
 0x721   : > { %2207 = vmatpush.bf16.msrb.mxu2 %v5152_v49  ;;  %v6230_v49 = vld [vmem:[%s7806_s27 + $0x254] sm:$0xf0] }
 0x722   : > { %v5248_v30 = vor.u32 %v6230_v49, %v5247_v16  ;;  %2853 = vmatpush.bf16.msrb.mxu1 %v6255_v7  ;;  %v5671_v49 = vld [vmem:[%s7806_s27 + $0x3a0] sm:$0xf]  ;;  %v2347_v7 = vperm.slane %v8295_v22, 3 }
 0x723   : > { %2879 = vmatpush.bf16.msra.mxu3 %v6273_v59  ;;  %v6209_v59 = vld [vmem:[%s7810_s30 + $0xf0] sm:$0xff] }
 0x725   : > { %2208 = vmatpush.bf16.msrb.mxu2 %v5136_v62  ;;  %v6246_v62 = vld [vmem:[%s7810_s30 + $0x118] sm:$0xff] }
 0x726   : > { %2840 = vmatpush.bf16.msrb.mxu0 %v6246_v62  ;;  %2854 = vmatpush.bf16.msrb.mxu1 %v6254_v11 }
 0x727   : > { %2880 = vmatpush.bf16.msra.mxu3 %v6272_v47 }
 0x729   : > { %2209 = vmatpush.bf16.msrb.mxu2 %v5120_v46  ;;  %v6226_v46 = vld [vmem:[%s7806_s27 + $0x1d4] sm:$0xf0] }
 0x72a   : > { %v5232_v12 = vor.u32 %v6226_v46, %v5231_v45  ;;  %2855 = vmatpush.bf16.msrb.mxu1 %v6253_v55  ;;  %v5673_v45 = vld [vmem:[%s7806_s27 + $0x3e0] sm:$0xf0] }
 0x72c   : > { %2200 = vmatmul.bf16.vlgmr.msra.gmra.mxu2 %v8198_v36 }
 0x72d   : > { %2210 = vmatpush.bf16.msrb.mxu2 %v5104_v9  ;;  %v6245_v9 = vld [vmem:[%s7810_s30 + $0x110] sm:$0xff] }
 0x72e   : > { %2841 = vmatpush.bf16.msrb.mxu0 %v6245_v9 }
 0x731   : > { %2211 = vmatpush.bf16.msrb.mxu2 %v5088_v25  ;;  %v6222_v25 = vld [vmem:[%s7806_s27 + $0x154] sm:$0xf0] }
 0x732   : > { %2842 = vmatpush.bf16.msrb.mxu0 %v6244_v21  ;;  %v5655_v21 = vld [vmem:[%s7806_s27 + $0x320] sm:$0xf] }
 0x735   : > { %2212 = vmatpush.bf16.msrb.mxu2 %v5072_v19  ;;  %v5216_v19 = vor.u32 %v6222_v25, %v5215_v6  ;;  %v5672_v6 = vor.u32 %v6305_v5, %v5671_v49  ;;  %v6208_v25 = vld [vmem:[%s7810_s30 + $0xe8] sm:$0xff] }
 0x736   : > { %2843 = vmatpush.bf16.msrb.mxu0 %v6243_v60  ;;  %v6299_v60 = vld [vmem:[%s7806_s27 + $0x324] sm:$0xf]  ;;  %v6204_v5 = vld [vmem:[%s7810_s30 + $0xc8] sm:$0xff] }
 0x739   : > { %2213 = vmatpush.bf16.msrb.mxu2 %v5056_v27  ;;  %v6186_v27 = vld [vmem:[%s7810_s30 + $0x38] sm:$0xff] }
 0x73a   : > { %3084 = vmatpush.bf16.msra.mxu0 %v6186_v27  ;;  %v5657_v27 = vld [vmem:[%s7806_s27 + $0x360] sm:$0xf0] }
 0x73c   : > { %2214 = vmatmul.bf16.vlgmr.msrb.gmra.mxu2 %v8198_v36 }
 0x73d   : > { %2220 = vmatpush.bf16.msra.mxu2 %v5172_v34  ;;  %v5200_v34 = vor.u32 %v6218_v35, %v5199_v56 }
 0x73e   : > { %3085 = vmatpush.bf16.msra.mxu0 %v6185_v41 }
 0x741   : > { %2221 = vmatpush.bf16.msra.mxu2 %v5156_v63  ;;  %v6252_v63 = vld [vmem:[%s7810_s30 + $0x148] sm:$0xff] }
 0x742   : > { %2856 = vmatpush.bf16.msrb.mxu1 %v6252_v63  ;;  %3086 = vmatpush.bf16.msra.mxu0 %v6184_v1  ;;  %v6295_v1 = vld [vmem:[%s7806_s27 + $0x2a4] sm:$0xf] }
 0x745   : > { %2222 = vmatpush.bf16.msra.mxu2 %v5140_v13  ;;  %v6251_v13 = vld [vmem:[%s7810_s30 + $0x140] sm:$0xff] }
 0x746   : > { %2857 = vmatpush.bf16.msrb.mxu1 %v6251_v13  ;;  %3087 = vmatpush.bf16.msra.mxu0 %v6183_v0  ;;  %v6297_v13 = vld [vmem:[%s7806_s27 + $0x2dc] sm:$0xf0] }
 0x747   : > { %v6207_v0 = vld [vmem:[%s7810_s30 + $0xe0] sm:$0xff] }
 0x749   : > { %2223 = vmatpush.bf16.msra.mxu2 %v5124_v2  ;;  %v6193_v2 = vld [vmem:[%s7810_s30 + $0x70] sm:$0xff] }
 0x74a   : > { %3098 = vmatpush.bf16.msra.mxu1 %v6194_v23  ;;  %3088 = vmatpush.bf16.msra.mxu0 %v6182_v28  ;;  %v5660_v23 = vor.u32 %v6299_v60, %v5657_v27  ;;  %v6304_v60 = vld [vmem:[%s7806_s27 + $0x3ac] sm:$0xf] }
 0x74b   : > { %v5681_v27 = vld [vmem:[%s7806_s27 + $0x3e8] sm:$0xf0] }
 0x74d   : > { %2224 = vmatpush.bf16.msra.mxu2 %v5108_v57  ;;  %v6271_v57 = vld [vmem:[%s7810_s30 + $0x1e0] sm:$0xff] }
 0x74e   : > { %3099 = vmatpush.bf16.msra.mxu1 %v6193_v2  ;;  %2881 = vmatpush.bf16.msra.mxu3 %v6271_v57  ;;  %v5641_v2 = vld [vmem:[%s7806_s27 + $0x2e0] sm:$0xf0] }
 0x74f   : > { %3089 = vmatpush.bf16.msra.mxu0 %v6181_v39  ;;  %v6206_v39 = vld [vmem:[%s7810_s30 + $0xd8] sm:$0xff] }
 0x751   : > { %2225 = vmatpush.bf16.msra.mxu2 %v5092_v38  ;;  %v6270_v38 = vld [vmem:[%s7810_s30 + $0x1d8] sm:$0xff] }
 0x752   : > { %3100 = vmatpush.bf16.msra.mxu1 %v6192_v37  ;;  %2882 = vmatpush.bf16.msra.mxu3 %v6270_v38  ;;  %v2010_v37 = vperm.slane %v8314_v26, 0 }
 0x753   : > { %3090 = vmatpush.bf16.msra.mxu0 %v6180_v8  ;;  %v5623_v8 = vld [vmem:[%s7806_s27 + $0x220] sm:$0xf] }
 0x755   : > { %2226 = vmatpush.bf16.msra.mxu2 %v5076_v24  ;;  %v6269_v24 = vld [vmem:[%s7810_s30 + $0x1d0] sm:$0xff] }
 0x756   : > { %3101 = vmatpush.bf16.msra.mxu1 %v6191_v4  ;;  %2883 = vmatpush.bf16.msra.mxu3 %v6269_v24  ;;  %v6266_v4 = vld [vmem:[%s7810_s30 + $0x1b8] sm:$0xff] }
 0x757   : > { %3091 = vmatpush.bf16.msra.mxu0 %v6179_v15  ;;  %v6265_v15 = vld [vmem:[%s7810_s30 + $0x1b0] sm:$0xff] }
 0x759   : > { %2227 = vmatpush.bf16.msra.mxu2 %v5060_v42  ;;  %v6267_v42 = vld [vmem:[%s7810_s30 + $0x1c0] sm:$0xff] }
 0x75a   : > { %3102 = vmatpush.bf16.msra.mxu1 %v6190_v14  ;;  %2884 = vmatpush.bf16.msra.mxu3 %v6268_v48  ;;  %v5644_v48 = vor.u32 %v6295_v1, %v5641_v2  ;;  %v6277_v1 = vld [vmem:[%s7806_s27 + $0x5c] sm:$0xf0] }
 0x75c   : > { %2228 = vmatmul.bf16.vlgmr.msra.gmra.mxu2 %v8198_v36 }
 0x75d   : > { %2540 = vmatpush.bf16.msrb.mxu2 %v5296_v51  ;;  %v6187_v51 = vld [vmem:[%s7810_s30 + $0x40] sm:$0xff] }
 0x75e   : > { %3103 = vmatpush.bf16.msra.mxu1 %v6189_v43  ;;  %2885 = vmatpush.bf16.msra.mxu3 %v6267_v42  ;;  %v6293_v43 = vld [vmem:[%s7806_s27 + $0x25c] sm:$0xf0]  ;;  %v6291_v42 = vld [vmem:[%s7806_s27 + $0x224] sm:$0xf] }
 0x761   : > { %2541 = vmatpush.bf16.msrb.mxu2 %v5280_v20  ;;  %v6210_v20 = vld [vmem:[%s7810_s30 + $0xf8] sm:$0xff] }
 0x762   : > { %3104 = vmatpush.bf16.msra.mxu1 %v6188_v29  ;;  %3126 = vmatpush.bf16.msrb.mxu3 %v6210_v20 }
 0x765   : > { %2542 = vmatpush.bf16.msrb.mxu2 %v5264_v10 }
 0x766   : > { %3105 = vmatpush.bf16.msra.mxu1 %v6187_v51  ;;  %3127 = vmatpush.bf16.msrb.mxu3 %v6209_v59  ;;  %v5625_v51 = vld [vmem:[%s7806_s27 + $0x260] sm:$0xf0] }
 0x769   : > { %2543 = vmatpush.bf16.msrb.mxu2 %v5248_v30  ;;  %v6303_v30 = vld [vmem:[%s7806_s27 + $0x3a4] sm:$0xf] }
 0x76a   : > { %v5676_v56 = vor.u32 %v6303_v30, %v5673_v45  ;;  %3128 = vmatpush.bf16.msrb.mxu3 %v6208_v25  ;;  %v5591_v30 = vld [vmem:[%s7806_s27 + $0x120] sm:$0xf] }
 0x76b   : > { %v6285_v45 = vld [vmem:[%s7806_s27 + $0x15c] sm:$0xf0] }
 0x76c   : > { %v5592_v25 = vor.u32 %v6285_v45, %v5591_v30  ;;  %v6280_v30 = vld [vmem:[%s7806_s27 + $0xac] sm:$0xf] }
 0x76d   : > { %2544 = vmatpush.bf16.msrb.mxu2 %v5232_v12  ;;  %v5585_v45 = vld [vmem:[%s7806_s27 + $0xe8] sm:$0xf0] }
 0x76e   : > { %3129 = vmatpush.bf16.msrb.mxu3 %v6207_v0 }
 0x771   : > { %2545 = vmatpush.bf16.msrb.mxu2 %v5216_v19  ;;  %v6301_v19 = vld [vmem:[%s7806_s27 + $0x35c] sm:$0xf0] }
 0x772   : > { %v5656_v63 = vor.u32 %v6301_v19, %v5655_v21  ;;  %3130 = vmatpush.bf16.msrb.mxu3 %v6206_v39  ;;  %v5561_v39 = vld [vmem:[%s7806_s27 + $0x60] sm:$0xf0] }
 0x775   : > { %2546 = vmatpush.bf16.msrb.mxu2 %v5200_v34 }
 0x779   : > { %2547 = vmatpush.bf16.msrb.mxu2 %v5184_v33  ;;  %v5639_v33 = vld [vmem:[%s7806_s27 + $0x2a0] sm:$0xf] }
 0x77a   : > { %v5640_v38 = vor.u32 %v6297_v13, %v5639_v33  ;;  %v5684_v33 = vor.u32 %v6304_v60, %v5681_v27 }
 0x77c   : > { %2548 = vmatmul.bf16.vlgmr.msrb.gmra.mxu2 %v8198_v36 }
 0x77d   : > { %2864 = vmatpush.bf16.msra.mxu2 %v6266_v4 }
 0x781   : > { %2865 = vmatpush.bf16.msra.mxu2 %v6265_v15  ;;  %v5649_v15 = vld [vmem:[%s7806_s27 + $0x2e8] sm:$0xf0] }
 0x799   : > { %v2521_v3 = vpop.f32.mrf.mxu0 }
 0x79a   : > { %v2535_v17 = vpop.f32.mrf.mxu1  ;;  %v2522_v53 = vadd.f32 %v2521_v3, %v2344_v31 }
 0x79b   : > { %v2536_v54 = vadd.f32 %v2535_v17, %v2345_v40  ;;  %v2011_v17 = vperm.slane %v8314_v26, 1 }
 0x79c   : > { %v2568_v46 = vmax.f32 %v2522_v53, 0.0  ;;  %v5607_v53 = vld [vmem:[%s7806_s27 + $0x1a0] sm:$0xf] }
 0x79d   : > { %v2569_v9 = vmax.f32 %v2536_v54, 0.0  ;;  %v6289_v54 = vld [vmem:[%s7806_s27 + $0x1dc] sm:$0xf0] }
 0x79e   : > { %v5608_v49 = vor.u32 %v6289_v54, %v5607_v53 }
 0x79f   : > { %v8300_v52 = vpop.f32.mrf.mxu2 }
 0x7a0   : > { %v2188_v3 = vadd.f32 %v8300_v52, %v2010_v37  ;;  %v5609_v52 = vld [vmem:[%s7806_s27 + $0x1e0] sm:$0xf0] }
 0x7a1   : > { %v2563_v18 = vpop.f32.mrf.mxu3  ;;  %v2523_v44 = vpop.f32.mrf.mxu0 }
 0x7a2   : > { %v2524_v10 = vadd.f32 %v2523_v44, %v2344_v31  ;;  %v2537_v16 = vpop.f32.mrf.mxu1  ;;  %v2564_v34 = vadd.f32 %v2563_v18, %v2347_v7  ;;  %v5624_v31 = vor.u32 %v6293_v43, %v5623_v8  ;;  %v5628_v18 = vor.u32 %v6291_v42, %v5625_v51  ;;  %v6264_v44 = vld [vmem:[%s7810_s30 + $0x1a8] sm:$0xff]  ;;  %v6261_v8 = vld [vmem:[%s7810_s30 + $0x190] sm:$0xff] }
 0x7a3   : > { %v2538_v62 = vadd.f32 %v2537_v16, %v2345_v40  ;;  %v6205_v40 = vld [vmem:[%s7810_s30 + $0xd0] sm:$0xff]  ;;  %v2234_v16 = vmax.f32 %v2188_v3, 0.0  ;;  %2866 = vmatpush.bf16.msra.mxu2 %v6264_v44  ;;  %v6260_v51 = vld [vmem:[%s7810_s30 + $0x188] sm:$0xff] }
 0x7a4   : > { %v2572_v47 = vmax.f32 %v2524_v10, 0.0  ;;  %v2571_v57 = vmax.f32 %v2564_v34, 0.0  ;;  %v6287_v10 = vld [vmem:[%s7806_s27 + $0x1a4] sm:$0xf]  ;;  %3131 = vmatpush.bf16.msrb.mxu3 %v6205_v40  ;;  %v6292_v3 = vld [vmem:[%s7806_s27 + $0x22c] sm:$0xf] }
 0x7a5   : > { %v2573_v12 = vmax.f32 %v2538_v62, 0.0  ;;  %v6288_v44 = vld [vmem:[%s7806_s27 + $0x1ac] sm:$0xf] }
 0x7a6   : > { %v2576_v11 = vpack.c.bf16 %v2572_v47, %v2568_v46  ;;  %v5612_v46 = vor.u32 %v6287_v10, %v5609_v52  ;;  %v5617_v10 = vld [vmem:[%s7806_s27 + $0x1e8] sm:$0xf0] }
 0x7a7   : > { %v2577_v35 = vpack.c.bf16 %v2573_v12, %v2569_v9  ;;  %v2189_v55 = vpop.f32.mrf.mxu2  ;;  %v6283_v12 = vld [vmem:[%s7806_s27 + $0x124] sm:$0xf] }
 0x7a8   : > { %2844 = vmatmul.bf16.vlgmr.msrb.gmra.mxu0 %v2576_v11  ;;  %v2190_v14 = vadd.f32 %v2189_v55, %v2010_v37  ;;  %3132 = vmatpush.bf16.msrb.mxu3 %v6204_v5  ;;  %v6203_v11 = vld [vmem:[%s7810_s30 + $0xc0] sm:$0xff]  ;;  %v6262_v37 = vld [vmem:[%s7810_s30 + $0x198] sm:$0xff]  ;;  %v5601_v5 = vld [vmem:[%s7806_s27 + $0x168] sm:$0xf0] }
 0x7a9   : > { %v2565_v61 = vpop.f32.mrf.mxu3  ;;  %2858 = vmatmul.bf16.vlgmr.msrb.gmra.mxu1 %v2577_v35  ;;  %3342 = vmatpush.bf16.msrb.mxu0 %v5672_v6  ;;  %v5593_v6 = vld [vmem:[%s7806_s27 + $0x160] sm:$0xf0]  ;;  %v6281_v35 = vld [vmem:[%s7806_s27 + $0xdc] sm:$0xf0] }
 0x7aa   : > { %v2566_v41 = vadd.f32 %v2565_v61, %v2347_v7  ;;  %3356 = vmatpush.bf16.msrb.mxu1 %v5676_v56  ;;  %v2238_v20 = vmax.f32 %v2190_v14, 0.0  ;;  %v6263_v7 = vld [vmem:[%s7810_s30 + $0x1a0] sm:$0xff]  ;;  %v5596_v55 = vor.u32 %v6283_v12, %v5593_v6  ;;  %v2012_v61 = vperm.slane %v8314_v26, 2 }
 0x7ab   : > { %v5575_v56 = vld [vmem:[%s7806_s27 + $0xa0] sm:$0xf]  ;;  %2867 = vmatpush.bf16.msra.mxu2 %v6263_v7  ;;  %v5588_v7 = vor.u32 %v6280_v30, %v5585_v45  ;;  %v6318_v30 = vld [vmem:[%s7810_s30 + $0x258] sm:$0xff]  ;;  %v5567_v45 = vld [vmem:[%s7806_s27 + $0x28] sm:$0xf] }
 0x7ac   : > { %v2575_v28 = vmax.f32 %v2566_v41, 0.0  ;;  %v2242_v59 = vpack.c.bf16 %v2238_v20, %v2234_v16  ;;  %v5577_v41 = vld [vmem:[%s7806_s27 + $0xe0] sm:$0xf0]  ;;  %v5576_v13 = vor.u32 %v6281_v35, %v5575_v56  ;;  %3133 = vmatpush.bf16.msrb.mxu3 %v6203_v11  ;;  %v5620_v16 = vor.u32 %v6288_v44, %v5617_v10  ;;  %v6198_v11 = vld [vmem:[%s7810_s30 + $0x98] sm:$0xff] }
 0x7ad   : > { %3343 = vmatpush.bf16.msrb.mxu0 %v5656_v63  ;;  %v6279_v63 = vld [vmem:[%s7806_s27 + $0xa4] sm:$0xf]  ;;  %v6310_v44 = vld [vmem:[%s7810_s30 + $0x218] sm:$0xff] }
 0x7ae   : > { %v2579_v24 = vpack.c.bf16 %v2575_v28, %v2571_v57  ;;  %3357 = vmatpush.bf16.msrb.mxu1 %v5660_v23  ;;  %v5559_v23 = vld [vmem:[%s7806_s27 + $0x20] sm:$0xf]  ;;  %v5580_v0 = vor.u32 %v6279_v63, %v5577_v41  ;;  %v6300_v57 = vld [vmem:[%s7806_s27 + $0x32c] sm:$0xf] }
 0x7af   : > { %v2201_v29 = vpop.f32.mrf.mxu2  ;;  %v5665_v28 = vld [vmem:[%s7806_s27 + $0x368] sm:$0xf0]  ;;  %2868 = vmatpush.bf16.msra.mxu2 %v6262_v37  ;;  %v6259_v20 = vld [vmem:[%s7810_s30 + $0x180] sm:$0xff] }
 0x7b0   : > { %2886 = vmatmul.bf16.vlgmr.msra.gmra.mxu3 %v2579_v24  ;;  %v2202_v62 = vadd.f32 %v2201_v29, %v2011_v17  ;;  %v5668_v14 = vor.u32 %v6300_v57, %v5665_v28  ;;  %v5560_v24 = vor.u32 %v6277_v1, %v5559_v23  ;;  %v6199_v12 = vld [vmem:[%s7810_s30 + $0xa0] sm:$0xff]  ;;  %v5679_v1 = vld [vmem:[%s7806_s27 + $0x3a8] sm:$0xf] }
 0x7b1   : > { %3344 = vmatpush.bf16.msrb.mxu0 %v5640_v38  ;;  %3384 = vmatpush.bf16.msra.mxu3 %v5684_v33  ;;  %v6275_v38 = vld [vmem:[%s7806_s27 + $0x24] sm:$0xf] }
 0x7b2   : > { %3358 = vmatpush.bf16.msrb.mxu1 %v5644_v48  ;;  %v2235_v21 = vmax.f32 %v2202_v62, 0.0  ;;  %v5564_v43 = vor.u32 %v6275_v38, %v5561_v39  ;;  %v6296_v48 = vld [vmem:[%s7806_s27 + $0x2ac] sm:$0xf]  ;;  %v6302_v38 = vld [vmem:[%s7806_s27 + $0x364] sm:$0xf0] }
 0x7b3   : > { %v5652_v29 = vor.u32 %v6296_v48, %v5649_v15  ;;  %2869 = vmatpush.bf16.msra.mxu2 %v6261_v8  ;;  %v6313_v8 = vld [vmem:[%s7810_s30 + $0x230] sm:$0xff]  ;;  %v5631_v48 = vld [vmem:[%s7806_s27 + $0x228] sm:$0xf] }
 0x7b4   : > { %v6294_v15 = vld [vmem:[%s7806_s27 + $0x264] sm:$0xf0] }
 0x7b5   : > { %3345 = vmatpush.bf16.msrb.mxu0 %v5624_v31  ;;  %3385 = vmatpush.bf16.msra.mxu3 %v5668_v14  ;;  %v5647_v14 = vld [vmem:[%s7806_s27 + $0x2a8] sm:$0xf] }
 0x7b6   : > { %3359 = vmatpush.bf16.msrb.mxu1 %v5628_v18  ;;  %v6202_v18 = vld [vmem:[%s7810_s30 + $0xb8] sm:$0xff] }
 0x7b7   : > { %v2203_v47 = vpop.f32.mrf.mxu2  ;;  %2870 = vmatpush.bf16.msra.mxu2 %v6260_v51  ;;  %v5632_v51 = vor.u32 %v6294_v15, %v5631_v48  ;;  %v6355_v48 = vld [vmem:[%s7806_s27 + $0x234] sm:$0xf] }
 0x7b8   : > { %v2204_v9 = vadd.f32 %v2203_v47, %v2011_v17  ;;  %3092 = vmatmul.bf16.vlgmr.msra.gmra.mxu0 %v2242_v59  ;;  %v5633_v17 = vld [vmem:[%s7806_s27 + $0x268] sm:$0xf0]  ;;  %v6201_v59 = vld [vmem:[%s7810_s30 + $0xb0] sm:$0xff] }
 0x7b9   : > { %3346 = vmatpush.bf16.msrb.mxu0 %v5608_v49  ;;  %3386 = vmatpush.bf16.msra.mxu3 %v5652_v29  ;;  %v5636_v40 = vor.u32 %v6292_v3, %v5633_v17  ;;  %v6284_v49 = vld [vmem:[%s7806_s27 + $0x12c] sm:$0xf]  ;;  %v6322_v29 = vld [vmem:[%s7810_s30 + $0x278] sm:$0xff]  ;;  %v5615_v3 = vld [vmem:[%s7806_s27 + $0x1a8] sm:$0xf] }
 0x7ba   : > { %v2239_v19 = vmax.f32 %v2204_v9, 0.0  ;;  %3360 = vmatpush.bf16.msrb.mxu1 %v5612_v46  ;;  %v5604_v62 = vor.u32 %v6284_v49, %v5601_v5  ;;  %v6200_v46 = vld [vmem:[%s7810_s30 + $0xa8] sm:$0xff]  ;;  %v6319_v5 = vld [vmem:[%s7810_s30 + $0x260] sm:$0xff]  ;;  %v5881_v15 = vld [vmem:[%s7806_s27 + $0x270] sm:$0xf0] }
 0x7bb   : > { %2871 = vmatpush.bf16.msra.mxu2 %v6259_v20  ;;  %v6276_v47 = vld [vmem:[%s7806_s27 + $0x2c] sm:$0xf]  ;;  %v6290_v17 = vld [vmem:[%s7806_s27 + $0x1e4] sm:$0xf0] }
 0x7bc   : > { %v2243_v34 = vpack.c.bf16 %v2239_v19, %v2235_v21  ;;  %v5569_v9 = vld [vmem:[%s7806_s27 + $0x68] sm:$0xf0]  ;;  %v6197_v21 = vld [vmem:[%s7810_s30 + $0x90] sm:$0xff]  ;;  %v2013_v19 = vperm.slane %v8314_v26, 3  ;;  %v2346_v26 = vperm.slane %v8295_v22, 2  ;;  %v6314_v22 = vld [vmem:[%s7810_s30 + $0x238] sm:$0xff]  ;;  %v5616_v20 = vor.u32 %v6290_v17, %v5615_v3 }
 0x7bd   : > { %3347 = vmatpush.bf16.msrb.mxu0 %v5592_v25  ;;  %3387 = vmatpush.bf16.msra.mxu3 %v5636_v40  ;;  %v5572_v6 = vor.u32 %v6276_v47, %v5569_v9  ;;  %v6311_v40 = vld [vmem:[%s7810_s30 + $0x220] sm:$0xff]  ;;  %v6282_v49 = vld [vmem:[%s7806_s27 + $0xe4] sm:$0xf0]  ;;  %v6317_v47 = vld [vmem:[%s7810_s30 + $0x250] sm:$0xff] }
 0x7be   : > { %3106 = vmatmul.bf16.vlgmr.msra.gmra.mxu1 %v2243_v34  ;;  %v6307_v9 = vld [vmem:[%s7810_s30 + $0x200] sm:$0xff]  ;;  %v6351_v17 = vld [vmem:[%s7806_s27 + $0x1b4] sm:$0xf] }
 0x7bf   : > { %v2215_v2 = vpop.f32.mrf.mxu2  ;;  %3361 = vmatpush.bf16.msrb.mxu1 %v5596_v55  ;;  %3112 = vmatpush.bf16.msrb.mxu2 %v6202_v18  ;;  %v6196_v55 = vld [vmem:[%s7810_s30 + $0x88] sm:$0xff] }
 0x7c0   : > { %v2216_v4 = vadd.f32 %v2215_v2, %v2012_v61  ;;  %v6306_v2 = vld [vmem:[%s7806_s27 + $0x3e4] sm:$0xf0] }
 0x7c1   : > { %3348 = vmatpush.bf16.msrb.mxu0 %v5576_v13  ;;  %3388 = vmatpush.bf16.msra.mxu3 %v5620_v16  ;;  %v5680_v57 = vor.u32 %v6306_v2, %v5679_v1  ;;  %v6286_v18 = vld [vmem:[%s7806_s27 + $0x164] sm:$0xf0]  ;;  %v6363_v2 = vld [vmem:[%s7806_s27 + $0x334] sm:$0xf] }
 0x7c2   : > { %v2236_v53 = vmax.f32 %v2216_v4, 0.0  ;;  %v5663_v4 = vld [vmem:[%s7806_s27 + $0x328] sm:$0xf] }
 0x7c3   : > { %3362 = vmatpush.bf16.msrb.mxu1 %v5580_v0  ;;  %3113 = vmatpush.bf16.msrb.mxu2 %v6201_v59  ;;  %v5664_v39 = vor.u32 %v6302_v38, %v5663_v4  ;;  %v5583_v16 = vld [vmem:[%s7806_s27 + $0xa8] sm:$0xf]  ;;  %v6309_v59 = vld [vmem:[%s7810_s30 + $0x210] sm:$0xff] }
 0x7c4   : > { %v6359_v38 = vld [vmem:[%s7806_s27 + $0x2b4] sm:$0xf] }
 0x7c5   : > { %3349 = vmatpush.bf16.msrb.mxu0 %v5560_v24  ;;  %3389 = vmatpush.bf16.msra.mxu3 %v5604_v62  ;;  %v6298_v24 = vld [vmem:[%s7806_s27 + $0x2e4] sm:$0xf0]  ;;  %v5584_v62 = vor.u32 %v6282_v49, %v5583_v16  ;;  %v6338_v16 = vld [vmem:[%s7810_s30 + $0x2f8] sm:$0xff] }
 0x7c7   : > { %v2217_v42 = vpop.f32.mrf.mxu2  ;;  %3363 = vmatpush.bf16.msrb.mxu1 %v5564_v43  ;;  %3114 = vmatpush.bf16.msrb.mxu2 %v6200_v46  ;;  %v5648_v43 = vor.u32 %v6298_v24, %v5647_v14  ;;  %v6278_v46 = vld [vmem:[%s7806_s27 + $0x64] sm:$0xf0]  ;;  %v5863_v24 = vld [vmem:[%s7806_s27 + $0x1b0] sm:$0xf] }
 0x7c8   : > { %v2218_v31 = vadd.f32 %v2217_v42, %v2012_v61  ;;  %3350 = vmatmul.bf16.vlgmr.msrb.gmra.mxu0 %v8198_v36  ;;  %v6195_v61 = vld [vmem:[%s7810_s30 + $0x80] sm:$0xff]  ;;  %v6312_v42 = vld [vmem:[%s7810_s30 + $0x228] sm:$0xff] }
 0x7c9   : > { %3390 = vmatpush.bf16.msra.mxu3 %v5588_v7  ;;  %3666 = vmatpush.bf16.msra.mxu0 %v6314_v22  ;;  %v5568_v7 = vor.u32 %v6278_v46, %v5567_v45  ;;  %v5897_v22 = vld [vmem:[%s7806_s27 + $0x2f0] sm:$0xf0] }
 0x7ca   : > { %v2240_v54 = vmax.f32 %v2218_v31, 0.0  ;;  %v6321_v31 = vld [vmem:[%s7810_s30 + $0x270] sm:$0xff] }
 0x7cb   : > { %3115 = vmatpush.bf16.msrb.mxu2 %v6199_v12  ;;  %3680 = vmatpush.bf16.msra.mxu1 %v6322_v29  ;;  %v5884_v29 = vor.u32 %v6355_v48, %v5881_v15  ;;  %v6343_v45 = vld [vmem:[%s7806_s27 + $0xb4] sm:$0xf]  ;;  %v5921_v48 = vld [vmem:[%s7806_s27 + $0x378] sm:$0xf0] }
 0x7cc   : > { %v8369_v52 = vpack.c.bf16 %v2240_v54, %v2236_v53  ;;  %v6320_v53 = vld [vmem:[%s7810_s30 + $0x268] sm:$0xff]  ;;  %v5833_v46 = vld [vmem:[%s7806_s27 + $0xf0] sm:$0xf0] }
 0x7cd   : > { %3391 = vmatpush.bf16.msra.mxu3 %v5572_v6  ;;  %3667 = vmatpush.bf16.msra.mxu0 %v6313_v8  ;;  %v5599_v54 = vld [vmem:[%s7806_s27 + $0x128] sm:$0xf]  ;;  %v5927_v6 = vld [vmem:[%s7806_s27 + $0x3b0] sm:$0xf] }
 0x7ce   : > { %3364 = vmatmul.bf16.vlgmr.msrb.gmra.mxu1 %v8198_v36  ;;  %v5600_v10 = vor.u32 %v6286_v18, %v5599_v54  ;;  %v6353_v8 = vld [vmem:[%s7806_s27 + $0x1ec] sm:$0xf0]  ;;  %v6347_v18 = vld [vmem:[%s7806_s27 + $0x134] sm:$0xf] }
 0x7cf   : > { %3116 = vmatpush.bf16.msrb.mxu2 %v6198_v11  ;;  %3681 = vmatpush.bf16.msra.mxu1 %v6321_v31  ;;  %v5865_v31 = vld [vmem:[%s7806_s27 + $0x1f0] sm:$0xf0]  ;;  %v6345_v54 = vld [vmem:[%s7806_s27 + $0xec] sm:$0xf0] }
 0x7d1   : > { %3668 = vmatpush.bf16.msra.mxu0 %v6312_v42  ;;  %v5847_v42 = vld [vmem:[%s7806_s27 + $0x130] sm:$0xf] }
 0x7d3   : > { %3117 = vmatpush.bf16.msrb.mxu2 %v6197_v21  ;;  %3682 = vmatpush.bf16.msra.mxu1 %v6320_v53  ;;  %v5868_v53 = vor.u32 %v6351_v17, %v5865_v31  ;;  %v6356_v17 = vld [vmem:[%s7806_s27 + $0x23c] sm:$0xf] }
 0x7d4   : > { %v5889_v31 = vld [vmem:[%s7806_s27 + $0x278] sm:$0xf0] }
 0x7d5   : > { %3669 = vmatpush.bf16.msra.mxu0 %v6311_v40  ;;  %v5831_v40 = vld [vmem:[%s7806_s27 + $0xb0] sm:$0xf] }
 0x7d7   : > { %3118 = vmatpush.bf16.msrb.mxu2 %v6196_v55  ;;  %3683 = vmatpush.bf16.msra.mxu1 %v6319_v5  ;;  %v6365_v55 = vld [vmem:[%s7806_s27 + $0x36c] sm:$0xf0] }
 0x7d8   : > { %v5815_v5 = vld [vmem:[%s7806_s27 + $0x30] sm:$0xf] }
 0x7d9   : > { %3670 = vmatpush.bf16.msra.mxu0 %v6310_v44  ;;  %v5849_v44 = vld [vmem:[%s7806_s27 + $0x170] sm:$0xf0] }
 0x7db   : > { %3119 = vmatpush.bf16.msrb.mxu2 %v6195_v61  ;;  %3684 = vmatpush.bf16.msra.mxu1 %v6318_v30  ;;  %v5929_v61 = vld [vmem:[%s7806_s27 + $0x3f0] sm:$0xf0] }
 0x7dc   : > { %v6337_v30 = vld [vmem:[%s7810_s30 + $0x2f0] sm:$0xff] }
 0x7dd   : > { %3671 = vmatpush.bf16.msra.mxu0 %v6309_v59  ;;  %v6341_v59 = vld [vmem:[%s7806_s27 + $0x6c] sm:$0xf0] }
 0x7df   : > { %v2229_v25 = vpop.f32.mrf.mxu2  ;;  %3685 = vmatpush.bf16.msra.mxu1 %v6317_v47 }
 0x7e0   : > { %v2230_v56 = vadd.f32 %v2229_v25, %v2013_v19  ;;  %v6369_v25 = vld [vmem:[%s7806_s27 + $0x3ec] sm:$0xf0] }
 0x7e1   : > { %v5928_v21 = vor.u32 %v6369_v25, %v5927_v6  ;;  %v6336_v6 = vld [vmem:[%s7810_s30 + $0x2e8] sm:$0xff] }
 0x7e2   : > { %v2237_v27 = vmax.f32 %v2230_v56, 0.0  ;;  %v6316_v56 = vld [vmem:[%s7810_s30 + $0x248] sm:$0xff] }
 0x7e3   : > { %3686 = vmatpush.bf16.msra.mxu1 %v6316_v56  ;;  %v8470_v25 = vld [vmem:[%s7808_s6 + $0x8] sm:$0xf] }
 0x7e4   : > { %v3174_v56 = vperm.slane %v8470_v25, 0 }
 0x7e7   : > { %v2231_v35 = vpop.f32.mrf.mxu2 }
 0x7e8   : > { %v2232_v60 = vadd.f32 %v2231_v35, %v2013_v19  ;;  %v5911_v35 = vld [vmem:[%s7806_s27 + $0x330] sm:$0xf] }
 0x7ea   : > { %v2241_v34 = vmax.f32 %v2232_v60, 0.0  ;;  %v5912_v60 = vor.u32 %v6365_v55, %v5911_v35  ;;  %v6335_v35 = vld [vmem:[%s7810_s30 + $0x2e0] sm:$0xff] }
 0x7ec   : > { %v2245_v63 = vpack.c.bf16 %v2241_v34, %v2237_v27  ;;  %v6315_v27 = vld [vmem:[%s7810_s30 + $0x240] sm:$0xff]  ;;  %v6367_v34 = vld [vmem:[%s7806_s27 + $0x3b4] sm:$0xf] }
 0x7ed   : > { %3687 = vmatpush.bf16.msra.mxu1 %v6315_v27 }
 0x7ee   : > { %3134 = vmatmul.bf16.vlgmr.msrb.gmra.mxu3 %v2245_v63  ;;  %v5932_v63 = vor.u32 %v6367_v34, %v5929_v61  ;;  %v3175_v34 = vperm.slane %v8470_v25, 1 }
 0x7ef   : > { %3708 = vmatpush.bf16.msrb.mxu3 %v6338_v16  ;;  %v6348_v16 = vld [vmem:[%s7806_s27 + $0x13c] sm:$0xf] }
 0x7f1   : > { %3940 = vmatpush.bf16.msrb.mxu1 %v5932_v63  ;;  %v6334_v63 = vld [vmem:[%s7810_s30 + $0x2d8] sm:$0xff] }
 0x7f3   : > { %3709 = vmatpush.bf16.msrb.mxu3 %v6337_v30  ;;  %v6344_v30 = vld [vmem:[%s7806_s27 + $0xbc] sm:$0xf] }
 0x7f7   : > { %3710 = vmatpush.bf16.msrb.mxu3 %v6336_v6  ;;  %v6327_v6 = vld [vmem:[%s7810_s30 + $0x2a0] sm:$0xff] }
 0x7fb   : > { %3711 = vmatpush.bf16.msrb.mxu3 %v6335_v35  ;;  %v6325_v35 = vld [vmem:[%s7810_s30 + $0x290] sm:$0xff] }
 0x7fe   : > { %3392 = vmatmul.bf16.vlgmr.msra.gmra.mxu3 %v8198_v36 }
 0x7ff   : > { %v2549_v41 = vpop.f32.mrf.mxu2  ;;  %3712 = vmatpush.bf16.msrb.mxu3 %v6334_v63  ;;  %v6323_v63 = vld [vmem:[%s7810_s30 + $0x280] sm:$0xff] }
 0x800   : > { %v2550_v33 = vadd.f32 %v2549_v41, %v2346_v26 }
 0x802   : > { %v2570_v0 = vmax.f32 %v2550_v33, 0.0  ;;  %v6361_v33 = vld [vmem:[%s7806_s27 + $0x2ec] sm:$0xf0] }
 0x807   : > { %v2551_v13 = vpop.f32.mrf.mxu2 }
 0x808   : > { %v2552_v23 = vadd.f32 %v2551_v13, %v2346_v26  ;;  %v5895_v26 = vld [vmem:[%s7806_s27 + $0x2b0] sm:$0xf] }
 0x80a   : > { %v2574_v37 = vmax.f32 %v2552_v23, 0.0  ;;  %v5896_v23 = vor.u32 %v6361_v33, %v5895_v26  ;;  %v6333_v33 = vld [vmem:[%s7810_s30 + $0x2d0] sm:$0xff] }
 0x80b   : > { %3713 = vmatpush.bf16.msrb.mxu3 %v6333_v33  ;;  %v5935_v33 = vld [vmem:[%s7806_s27 + $0x3b8] sm:$0xf] }
 0x80c   : > { %v2578_v28 = vpack.c.bf16 %v2574_v37, %v2570_v0  ;;  %v5913_v0 = vld [vmem:[%s7806_s27 + $0x370] sm:$0xf0] }
 0x80d   : > { %v5916_v37 = vor.u32 %v6363_v2, %v5913_v0 }
 0x80e   : > { %2872 = vmatmul.bf16.vlgmr.msra.gmra.mxu2 %v2578_v28  ;;  %v6357_v28 = vld [vmem:[%s7806_s27 + $0x26c] sm:$0xf0] }
 0x80f   : > { %3370 = vmatpush.bf16.msra.mxu2 %v5680_v57  ;;  %v5879_v57 = vld [vmem:[%s7806_s27 + $0x230] sm:$0xf]  ;;  %3941 = vmatpush.bf16.msrb.mxu1 %v5916_v37 }
 0x810   : > { %v5880_v4 = vor.u32 %v6357_v28, %v5879_v57  ;;  %v6332_v28 = vld [vmem:[%s7810_s30 + $0x2c8] sm:$0xff] }
 0x811   : > { %3714 = vmatpush.bf16.msrb.mxu3 %v6332_v28  ;;  %v6366_v28 = vld [vmem:[%s7806_s27 + $0x374] sm:$0xf0] }
 0x813   : > { %3371 = vmatpush.bf16.msra.mxu2 %v5664_v39  ;;  %v5900_v39 = vor.u32 %v6359_v38, %v5897_v22  ;;  %v6331_v38 = vld [vmem:[%s7810_s30 + $0x2c0] sm:$0xff] }
 0x815   : > { %3942 = vmatpush.bf16.msrb.mxu1 %v5900_v39  ;;  %3715 = vmatpush.bf16.msrb.mxu3 %v6331_v38  ;;  %v6368_v39 = vld [vmem:[%s7806_s27 + $0x3bc] sm:$0xf] }
 0x817   : > { %3372 = vmatpush.bf16.msra.mxu2 %v5648_v43  ;;  %v5864_v43 = vor.u32 %v6353_v8, %v5863_v24  ;;  %v5937_v24 = vld [vmem:[%s7806_s27 + $0x3f8] sm:$0xf0] }
 0x818   : > { %v5940_v8 = vor.u32 %v6368_v39, %v5937_v24  ;;  %v5903_v39 = vld [vmem:[%s7806_s27 + $0x2b8] sm:$0xf] }
 0x819   : > { %3943 = vmatpush.bf16.msrb.mxu1 %v5884_v29  ;;  %v6360_v29 = vld [vmem:[%s7806_s27 + $0x2bc] sm:$0xf]  ;;  %v6362_v24 = vld [vmem:[%s7806_s27 + $0x2f4] sm:$0xf0] }
 0x81a   : > { %3968 = vmatpush.bf16.msra.mxu3 %v5940_v8 }
 0x81b   : > { %3373 = vmatpush.bf16.msra.mxu2 %v5632_v51  ;;  %v6349_v51 = vld [vmem:[%s7806_s27 + $0x16c] sm:$0xf0] }
 0x81c   : > { %v5848_v3 = vor.u32 %v6349_v51, %v5847_v42  ;;  %v5905_v42 = vld [vmem:[%s7806_s27 + $0x2f8] sm:$0xf0] }
 0x81d   : > { %3944 = vmatpush.bf16.msrb.mxu1 %v5868_v53  ;;  %v6352_v53 = vld [vmem:[%s7806_s27 + $0x1bc] sm:$0xf] }
 0x81e   : > { %3120 = vmatmul.bf16.vlgmr.msrb.gmra.mxu2 %v8369_v52  ;;  %v6308_v52 = vld [vmem:[%s7810_s30 + $0x208] sm:$0xff] }
 0x81f   : > { %3374 = vmatpush.bf16.msra.mxu2 %v5616_v20  ;;  %3672 = vmatpush.bf16.msra.mxu0 %v6308_v52  ;;  %v5816_v52 = vor.u32 %v6341_v59, %v5815_v5  ;;  %v5857_v5 = vld [vmem:[%s7806_s27 + $0x178] sm:$0xf0]  ;;  %v6329_v59 = vld [vmem:[%s7810_s30 + $0x2b0] sm:$0xff] }
 0x823   : > { %3375 = vmatpush.bf16.msra.mxu2 %v5600_v10  ;;  %3673 = vmatpush.bf16.msra.mxu0 %v6307_v9  ;;  %v5832_v10 = vor.u32 %v6345_v54, %v5831_v40  ;;  %v6339_v9 = vld [vmem:[%s7806_s27 + $0x34] sm:$0xf]  ;;  %v5892_v40 = vor.u32 %v6356_v17, %v5889_v31  ;;  %v5873_v54 = vld [vmem:[%s7806_s27 + $0x1f8] sm:$0xf0]  ;;  %v5871_v17 = vld [vmem:[%s7806_s27 + $0x1b8] sm:$0xf] }
 0x824   : > { %v6354_v31 = vld [vmem:[%s7806_s27 + $0x1f4] sm:$0xf0] }
 0x825   : > { %v2845_v12 = vpop.f32.mrf.mxu0 }
 0x826   : > { %v2859_v11 = vpop.f32.mrf.mxu1 }
 0x827   : > { %3376 = vmatpush.bf16.msra.mxu2 %v5584_v62  ;;  %v8421_v19 = vadd.f32 %v2859_v11, %v2845_v12  ;;  %3926 = vmatpush.bf16.msrb.mxu0 %v5928_v21  ;;  %v5852_v62 = vor.u32 %v6347_v18, %v5849_v44  ;;  %v5817_v12 = vld [vmem:[%s7806_s27 + $0x70] sm:$0xf0]  ;;  %v6330_v44 = vld [vmem:[%s7810_s30 + $0x2b8] sm:$0xff] }
 0x828   : > { %v5820_v21 = vor.u32 %v6339_v9, %v5817_v12  ;;  %v6340_v9 = vld [vmem:[%s7806_s27 + $0x3c] sm:$0xf] }
 0x829   : > { %3945 = vmatpush.bf16.msrb.mxu1 %v5852_v62  ;;  %v5860_v62 = vor.u32 %v6348_v16, %v5857_v5  ;;  %v5825_v12 = vld [vmem:[%s7806_s27 + $0x78] sm:$0xf0]  ;;  %v6346_v16 = vld [vmem:[%s7806_s27 + $0xf4] sm:$0xf0] }
 0x82b   : > { %3377 = vmatpush.bf16.msra.mxu2 %v5568_v7  ;;  %3927 = vmatpush.bf16.msrb.mxu0 %v5912_v60  ;;  %v5836_v7 = vor.u32 %v6343_v45, %v5833_v46  ;;  %v5841_v45 = vld [vmem:[%s7806_s27 + $0xf8] sm:$0xf0] }
 0x82d   : > { %v2847_v41 = vpop.f32.mrf.mxu0  ;;  %3946 = vmatpush.bf16.msrb.mxu1 %v5836_v7  ;;  %v5844_v7 = vor.u32 %v6344_v30, %v5841_v45  ;;  %v6342_v30 = vld [vmem:[%s7806_s27 + $0x74] sm:$0xf0] }
 0x82e   : > { %3378 = vmatmul.bf16.vlgmr.msra.gmra.mxu2 %v8198_v36  ;;  %v2861_v13 = vpop.f32.mrf.mxu1 }
 0x82f   : > { %v8432_v1 = vadd.f32 %v2861_v13, %v2847_v41  ;;  %3928 = vmatpush.bf16.msrb.mxu0 %v5896_v23  ;;  %3694 = vmatpush.bf16.msrb.mxu2 %v6330_v44 }
 0x831   : > { %3947 = vmatpush.bf16.msrb.mxu1 %v5820_v21 }
 0x833   : > { %3929 = vmatpush.bf16.msrb.mxu0 %v5880_v4  ;;  %v8479_v22 = vpop.f32.mrf.mxu3  ;;  %3695 = vmatpush.bf16.msrb.mxu2 %v6329_v59 }
 0x835   : > { %v8440_v14 = vpop.f32.mrf.mxu0 }
 0x837   : > { %3930 = vmatpush.bf16.msrb.mxu0 %v5864_v43  ;;  %v6364_v43 = vld [vmem:[%s7806_s27 + $0x33c] sm:$0xf] }
 0x838   : > { %v5924_v15 = vor.u32 %v6364_v43, %v5921_v48  ;;  %v5904_v43 = vor.u32 %v6362_v24, %v5903_v39 }
 0x83a   : > { %3969 = vmatpush.bf16.msra.mxu3 %v5924_v15 }
 0x83b   : > { %v8451_v20 = vpop.f32.mrf.mxu1  ;;  %3931 = vmatpush.bf16.msrb.mxu0 %v5848_v3  ;;  %v8488_v51 = vpop.f32.mrf.mxu3  ;;  %v5908_v3 = vor.u32 %v6360_v29, %v5905_v42  ;;  %v5887_v29 = vld [vmem:[%s7806_s27 + $0x238] sm:$0xf] }
 0x83c   : > { %v6358_v42 = vld [vmem:[%s7806_s27 + $0x274] sm:$0xf0] }
 0x83d   : > { %v8457_v49 = vpop.f32.mrf.mxu0 }
 0x83e   : > { %3970 = vmatpush.bf16.msra.mxu3 %v5908_v3  ;;  %v5888_v3 = vor.u32 %v6358_v42, %v5887_v29 }
 0x83f   : > { %3932 = vmatpush.bf16.msrb.mxu0 %v5832_v10  ;;  %v5876_v10 = vor.u32 %v6352_v53, %v5873_v54  ;;  %v6350_v54 = vld [vmem:[%s7806_s27 + $0x174] sm:$0xf0] }
 0x842   : > { %3971 = vmatpush.bf16.msra.mxu3 %v5892_v40  ;;  %v5855_v40 = vld [vmem:[%s7806_s27 + $0x138] sm:$0xf] }
 0x843   : > { %v8464_v47 = vpop.f32.mrf.mxu1  ;;  %3933 = vmatpush.bf16.msrb.mxu0 %v5816_v52  ;;  %v6328_v52 = vld [vmem:[%s7810_s30 + $0x2a8] sm:$0xff] }
 0x844   : > { %3696 = vmatpush.bf16.msrb.mxu2 %v6328_v52 }
 0x845   : > { %v3351_v11 = vpop.f32.mrf.mxu0 }
 0x846   : > { %v3352_v60 = vadd.f32 %v3351_v11, %v3174_v56  ;;  %3972 = vmatpush.bf16.msra.mxu3 %v5876_v10  ;;  %v5828_v11 = vor.u32 %v6340_v9, %v5825_v12  ;;  %v3176_v9 = vperm.slane %v8470_v25, 2  ;;  %v6378_v12 = vld [vmem:[%s7810_s30 + $0x338] sm:$0xff] }
 0x848   : > { %v3398_v41 = vmax.f32 %v3352_v60, 0.0  ;;  %3697 = vmatpush.bf16.msrb.mxu2 %v6327_v6 }
 0x84a   : > { %3973 = vmatpush.bf16.msra.mxu3 %v5860_v62  ;;  %v5823_v62 = vld [vmem:[%s7806_s27 + $0x38] sm:$0xf] }
 0x84b   : > { %v3365_v55 = vpop.f32.mrf.mxu1 }
 0x84c   : > { %v3366_v13 = vadd.f32 %v3365_v55, %v3175_v34  ;;  %v3177_v55 = vperm.slane %v8470_v25, 3  ;;  %v6385_v25 = vld [vmem:[%s7810_s30 + $0x370] sm:$0xff] }
 0x84d   : > { %v3353_v27 = vpop.f32.mrf.mxu0 }
 0x84e   : > { %v3354_v61 = vadd.f32 %v3353_v27, %v3174_v56  ;;  %v3399_v37 = vmax.f32 %v3366_v13, 0.0  ;;  %3974 = vmatpush.bf16.msra.mxu3 %v5844_v7  ;;  %v6326_v56 = vld [vmem:[%s7810_s30 + $0x298] sm:$0xff]  ;;  %v5824_v7 = vor.u32 %v6342_v30, %v5823_v62  ;;  %v6395_v62 = vld [vmem:[%s7810_s30 + $0x3c0] sm:$0xff] }
 0x84f   : > { %3698 = vmatpush.bf16.msrb.mxu2 %v6326_v56  ;;  %v6370_v13 = vld [vmem:[%s7806_s27 + $0x3f4] sm:$0xf0] }
 0x850   : > { %v3402_v26 = vmax.f32 %v3354_v61, 0.0 }
 0x852   : > { %v3406_v23 = vpack.c.bf16 %v3402_v26, %v3398_v41  ;;  %3975 = vmatpush.bf16.msra.mxu3 %v5828_v11  ;;  %v6377_v11 = vld [vmem:[%s7810_s30 + $0x330] sm:$0xff] }
 0x853   : > { %v3367_v2 = vpop.f32.mrf.mxu1  ;;  %3699 = vmatpush.bf16.msrb.mxu2 %v6325_v35 }
 0x854   : > { %v3368_v0 = vadd.f32 %v3367_v2, %v3175_v34  ;;  %3674 = vmatmul.bf16.vlgmr.msra.gmra.mxu0 %v3406_v23  ;;  %v6324_v34 = vld [vmem:[%s7810_s30 + $0x288] sm:$0xff] }
 0x855   : > { %4250 = vmatpush.bf16.msra.mxu0 %v6378_v12  ;;  %v6392_v12 = vld [vmem:[%s7810_s30 + $0x3a8] sm:$0xff] }
 0x856   : > { %v3403_v57 = vmax.f32 %v3368_v0, 0.0  ;;  %v5936_v0 = vor.u32 %v6370_v13, %v5935_v33  ;;  %v6372_v33 = vld [vmem:[%s7810_s30 + $0x308] sm:$0xff]  ;;  %v6381_v13 = vld [vmem:[%s7810_s30 + $0x350] sm:$0xff] }
 0x857   : > { %3700 = vmatpush.bf16.msrb.mxu2 %v6324_v34  ;;  %v6384_v34 = vld [vmem:[%s7810_s30 + $0x368] sm:$0xff] }
 0x858   : > { %v3407_v4 = vpack.c.bf16 %v3403_v57, %v3399_v37  ;;  %v5919_v57 = vld [vmem:[%s7806_s27 + $0x338] sm:$0xf] }
 0x859   : > { %4251 = vmatpush.bf16.msra.mxu0 %v6377_v11 }
 0x85a   : > { %3688 = vmatmul.bf16.vlgmr.msra.gmra.mxu1 %v3407_v4  ;;  %v5920_v4 = vor.u32 %v6366_v28, %v5919_v57 }
 0x85b   : > { %3701 = vmatpush.bf16.msrb.mxu2 %v6323_v63  ;;  %v6383_v63 = vld [vmem:[%s7810_s30 + $0x360] sm:$0xff] }
 0x85f   : > { %3954 = vmatpush.bf16.msra.mxu2 %v5936_v0 }
 0x863   : > { %3955 = vmatpush.bf16.msra.mxu2 %v5920_v4 }
 0x864   : > { %3934 = vmatmul.bf16.vlgmr.msrb.gmra.mxu0 %v8198_v36 }
 0x867   : > { %3956 = vmatpush.bf16.msra.mxu2 %v5904_v43 }
 0x86a   : > { %3948 = vmatmul.bf16.vlgmr.msrb.gmra.mxu1 %v8198_v36 }
 0x86b   : > { %3957 = vmatpush.bf16.msra.mxu2 %v5888_v3 }
 0x871   : > { %v8495_v18 = vpop.f32.mrf.mxu3 }
 0x879   : > { %v8503_v46 = vpop.f32.mrf.mxu3 }
 0x881   : > { %v3393_v21 = vpop.f32.mrf.mxu3 }
 0x882   : > { %v3394_v60 = vadd.f32 %v3393_v21, %v3177_v55 }
 0x884   : > { %v3401_v41 = vmax.f32 %v3394_v60, 0.0  ;;  %v6376_v60 = vld [vmem:[%s7810_s30 + $0x328] sm:$0xff] }
 0x885   : > { %4252 = vmatpush.bf16.msra.mxu0 %v6376_v60  ;;  %v6389_v60 = vld [vmem:[%s7810_s30 + $0x390] sm:$0xff] }
 0x889   : > { %v3395_v27 = vpop.f32.mrf.mxu3 }
 0x88a   : > { %v3396_v61 = vadd.f32 %v3395_v27, %v3177_v55  ;;  %v6386_v55 = vld [vmem:[%s7810_s30 + $0x378] sm:$0xff]  ;;  %v6375_v27 = vld [vmem:[%s7810_s30 + $0x320] sm:$0xff] }
 0x88b   : > { %4264 = vmatpush.bf16.msra.mxu1 %v6386_v55  ;;  %4253 = vmatpush.bf16.msra.mxu0 %v6375_v27  ;;  %v6390_v55 = vld [vmem:[%s7810_s30 + $0x398] sm:$0xff]  ;;  %v6387_v27 = vld [vmem:[%s7810_s30 + $0x380] sm:$0xff] }
 0x88c   : > { %v3405_v26 = vmax.f32 %v3396_v61, 0.0  ;;  %v6374_v61 = vld [vmem:[%s7810_s30 + $0x318] sm:$0xff] }
 0x88e   : > { %v3409_v23 = vpack.c.bf16 %v3405_v26, %v3401_v41  ;;  %v6373_v41 = vld [vmem:[%s7810_s30 + $0x310] sm:$0xff]  ;;  %v6382_v26 = vld [vmem:[%s7810_s30 + $0x358] sm:$0xff] }
 0x88f   : > { %4265 = vmatpush.bf16.msra.mxu1 %v6385_v25  ;;  %4254 = vmatpush.bf16.msra.mxu0 %v6374_v61  ;;  %v6388_v25 = vld [vmem:[%s7810_s30 + $0x388] sm:$0xff] }
 0x890   : > { %3716 = vmatmul.bf16.vlgmr.msrb.gmra.mxu3 %v3409_v23  ;;  %v6371_v23 = vld [vmem:[%s7810_s30 + $0x300] sm:$0xff] }
 0x891   : > { %v2873_v2 = vpop.f32.mrf.mxu2 }
 0x892   : > { %v2874_v37 = vadd.f32 %v2873_v2, %v8421_v19  ;;  %v6380_v2 = vld [vmem:[%s7810_s30 + $0x348] sm:$0xff] }
 0x893   : > { %4266 = vmatpush.bf16.msra.mxu1 %v6384_v34  ;;  %4255 = vmatpush.bf16.msra.mxu0 %v6373_v41 }
 0x894   : > { %v2888_v38 = vadd.f32 %v8479_v22, %v2874_v37  ;;  %v6379_v37 = vld [vmem:[%s7810_s30 + $0x340] sm:$0xff] }
 0x896   : > { %v3094_v15 = vadd.f32 %v8440_v14, %v2888_v38  ;;  %v5856_v14 = vor.u32 %v6350_v54, %v5855_v40 }
 0x897   : > { %4267 = vmatpush.bf16.msra.mxu1 %v6383_v63  ;;  %4256 = vmatpush.bf16.msra.mxu0 %v6372_v33 }
 0x898   : > { %v3108_v22 = vadd.f32 %v8451_v20, %v3094_v15  ;;  %v5839_v20 = vld [vmem:[%s7806_s27 + $0xb8] sm:$0xf] }
 0x899   : > { %v2875_v8 = vpop.f32.mrf.mxu2  ;;  %v5840_v5 = vor.u32 %v6346_v16, %v5839_v20  ;;  %v6399_v20 = vld [vmem:[%s7810_s30 + $0x3e0] sm:$0xff]  ;;  %v6398_v16 = vld [vmem:[%s7810_s30 + $0x3d8] sm:$0xff] }
 0x89a   : > { %v2876_v19 = vadd.f32 %v2875_v8, %v8432_v1  ;;  %v5872_v1 = vor.u32 %v6354_v31, %v5871_v17 }
 0x89b   : > { %4268 = vmatpush.bf16.msra.mxu1 %v6382_v26  ;;  %4257 = vmatpush.bf16.msra.mxu0 %v6371_v23 }
 0x89c   : > { %v2890_v48 = vadd.f32 %v8488_v51, %v2876_v19  ;;  %3958 = vmatpush.bf16.msra.mxu2 %v5872_v1 }
 0x89e   : > { %v3096_v10 = vadd.f32 %v8457_v49, %v2890_v48 }
 0x89f   : > { %4269 = vmatpush.bf16.msra.mxu1 %v6381_v13 }
 0x8a0   : > { %3976 = vmatmul.bf16.vlgmr.msra.gmra.mxu3 %v8198_v36  ;;  %3959 = vmatpush.bf16.msra.mxu2 %v5856_v14  ;;  %v3110_v59 = vadd.f32 %v8464_v47, %v3096_v10  ;;  %v6400_v10 = vld [vmem:[%s7810_s30 + $0x3e8] sm:$0xff] }
 0x8a1   : > { %v3121_v53 = vpop.f32.mrf.mxu2 }
 0x8a2   : > { %v3122_v44 = vadd.f32 %v3121_v53, %v3108_v22  ;;  %v6402_v53 = vld [vmem:[%s7810_s30 + $0x3f8] sm:$0xff] }
 0x8a3   : > { %4270 = vmatpush.bf16.msra.mxu1 %v6380_v2  ;;  %4292 = vmatpush.bf16.msrb.mxu3 %v6402_v53 }
 0x8a4   : > { %v8534_v51 = vadd.f32 %v8495_v18, %v3122_v44  ;;  %3960 = vmatpush.bf16.msra.mxu2 %v5840_v5  ;;  %v6401_v44 = vld [vmem:[%s7810_s30 + $0x3f0] sm:$0xff] }
 0x8a5   : > { %v6397_v5 = vld [vmem:[%s7810_s30 + $0x3d0] sm:$0xff] }
 0x8a7   : > { %4271 = vmatpush.bf16.msra.mxu1 %v6379_v37  ;;  %4293 = vmatpush.bf16.msrb.mxu3 %v6401_v44 }
 0x8a8   : > { %3961 = vmatpush.bf16.msra.mxu2 %v5824_v7 }
 0x8a9   : > { %v3123_v45 = vpop.f32.mrf.mxu2 }
 0x8aa   : > { %v3124_v52 = vadd.f32 %v3123_v45, %v3110_v59  ;;  %v6396_v59 = vld [vmem:[%s7810_s30 + $0x3c8] sm:$0xff] }
 0x8ab   : > { %4294 = vmatpush.bf16.msrb.mxu3 %v6400_v10 }
 0x8ac   : > { %v8543_v18 = vadd.f32 %v8503_v46, %v3124_v52  ;;  %v6394_v52 = vld [vmem:[%s7810_s30 + $0x3b8] sm:$0xff] }
 0x8af   : > { %4295 = vmatpush.bf16.msrb.mxu3 %v6399_v20 }
 0x8b1   : > { %v3379_v49 = vpop.f32.mrf.mxu2 }
 0x8b2   : > { %v3380_v6 = vadd.f32 %v3379_v49, %v3176_v9  ;;  %v6393_v49 = vld [vmem:[%s7810_s30 + $0x3b0] sm:$0xff] }
 0x8b3   : > { %4296 = vmatpush.bf16.msrb.mxu3 %v6398_v16 }
 0x8b4   : > { %v3400_v56 = vmax.f32 %v3380_v6, 0.0 }
 0x8b7   : > { %4297 = vmatpush.bf16.msrb.mxu3 %v6397_v5 }
 0x8b9   : > { %v3381_v47 = vpop.f32.mrf.mxu2 }
 0x8ba   : > { %v3382_v21 = vadd.f32 %v3381_v47, %v3176_v9 }
 0x8bb   : > { %4298 = vmatpush.bf16.msrb.mxu3 %v6396_v59 }
 0x8bc   : > { %v3404_v35 = vmax.f32 %v3382_v21, 0.0  ;;  %v6391_v21 = vld [vmem:[%s7810_s30 + $0x3a0] sm:$0xff] }
 0x8be   : > { %v3408_v46 = vpack.c.bf16 %v3404_v35, %v3400_v56 }
 0x8bf   : > { %4299 = vmatpush.bf16.msrb.mxu3 %v6395_v62 }
 0x8c0   : > { %3702 = vmatmul.bf16.vlgmr.msrb.gmra.mxu2 %v3408_v46 }
 0x8c1   : > { %4278 = vmatpush.bf16.msrb.mxu2 %v6394_v52 }
 0x8c5   : > { %4279 = vmatpush.bf16.msrb.mxu2 %v6393_v49 }
 0x8c9   : > { %4280 = vmatpush.bf16.msrb.mxu2 %v6392_v12 }
 0x8cd   : > { %4281 = vmatpush.bf16.msrb.mxu2 %v6391_v21 }
 0x8d0   : > { %3962 = vmatmul.bf16.vlgmr.msra.gmra.mxu2 %v8198_v36  ;;  %v8568_v36 = vld [vmem:[%s7808_s6 + $0xc] sm:$0xf] }
 0x8d1   : > { %v3675_v0 = vpop.f32.mrf.mxu0  ;;  %v3758_v8 = vperm.slane %v8568_v36, 0  ;;  %v3759_v15 = vperm.slane %v8568_v36, 1  ;;  %v3761_v9 = vperm.slane %v8568_v36, 3  ;;  %4282 = vmatpush.bf16.msrb.mxu2 %v6390_v55  ;;  %v6577_v55 = vld [vmem:[%s1036_s14] ss:$0 sm:$0xff] }
 0x8d5   : > { %4283 = vmatpush.bf16.msrb.mxu2 %v6389_v60 }
 0x8d7   : > { %v3689_v57 = vpop.f32.mrf.mxu1 }
 0x8d8   : > { %v8563_v28 = vadd.f32 %v3689_v57, %v3675_v0  ;;  %v3760_v0 = vperm.slane %v8568_v36, 2 }
 0x8d9   : > { %v3677_v4 = vpop.f32.mrf.mxu0  ;;  %4284 = vmatpush.bf16.msrb.mxu2 %v6388_v25 }
 0x8dd   : > { %4285 = vmatpush.bf16.msrb.mxu2 %v6387_v27 }
 0x8df   : > { %v3691_v38 = vpop.f32.mrf.mxu1 }
 0x8e0   : > { %v8565_v39 = vadd.f32 %v3691_v38, %v3677_v4 }
 0x8e1   : > { %v3935_v24 = vpop.f32.mrf.mxu0 }
 0x8e2   : > { %v3936_v19 = vadd.f32 %v3935_v24, %v3758_v8 }
 0x8e4   : > { %v3982_v42 = vmax.f32 %v3936_v19, 0.0 }
 0x8e7   : > { %v3949_v43 = vpop.f32.mrf.mxu1 }
 0x8e8   : > { %v3950_v22 = vadd.f32 %v3949_v43, %v3759_v15 }
 0x8e9   : > { %v3937_v48 = vpop.f32.mrf.mxu0 }
 0x8ea   : > { %v3938_v29 = vadd.f32 %v3937_v48, %v3758_v8  ;;  %v3983_v1 = vmax.f32 %v3950_v22, 0.0 }
 0x8ec   : > { %v3986_v3 = vmax.f32 %v3938_v29, 0.0 }
 0x8ee   : > { %v3990_v17 = vpack.c.bf16 %v3986_v3, %v3982_v42 }
 0x8ef   : > { %v3951_v31 = vpop.f32.mrf.mxu1 }
 0x8f0   : > { %v3952_v40 = vadd.f32 %v3951_v31, %v3759_v15  ;;  %4258 = vmatmul.bf16.vlgmr.msra.gmra.mxu0 %v3990_v17 }
 0x8f2   : > { %v3987_v54 = vmax.f32 %v3952_v40, 0.0 }
 0x8f4   : > { %v3991_v14 = vpack.c.bf16 %v3987_v54, %v3983_v1 }
 0x8f6   : > { %4272 = vmatmul.bf16.vlgmr.msra.gmra.mxu1 %v3991_v14 }
 0x913   : > { %v3717_v30 = vpop.f32.mrf.mxu3 }
 0x91b   : > { %v3719_v45 = vpop.f32.mrf.mxu3 }
 0x923   : > { %v3977_v7 = vpop.f32.mrf.mxu3 }
 0x924   : > { %v3978_v6 = vadd.f32 %v3977_v7, %v3761_v9 }
 0x926   : > { %v3985_v56 = vmax.f32 %v3978_v6, 0.0 }
 0x92b   : > { %v3979_v47 = vpop.f32.mrf.mxu3 }
 0x92c   : > { %v3980_v11 = vadd.f32 %v3979_v47, %v3761_v9 }
 0x92e   : > { %v3989_v35 = vmax.f32 %v3980_v11, 0.0 }
 0x930   : > { %v3993_v46 = vpack.c.bf16 %v3989_v35, %v3985_v56 }
 0x932   : > { %4300 = vmatmul.bf16.vlgmr.msrb.gmra.mxu3 %v3993_v46 }
 0x943   : > { %v3703_v34 = vpop.f32.mrf.mxu2 }
 0x944   : > { %v3704_v61 = vadd.f32 %v3703_v34, %v8563_v28 }
 0x946   : > { %v3718_v63 = vadd.f32 %v3717_v30, %v3704_v61 }
 0x948   : > { %v3722_v41 = vadd.f32 %v3718_v63, %v8534_v51 }
 0x94b   : > { %v3705_v26 = vpop.f32.mrf.mxu2 }
 0x94c   : > { %v3706_v33 = vadd.f32 %v3705_v26, %v8565_v39 }
 0x94e   : > { %v3720_v13 = vadd.f32 %v3719_v45, %v3706_v33 }
 0x950   : > { %v3723_v23 = vadd.f32 %v3720_v13, %v8543_v18  ;;  %v6576_v18 = vld [vmem:[%s1027_s15] ss:$0 sm:$0xff] }
 0x953   : > { %v3963_v2 = vpop.f32.mrf.mxu2 }
 0x954   : > { %v3964_v37 = vadd.f32 %v3963_v2, %v3760_v0 }
 0x956   : > { %v3984_v38 = vmax.f32 %v3964_v37, 0.0 }
 0x95b   : > { %v3965_v57 = vpop.f32.mrf.mxu2 }
 0x95c   : > { %v3966_v4 = vadd.f32 %v3965_v57, %v3760_v0 }
 0x95e   : > { %v3988_v24 = vmax.f32 %v3966_v4, 0.0 }
 0x960   : > { %v3992_v8 = vpack.c.bf16 %v3988_v24, %v3984_v38 }
 0x962   : > { %4286 = vmatmul.bf16.vlgmr.msrb.gmra.mxu2 %v3992_v8 }
 0x96d   : > { %v4259_v43 = vpop.f32.mrf.mxu0 }
 0x973   : > { %v4273_v28 = vpop.f32.mrf.mxu1 }
 0x974   : > { %v4274_v51 = vadd.f32 %v4273_v28, %v4259_v43 }
 0x975   : > { %v4261_v3 = vpop.f32.mrf.mxu0 }
 0x97b   : > { %v4275_v29 = vpop.f32.mrf.mxu1 }
 0x97c   : > { %v4276_v36 = vadd.f32 %v4275_v29, %v4261_v3 }
 0x9b5   : > { %v4301_v19 = vpop.f32.mrf.mxu3 }
 0x9bd   : > { %v4303_v53 = vpop.f32.mrf.mxu3 }
 0x9e5   : > { %v4287_v48 = vpop.f32.mrf.mxu2 }
 0x9e6   : > { %v4288_v39 = vadd.f32 %v4287_v48, %v4274_v51 }
 0x9e8   : > { %v4302_v15 = vadd.f32 %v4301_v19, %v4288_v39 }
 0x9ea   : > { %v4306_v42 = vadd.f32 %v4302_v15, %v3722_v41 }
 0x9ec   : > { %v4312_v22 = vadd.f32 %v6576_v18, %v4306_v42 }
 0x9ed   : > { %v4289_v17 = vpop.f32.mrf.mxu2 }
 0x9ee   : > { %v4290_v31 = vadd.f32 %v4289_v17, %v4276_v36  ;;  %v4314_v40 = vadd.f32 %v4312_v22, %v8192_v58 }
 0x9f0   : > { %v4304_v1 = vadd.f32 %v4303_v53, %v4290_v31  ;;  %4318 = vadd.xlane.f32.xlu0 %v4314_v40 }
 0x9f2   : > { %v4307_v54 = vadd.f32 %v4304_v1, %v3723_v23 }
 0x9f4   : > { %v4313_v44 = vadd.f32 %v6576_v18, %v4307_v54 }
 0x9f6   : > { %v4315_v14 = vadd.f32 %v4313_v44, %v8194_v32 }
 0x9f8   : > { %4320 = vadd.xlane.f32.xlu1 %v4315_v14 }
 0xa63   : > { %v4319_v10 = vpop.xlane.xlu0 %4318 }
 0xa64   : > { %v4322_v20 = vmul.f32 %v4319_v10, %v8100_v50 }
 0xa66   : > { %v4324_v16 = vsub.f32 %v4314_v40, %v4322_v20 }
 0xa68   : > { %v4326_v5 = vmul.f32 %v4324_v16, %v4324_v16 }
 0xa6a   : > { %4328 = vadd.xlane.f32.xlu2 %v4326_v5 }
 0xa6b   : > { %v4321_v59 = vpop.xlane.xlu1 %4320 }
 0xa6c   : > { %v4323_v62 = vmul.f32 %v4321_v59, %v8100_v50 }
 0xa6e   : > { %v4325_v30 = vsub.f32 %v4315_v14, %v4323_v62 }
 0xa70   : > { %v4327_v45 = vmul.f32 %v4325_v30, %v4325_v30 }
 0xa72   : > { %4330 = vadd.xlane.f32.xlu0 %v4327_v45 }
 0xadd   : > { %v4329_v58 = vpop.xlane.xlu2 %4328 }
 0xade   : > { %v4332_v52 = vmul.f32 %v4329_v58, %v8100_v50 }
 0xae0   : > { %v4334_v7 = vadd.f32 1e-05, %v4332_v52 }
 0xae2   : > { %6649 = vrsqrt.f32 %v4334_v7  ;;  %vm4342_vm9 = vweird.f32 %v4334_v7 }
 0xae5   : > { %v4331_v32 = vpop.xlane.xlu0 %4330 }
 0xae6   : > { %v4333_v49 = vmul.f32 %v4331_v32, %v8100_v50  ;;  %v6578_v50 = vld [vmem:[%s1045_s25] ss:$0 sm:$0xff] }
 0xae8   : > { %v6650_v9 = vpop.eup %6649  ;;  %v4335_v12 = vadd.f32 1e-05, %v4333_v49 }
 0xae9   : > { %v4337_v6 = vmul.f32 %v6650_v9, %v4334_v7  ;;  %vm4343_vm8 = vweird.f32 %v6650_v9 }
 0xaea   : > { %6651 = vrsqrt.f32 %v4335_v12  ;;  %vm4344_vm10 = vmor %vm4342_vm9, %vm4343_vm8  ;;  %vm4352_vm12 = vweird.f32 %v4335_v12 }
 0xaeb   : > { %v4338_v47 = vmul.f32 %v6650_v9, %v4337_v6 }
 0xaed   : > { %v4339_v11 = vmul.f32 0.5, %v4338_v47 }
 0xaef   : > { %v4340_v21 = vsub.f32 1.5, %v4339_v11 }
 0xaf0   : > { %v6652_v56 = vpop.eup %6651 }
 0xaf1   : > { %v4341_v35 = vmul.f32 %v6650_v9, %v4340_v21  ;;  %v4347_v46 = vmul.f32 %v6652_v56, %v4335_v12  ;;  %vm4353_vm11 = vweird.f32 %v6652_v56 }
 0xaf2   : > { %vm4354_vm13 = vmor %vm4352_vm12, %vm4353_vm11 }
 0xaf3   : > { %v4345_v60 = vsel %vm4344_vm10, %v6650_v9, %v4341_v35  ;;  %v4348_v25 = vmul.f32 %v6652_v56, %v4347_v46 }
 0xaf4   : > { %v4356_v27 = vmul.f32 %v4345_v60, %v4324_v16 }
 0xaf5   : > { %v4349_v34 = vmul.f32 0.5, %v4348_v25 }
 0xaf6   : > { %v4361_v61 = vmul.f32 %v6577_v55, %v4356_v27 }
 0xaf7   : > { %v4350_v63 = vsub.f32 1.5, %v4349_v34 }
 0xaf8   : > { %v4366_v41 = vadd.f32 %v6578_v50, %v4361_v61 }
 0xaf9   : > { %v4351_v26 = vmul.f32 %v6652_v56, %v4350_v63 }
 0xafa   : > { %4368 = vst [vmem:[#allocation2] sm:$0xff] %v4366_v41 }
 0xafb   : > { %v4355_v33 = vsel %vm4354_vm13, %v6652_v56, %v4351_v26 }
 0xafc   : > { %v4357_v13 = vmul.f32 %v4355_v33, %v4325_v30 }
 0xafe   : > { %v4362_v23 = vmul.f32 %v6577_v55, %v4357_v13  ;;  %4373 = sbr.rel (%p6069_p4) target bundleno = 3204 (0xc84), region = 184 }
 0xb00   : > { %v4367_v2 = vadd.f32 %v6578_v50, %v4362_v23 }
 0xb02   : > { %4369 = vst [vmem:[#allocation2 + $0x8] sm:$0xff] %v4367_v2 }
 0xb03   : > { %4374 = vst [vmem:[#allocation27] sm:$0xff] %v4366_v41  ;;  %v6410_v0 = vld [vmem:[%s8744_s4 + $0x38] sm:$0xff]  ;;  %v6409_v37 = vld [vmem:[%s8744_s4 + $0x30] sm:$0xff]  ;;  %v6408_v57 = vld [vmem:[%s8744_s4 + $0x28] sm:$0xff]  ;;  %v4376_v43 = vpack.c.bf16 %v4367_v2, %v4366_v41  ;;  %vm4503_vm6 = vcmask 523264  }
 0xb04   : > { %4375 = vst [vmem:[#allocation27 + $0x8] sm:$0xff] %v4367_v2  ;;  %4445 = vmatpush.bf16.msra.mxu0 %v6410_v0  ;;  %v6407_v4 = vld [vmem:[%s8744_s4 + $0x20] sm:$0xff]  ;;  %v6406_v38 = vld [vmem:[%s8744_s4 + $0x18] sm:$0xff]  ;;  %v6405_v24 = vld [vmem:[%s8744_s4 + $0x10] sm:$0xff] }
 0xb05   : > { %v6404_v8 = vld [vmem:[%s8744_s4 + $0x8] sm:$0xff]  ;;  %v6403_v28 = vld [vmem:[%s8744_s4] sm:$0xff]  ;;  %v4497_v58 = vld [vmem:[#allocation3] sm:$0xff] }
 0xb06   : > { %v6653_v51 = vld [vmem:[#allocation26] ss:$0 sm:$0xff]  ;;  %v4498_v12 = vld [vmem:[#allocation3 + $0x8] sm:$0xff] }
 0xb08   : > { %4446 = vmatpush.bf16.msra.mxu0 %v6409_v37 }
 0xb0c   : > { %4447 = vmatpush.bf16.msra.mxu0 %v6408_v57 }
 0xb10   : > { %4448 = vmatpush.bf16.msra.mxu0 %v6407_v4 }
 0xb14   : > { %4449 = vmatpush.bf16.msra.mxu0 %v6406_v38 }
 0xb18   : > { %4450 = vmatpush.bf16.msra.mxu0 %v6405_v24 }
 0xb1c   : > { %4451 = vmatpush.bf16.msra.mxu0 %v6404_v8 }
 0xb20   : > { %4452 = vmatpush.bf16.msra.mxu0 %v6403_v28 }
 0xb23   : > { %4453 = vmatmul.bf16.vlgmr.msra.gmra.mxu0 %v4376_v43 }
 0xba0   : > { %v4454_v19 = vpop.f32.mrf.mxu0 }
 0xba1   : > { %v4455_v48 = vadd.f32 %v6653_v51, %v4454_v19 }
 0xba3   : > { %v4459_v39 = vsub.f32 0.0, %v4455_v48 }
 0xba5   : > { %v4461_v15 = vmul.f32 1.442695, %v4459_v39 }
 0xba7   : > { %6654 = vpow2.f32 %v4461_v15 }
 0xba8   : > { %v4456_v18 = vpop.f32.mrf.mxu0 }
 0xba9   : > { %v4457_v29 = vadd.f32 %v6653_v51, %v4456_v18 }
 0xbab   : > { %v4460_v42 = vsub.f32 0.0, %v4457_v29 }
 0xbad   : > { %v6655_v3 = vpop.eup %6654  ;;  %v4463_v36 = vmul.f32 1.442695, %v4460_v42 }
 0xbae   : > { %v4465_v22 = vadd.f32 1.0, %v6655_v3 }
 0xbaf   : > { %6656 = vpow2.f32 %v4463_v36 }
 0xbb0   : > { %6658 = vrcp.f32 %v4465_v22  ;;  %v4478_v44 = vand.u32 2147483648, %v4465_v22  ;;  %vm4472_vm15 = vweird.f32 %v4465_v22  ;;  %v4476_v10 = vand.u32 2147483647, %v4465_v22 }
 0xbb2   : > { %v4479_v59 = vor.u32 1.1754944e-38, %v4478_v44  ;;  %vm4477_vm1 = vcmp.eq.f32.partialorder %v4476_v10, 8.507059e+37 }
 0xbb5   : > { %v6657_v17 = vpop.eup %6656 }
 0xbb6   : > { %v6659_v31 = vpop.eup %6658  ;;  %v4466_v40 = vadd.f32 1.0, %v6657_v17 }
 0xbb7   : > { %v4468_v53 = vmul.f32 %v6659_v31, %v4465_v22  ;;  %vm4473_vm14 = vweird.f32 %v6659_v31 }
 0xbb8   : > { %6660 = vrcp.f32 %v4466_v40  ;;  %vm4474_vm0 = vmor %vm4472_vm15, %vm4473_vm14  ;;  %v4493_v45 = vand.u32 2147483648, %v4466_v40  ;;  %v4491_v7 = vand.u32 2147483647, %v4466_v40  ;;  %vm4487_vm3 = vweird.f32 %v4466_v40 }
 0xbb9   : > { %v4469_v1 = vsub.f32 1.0, %v4468_v53 }
 0xbba   : > { %v4494_v9 = vor.u32 1.1754944e-38, %v4493_v45  ;;  %vm4492_vm5 = vcmp.eq.f32.partialorder %v4491_v7, 8.507059e+37 }
 0xbbb   : > { %v4470_v54 = vmul.f32 %v6659_v31, %v4469_v1 }
 0xbbd   : > { %v4471_v14 = vadd.f32 %v6659_v31, %v4470_v54 }
 0xbbe   : > { %v6661_v20 = vpop.eup %6660 }
 0xbbf   : > { %v4475_v16 = vsel %vm4474_vm0, %v6659_v31, %v4471_v14  ;;  %v4483_v5 = vmul.f32 %v6661_v20, %v4466_v40  ;;  %vm4488_vm2 = vweird.f32 %v6661_v20 }
 0xbc0   : > { %v4480_v30 = vsel %vm4477_vm1, %v4479_v59, %v4475_v16  ;;  %vm4489_vm4 = vmor %vm4487_vm3, %vm4488_vm2 }
 0xbc1   : > { %v4484_v62 = vsub.f32 1.0, %v4483_v5  ;;  %v4499_v49 = vsub.f32 %v4480_v30, %v4497_v58 }
 0xbc3   : > { %v4485_v52 = vmul.f32 %v6661_v20, %v4484_v62  ;;  %v4501_v21 = vand.u32 2147483647, %v4499_v49 }
 0xbc5   : > { %v4486_v32 = vadd.f32 %v6661_v20, %v4485_v52  ;;  %v4504_v35 = vsel %vm4503_vm6, %v4501_v21, 0.0 }
 0xbc7   : > { %v4490_v6 = vsel %vm4489_vm4, %v6661_v20, %v4486_v32 }
 0xbc8   : > { %v4495_v47 = vsel %vm4492_vm5, %v4494_v9, %v4490_v6 }
 0xbc9   : > { %v4500_v11 = vsub.f32 %v4495_v47, %v4498_v12 }
 0xbcb   : > { %v4502_v56 = vand.u32 2147483647, %v4500_v11 }
 0xbcd   : > { %v4505_v46 = vsel %vm4503_vm6, %v4502_v56, 0.0 }
 0xbce   : > { %v4506_v55 = vadd.f32 %v4505_v46, %v4504_v35 }
 0xbd0   : > { %4507 = vadd.xlane.f32.xlu0 %v4506_v55 }
 0xc43   : > { %v4508_v60 = vpop.xlane.xlu0 %4507 }
 0xc44   : > { %v4509_v25 = vrot.slane %v4508_v60, 4 }
 0xc46   : > { %v4510_v50 = vadd.f32 %v4509_v25, %v4508_v60 }
 0xc48   : > { %v4511_v27 = vrot.slane %v4510_v50, 2 }
 0xc4a   : > { %v4512_v34 = vadd.f32 %v4511_v27, %v4510_v50 }
 0xc4c   : > { %v4513_v61 = vrot.slane %v4512_v34, 1 }
 0xc4e   : > { %v4514_v63 = vadd.f32 %v4513_v61, %v4512_v34 }
 0xc50   : > { %6417 = vpush %v4514_v63 }
 0xc81   : > { %s6418_s2 = spop %6417 }
 0xc82   : > { %v4516_v41 = vstv %s6418_s2 }
 0xc83   : > { %4517 = vst [vmem:[#allocation28] sm:$0x1] %v4516_v41 }
 0xc84 PF: > { %s8745_s17 = sld [smem:[#allocation39_spill]]  ;;  %s7345_s28 = smov [#allocation27]  }
 0xc85   : > { %s4523_s23 = sshll.u32 %s7345_s28, 4  ;;  %s8746_s5 = sld [smem:[#allocation56_spill]]  ;;  %s4524_s23 = int_to_ptr.vmem [resolvable:$true] %s4523_s23 }
 0xc86   : > { %s7346_s20 = smov 128   ;;  %s7347_s0 = smov 8  }
 0xc87   : > { %s8747_s6 = sld [smem:[#allocation57_spill]]  ;;  %s7348_s15 = smov [#allocation28]  }
 0xc88   : > { %s4538_s14 = sshll.u32 %s7348_s15, 4  ;;  %s4539_s14 = int_to_ptr.vmem [resolvable:$true] %s4538_s14 }
 0xc8a   : > { %p6515_p5 = scmp.eq.s32.totalorder %s8745_s17, 2 }
 0xc8b   : > { %s4525_s3 = sshll.u32 %s8746_s5, 4  ;;  %s4526_s3 = int_to_ptr.hbm [resolvable:$true] %s4525_s3 }
 0xc8c   : > { %6472 = dma.vmem_to_hbm [thread:$0]  (%p6515_p5), %s4524_s23, 256, %s4526_s3, [#allocation5], %s7346_s20, %s7346_s20, %s7347_s0  }
 0xc8d   : > { %s4540_s30 = sshll.u32 %s8747_s6, 4  ;;  %s4541_s30 = int_to_ptr.hbm [resolvable:$true] %s4540_s30 }
 0xc8e   : > { %6474 = dma.vmem_to_hbm [thread:$0]  (%p6515_p5), %s4539_s14, 16, %s4541_s30, [#allocation29]  }
 0xc8f   : > { %7305 = dma.done.wait (%p6515_p5), [#allocation5], 256  }
 0xc90   : > { %7307 = vsyncadd (%p6515_p5), [#allocation5], 4294967040 }
 0xc91   : > { %7309 = dma.done.wait (%p6515_p5), [#allocation29], 16  }
 0xc92   : > { %7311 = vsyncadd (%p6515_p5), [#allocation29], 4294967280 }
 0xc93 PF: > { %s8748_s27 = sld [smem:[#allocation40_spill]]  ;;  %s8751_s25 = smov %s7322_s26 }
 0xc94   : > { %s8749_s2 = sld [smem:[#allocation38_spill]] }
 0xc95   : > { %s8750_s28 = sld [smem:[#allocation41_spill]] }
 0xc99   : > { %p35_p8 = scmp.ge.s32.totalorder %s8748_s27, 5  }
 0xc9b   : > { %s8752_s26 = smov %s8750_s28  ;;  %37 = sbr.rel (!%p35_p8) target bundleno = 22 (0x16), region = 301 }
 0xca0   :  { %4559 = vsyncpa [#allocation4], 1 }
 0xca1   :  { %4561 = vsyncpa [#allocation4 + $0x1], 1 }
 0xca2   :  { %4562 = vsyncpa [#allocation7], 1 }
 0xca3   :  { %4563 = vsyncpa [#allocation10], 1 }
 0xca4   :  { %4564 = vsyncpa [#allocation13], 1 }
 0xca5   :  { %4565 = vsyncpa [#allocation5], 1 }
 0xca6   :  { %4567 = vsyncpa [#allocation5 + $0x1], 1 }
 0xca7   :  { %4568 = vsyncpa [#allocation29], 1 }

</bundles_post_ra>
